<compile_context>
chip_gen: v7x
topology: tpu7x:2x2x1
jax: 0.10.0
libtpu: 0.0.40
codegen_flags: <defaults>
</compile_context>

<pallas_src>
import functools
import math

import jax
import jax.numpy as jnp
from jax.experimental import pallas as pl
from jax.experimental.pallas import tpu as pltpu


# Tile preferences — double-buffered bf16 tiles + f32 accumulator stay well under
# v7x's 64 MiB physical / 32 MiB scoped VMEM (and trivially under v5e/v6e).
_PREF_M = 512
_PREF_N = 256
_PREF_K = 512


def _round_up(x, m):
    return (x + m - 1) // m * m


def _pad2(a, rows, cols):
    pr, pc = rows - a.shape[0], cols - a.shape[1]
    if pr == 0 and pc == 0:
        return a
    return jnp.pad(a, ((0, pr), (0, pc)))


# ----------------------------- fused linear kernel -----------------------------

def _linear_kernel(*refs, nk, k_true, n_true, activation, has_ln_in, has_out_ln,
                   has_residual, cache_ln, eps):
    it = iter(refs)
    x_ref = next(it)
    w_ref = next(it)
    b_ref = next(it)
    gi_ref = bi_ref = go_ref = bo_ref = r_ref = None
    if has_ln_in:
        gi_ref = next(it)
        bi_ref = next(it)
    if has_out_ln:
        go_ref = next(it)
        bo_ref = next(it)
    if has_residual:
        r_ref = next(it)
    o_ref = next(it)
    acc_ref = next(it) if nk > 1 else None
    xn_ref = next(it) if cache_ln else None

    j = pl.program_id(1)
    k = pl.program_id(2)

    def ln_x():
        # LayerNorm fused into the consumer matmul (single K tile holds the full row).
        xf = x_ref[...].astype(jnp.float32)
        s1 = jnp.sum(xf, axis=-1, keepdims=True)
        s2 = jnp.sum(xf * xf, axis=-1, keepdims=True)
        mean = s1 * (1.0 / k_true)
        var = s2 * (1.0 / k_true) - mean * mean
        xf = (xf - mean) * jax.lax.rsqrt(var + eps)
        xf = xf * gi_ref[...] + bi_ref[...]
        return xf.astype(jnp.bfloat16)

    if has_ln_in:
        if cache_ln:
            # Compute the normalized x tile once per M tile and reuse across N tiles.
            @pl.when(j == 0)
            def _():
                xn_ref[...] = ln_x()

            xm = xn_ref[...]
        else:
            xm = ln_x()
    else:
        xm = x_ref[...]  # already bf16 (wrapper guarantees it)

    def epilogue(y):
        y = y + b_ref[...]
        if activation == "gelu":
            # TODO(synk): tanh-approximate GELU; torch nn.GELU() default is exact erf.
            c = math.sqrt(2.0 / math.pi)
            y = 0.5 * y * (1.0 + jnp.tanh(c * (y + 0.044715 * y * y * y)))
        elif activation == "sigmoid":
            y = jax.nn.sigmoid(y)
        if has_out_ln:
            # LayerNorm of the matmul output fused into the epilogue (norm_in).
            s1 = jnp.sum(y, axis=-1, keepdims=True)
            s2 = jnp.sum(y * y, axis=-1, keepdims=True)
            mean = s1 * (1.0 / n_true)
            var = s2 * (1.0 / n_true) - mean * mean
            y = (y - mean) * jax.lax.rsqrt(var + eps)
            y = y * go_ref[...] + bo_ref[...]
        if has_residual:
            y = y + r_ref[...].astype(jnp.float32)
        o_ref[...] = y.astype(o_ref.dtype)

    if nk == 1:
        # Fast path: no accumulator scratch, no init pass, no += read-modify-write.
        epilogue(jnp.dot(xm, w_ref[...], preferred_element_type=jnp.float32))
    else:
        @pl.when(k == 0)
        def _init():
            acc_ref[...] = jnp.zeros(acc_ref.shape, jnp.float32)

        acc_ref[...] += jnp.dot(xm, w_ref[...], preferred_element_type=jnp.float32)

        @pl.when(k == nk - 1)
        def _finish():
            epilogue(acc_ref[...])


def linear(x, w, b, *, ln_in=None, out_ln=None, residual=None, activation="none",
           out_dtype=jnp.bfloat16, eps=1e-5):
    """Tiled fused linear: optional input-LN, bias, activation, output-LN, residual.

    x: (M, K), w: (K, N) bf16, b: (N,)/(1,N) f32. Returns (M, N) in out_dtype.
    """
    M, K = x.shape
    Kw, N = w.shape
    assert K == Kw

    # ---- N tiling (lane-dense: last block dims are 128-multiples or full) ----
    Np = _round_up(N, 128)
    if out_ln is not None or Np <= _PREF_N:
        tn, nn = Np, 1                      # output-LN needs the whole row in one tile
    else:
        tn = _PREF_N
        Np = _round_up(Np, tn)
        nn = Np // tn

    # ---- K tiling ----
    if ln_in is not None or K <= _PREF_K:
        tk, Kp, nk = K, K, 1                # input-LN needs the whole row in one tile
    else:
        tk = _PREF_K
        Kp = _round_up(K, tk)
        nk = Kp // tk

    has_ln_in = ln_in is not None
    has_out_ln = out_ln is not None
    has_residual = residual is not None
    cache_ln = has_ln_in and nn > 1

    # ---- M tiling ----
    if M <= _PREF_M:
        tm, Mp, nm = M, M, 1
    else:
        tm = _PREF_M
        Mp = _round_up(M, tm)
        nm = Mp // tm
    # v7x has 2 TensorCores; guarantee >=2 steps along a "parallel" grid axis.
    parallel_cols = 1 if cache_ln else nn
    if nm * parallel_cols == 1 and M >= 16:
        tm = _round_up((M + 1) // 2, 8)
        Mp = 2 * tm
        nm = 2

    xp = _pad2(x.astype(jnp.bfloat16), Mp, Kp)
    wp = _pad2(w.astype(jnp.bfloat16), Kp, Np)
    bp = _pad2(b.astype(jnp.float32).reshape(1, N), 1, Np)

    inputs = [xp, wp, bp]
    in_specs = [
        pl.BlockSpec((tm, tk), lambda i, j, k: (i, k)),
        pl.BlockSpec((tk, tn), lambda i, j, k: (k, j)),
        pl.BlockSpec((1, tn), lambda i, j, k: (0, j)),
    ]
    if has_ln_in:
        g, bb = ln_in
        inputs += [g.astype(jnp.float32).reshape(1, K),
                   bb.astype(jnp.float32).reshape(1, K)]
        in_specs += [pl.BlockSpec((1, tk), lambda i, j, k: (0, 0)),
                     pl.BlockSpec((1, tk), lambda i, j, k: (0, 0))]
    if has_out_ln:
        g, bb = out_ln
        inputs += [_pad2(g.astype(jnp.float32).reshape(1, N), 1, Np),
                   _pad2(bb.astype(jnp.float32).reshape(1, N), 1, Np)]
        in_specs += [pl.BlockSpec((1, tn), lambda i, j, k: (0, j)),
                     pl.BlockSpec((1, tn), lambda i, j, k: (0, j))]
    if has_residual:
        inputs += [_pad2(residual.astype(jnp.bfloat16), Mp, Np)]
        in_specs += [pl.BlockSpec((tm, tn), lambda i, j, k: (i, j))]

    scratch_shapes = []
    if nk > 1:
        scratch_shapes.append(pltpu.VMEM((tm, tn), jnp.float32))
    if cache_ln:
        scratch_shapes.append(pltpu.VMEM((tm, tk), jnp.bfloat16))

    kernel = functools.partial(
        _linear_kernel, nk=nk, k_true=K, n_true=N, activation=activation,
        has_ln_in=has_ln_in, has_out_ln=has_out_ln, has_residual=has_residual,
        cache_ln=cache_ln, eps=eps)

    # The N axis must stay on one core when the LN-cache scratch is reused across it.
    sem_j = "arbitrary" if cache_ln else "parallel"

    out = pl.pallas_call(
        kernel,
        grid=(nm, nn, nk),
        in_specs=in_specs,
        out_specs=pl.BlockSpec((tm, tn), lambda i, j, k: (i, j)),
        out_shape=jax.ShapeDtypeStruct((Mp, Np), out_dtype),
        scratch_shapes=scratch_shapes,
        compiler_params=pltpu.CompilerParams(
            dimension_semantics=("parallel", sem_j, "arbitrary"),
            vmem_limit_bytes=32 * 1024 * 1024),
        cost_estimate=pl.CostEstimate(
            flops=2 * Mp * Np * Kp,
            transcendentals=Mp * Np if activation in ("gelu", "sigmoid") else 0,
            bytes_accessed=2 * (Mp * Kp + Kp * Np)
            + Mp * Np * jnp.dtype(out_dtype).itemsize),
    )(*inputs)

    if Mp != M or Np != N:
        out = out[:M, :N]
    return out


# ----------------------------- attention kernels -----------------------------

def _attn_single_block_kernel(q_ref, k_ref, v_ref, o_ref, *, scale, ns, t_true, tkv):
    """n_kv == 1 fast path: plain softmax, no online-softmax bookkeeping."""
    q = q_ref[0]                              # (tq, Dh) bf16
    kk = k_ref[0]                             # (tkv, Dh) bf16
    s = jax.lax.dot_general(q, kk, (((1,), (1,)), ((), ())),
                            preferred_element_type=jnp.float32) * scale
    tq = s.shape[0]
    # LVSM mask from broadcasted 1-D iotas (no (tq,tkv) int32 materialization).
    row = jax.lax.broadcasted_iota(jnp.int32, (tq, 1), 0)
    col = jax.lax.broadcasted_iota(jnp.int32, (1, tkv), 1)
    allowed = jnp.logical_and(jnp.logical_or(col < ns, row >= ns), col < t_true)
    s = jnp.where(allowed, s, -1e30)
    m = jnp.max(s, axis=-1, keepdims=True)
    p = jnp.exp(s - m)
    l = jnp.sum(p, axis=-1, keepdims=True)
    o = jnp.dot(p.astype(jnp.bfloat16), v_ref[0], preferred_element_type=jnp.float32)
    o_ref[0] = (o * pl.reciprocal(l, approx=True)).astype(o_ref.dtype)


def _flash_attn_kernel(q_ref, k_ref, v_ref, o_ref, m_sc, l_sc, acc_sc, *,
                       scale, ns, t_true, tq, tkv, n_kv):
    qi = pl.program_id(2)
    ki = pl.program_id(3)

    @pl.when(ki == 0)
    def _init():
        m_sc[...] = jnp.full(m_sc.shape, -1e30, jnp.float32)
        l_sc[...] = jnp.zeros(l_sc.shape, jnp.float32)
        acc_sc[...] = jnp.zeros(acc_sc.shape, jnp.float32)

    kv_start = ki * tkv
    q_end = (qi + 1) * tq
    # Block fully masked: pure-padding keys, or src-only queries vs tgt/pad-only keys.
    skip = jnp.logical_or(kv_start >= t_true,
                          jnp.logical_and(q_end <= ns, kv_start >= ns))

    @pl.when(jnp.logical_not(skip))
    def _update():
        q = q_ref[0]                          # (tq, Dh) bf16
        kk = k_ref[0]                         # (tkv, Dh) bf16
        s = jax.lax.dot_general(q, kk, (((1,), (1,)), ((), ())),
                                preferred_element_type=jnp.float32) * scale

        # LVSM mask: src tokens attend only to src tokens, target tokens attend to
        # everything; padded tokens (>= t_true) are never attended to.
        row = qi * tq + jax.lax.broadcasted_iota(jnp.int32, (tq, 1), 0)
        col = kv_start + jax.lax.broadcasted_iota(jnp.int32, (1, tkv), 1)
        allowed = jnp.logical_and(jnp.logical_or(col < ns, row >= ns), col < t_true)
        s = jnp.where(allowed, s, -1e30)

        m_prev = m_sc[...]
        m_new = jnp.maximum(m_prev, jnp.max(s, axis=-1, keepdims=True))
        alpha = jnp.exp(m_prev - m_new)
        # Zero masked probabilities explicitly so rows that are fully masked within
        # this block can never corrupt l/acc (robust to block skipping and ns == 0).
        p = jnp.where(allowed, jnp.exp(s - m_new), 0.0)
        l_sc[...] = alpha * l_sc[...] + jnp.sum(p, axis=-1, keepdims=True)
        acc_sc[...] = alpha * acc_sc[...] + jnp.dot(
            p.astype(jnp.bfloat16), v_ref[0], preferred_element_type=jnp.float32)
        m_sc[...] = m_new

    @pl.when(ki == n_kv - 1)
    def _finish():
        inv_l = pl.reciprocal(l_sc[...], approx=True)
        o_ref[0] = (acc_sc[...] * inv_l).astype(o_ref.dtype)


def flash_attention(qkv, *, num_heads, num_src_tokens, seq_len, tq):
    """qkv: (B, Tp, 3*D) bf16, packed [q | k | v] along the last dim.

    Per-head blocks are sliced out via BlockSpec index maps (no physical transposes);
    the output is written directly in (B, Tp, D) concatenated-heads layout.
    """
    B, Tp, three_d = qkv.shape
    D = three_d // 3
    assert 3 * D == three_d and D % num_heads == 0
    Dh = D // num_heads
    # TODO(synk): head dims that are not 128-lane multiples would need multi-head
    #             blocks or head padding; not required for this configuration.
    assert Dh % 128 == 0, "head_dim must be a multiple of 128"
    assert Tp % tq == 0
    tkv = tq
    n_q = Tp // tq
    n_kv = n_q
    scale = 1.0 / math.sqrt(Dh)
    H = num_heads

    cost = pl.CostEstimate(
        flops=4 * B * H * Tp * Tp * Dh,
        transcendentals=B * H * Tp * Tp,
        bytes_accessed=2 * (3 * B * Tp * D + B * Tp * D))

    if n_kv == 1:
        kernel = functools.partial(_attn_single_block_kernel, scale=scale,
                                   ns=num_src_tokens, t_true=seq_len, tkv=tkv)
        return pl.pallas_call(
            kernel,
            grid=(B, H, n_q),
            in_specs=[
                pl.BlockSpec((1, tq, Dh), lambda b, h, qi: (b, qi, h)),
                pl.BlockSpec((1, tkv, Dh), lambda b, h, qi: (b, 0, H + h)),
                pl.BlockSpec((1, tkv, Dh), lambda b, h, qi: (b, 0, 2 * H + h)),
            ],
            out_specs=pl.BlockSpec((1, tq, Dh), lambda b, h, qi: (b, qi, h)),
            out_shape=jax.ShapeDtypeStruct((B, Tp, D), jnp.bfloat16),
            compiler_params=pltpu.CompilerParams(
                dimension_semantics=("parallel", "parallel", "parallel"),
                vmem_limit_bytes=32 * 1024 * 1024),
            cost_estimate=cost,
        )(qkv, qkv, qkv)

    kernel = functools.partial(
        _flash_attn_kernel, scale=scale, ns=num_src_tokens, t_true=seq_len,
        tq=tq, tkv=tkv, n_kv=n_kv)

    return pl.pallas_call(
        kernel,
        grid=(B, H, n_q, n_kv),
        in_specs=[
            pl.BlockSpec((1, tq, Dh), lambda b, h, qi, ki: (b, qi, h)),
            pl.BlockSpec((1, tkv, Dh), lambda b, h, qi, ki: (b, ki, H + h)),
            pl.BlockSpec((1, tkv, Dh), lambda b, h, qi, ki: (b, ki, 2 * H + h)),
        ],
        out_specs=pl.BlockSpec((1, tq, Dh), lambda b, h, qi, ki: (b, qi, h)),
        out_shape=jax.ShapeDtypeStruct((B, Tp, D), jnp.bfloat16),
        scratch_shapes=[
            pltpu.VMEM((tq, 1), jnp.float32),
            pltpu.VMEM((tq, 1), jnp.float32),
            pltpu.VMEM((tq, Dh), jnp.float32),
        ],
        compiler_params=pltpu.CompilerParams(
            dimension_semantics=("parallel", "parallel", "parallel", "arbitrary"),
            vmem_limit_bytes=32 * 1024 * 1024),
        cost_estimate=cost,
    )(qkv, qkv, qkv)


# ----------------------------- JAX glue (rearranges etc.) -----------------------------

def patchify(x, p):
    # einops: 'b n c (h ph) (w pw) -> b n h w (c ph pw)'
    b, n, c, H, W = x.shape
    h, w = H // p, W // p
    x = x.reshape(b, n, c, h, p, w, p)
    x = x.transpose(0, 1, 3, 5, 2, 4, 6)
    return x.reshape(b, n, h, w, c * p * p)


def unpatchify(x, p, c):
    # einops: 'b n h w (c ph pw) -> b n c (h ph) (w pw)'
    b, n, h, w, _ = x.shape
    x = x.reshape(b, n, h, w, c, p, p)
    x = x.transpose(0, 1, 4, 2, 5, 3, 6)
    return x.reshape(b, n, c, h * p, w * p)


def transformer_layer(x, lp, *, num_heads, num_src_tokens, seq_len, tq):
    B, Tp, D = x.shape
    x2d = x.reshape(B * Tp, D)

    # pre-LN self-attention: LN1 fused into the QKV projection
    qkv = linear(x2d, lp["w_qkv"], lp["b_qkv"], ln_in=(lp["ln1_g"], lp["ln1_b"]))
    attn = flash_attention(qkv.reshape(B, Tp, 3 * D), num_heads=num_heads,
                           num_src_tokens=num_src_tokens, seq_len=seq_len, tq=tq)
    # output projection with fused residual add
    x2d = linear(attn.reshape(B * Tp, D), lp["w_o"], lp["b_o"], residual=x2d)

    # pre-LN MLP: LN2 fused into FF1, residual fused into the FF2 epilogue
    h = linear(x2d, lp["w_ff1"], lp["b_ff1"], ln_in=(lp["ln2_g"], lp["ln2_b"]),
               activation="gelu")
    x2d = linear(h, lp["w_ff2"], lp["b_ff2"], residual=x2d)
    return x2d.reshape(B, Tp, D)


def lvsm_forward(params, src_img, src_rays, tgt_rays, *, patch_size, num_heads):
    """LVSM.forward with vae=None: returns (tgt_img, tgt_latent=None)."""
    p = patch_size
    B, n_src, C, H, W = src_img.shape
    n_tgt = tgt_rays.shape[1]
    hp, wp = H // p, W // p
    D = params["w_tok_in"].shape[1]

    # tokenize_input(cat([src_img, src_rays], dim=-3)) / tokenize_target(tgt_rays),
    # with norm_in fused into the tokenizer epilogues (LayerNorm is per-token, so
    # normalizing src and tgt tokens separately == normalizing the concatenation).
    src_cat = jnp.concatenate([src_img, src_rays], axis=2)
    src_feat = patchify(src_cat, p)                 # (B, n_src, hp, wp, (C+6)p^2)
    tgt_feat = patchify(tgt_rays, p)                # (B, n_tgt, hp, wp, 6p^2)

    ns = n_src * hp * wp
    nt = n_tgt * hp * wp
    T = ns + nt

    tkn_src = linear(src_feat.reshape(B * ns, src_feat.shape[-1]),
                     params["w_tok_in"], params["b_tok_in"],
                     out_ln=(params["norm_in_g"], params["norm_in_b"]))
    tkn_tgt = linear(tgt_feat.reshape(B * nt, tgt_feat.shape[-1]),
                     params["w_tok_tgt"], params["b_tok_tgt"],
                     out_ln=(params["norm_in_g"], params["norm_in_b"]))

    x = jnp.concatenate([tkn_src.reshape(B, ns, D), tkn_tgt.reshape(B, nt, D)], axis=1)

    # Pad the token axis once so all transformer tiles stay (8,128)-friendly; the
    # in-kernel mask excludes padded tokens from attention.
    tq = min(256, _round_up(T, 8))
    Tp = _round_up(T, tq)
    if Tp != T:
        x = jnp.pad(x, ((0, 0), (0, Tp - T), (0, 0)))

    for lp in params["layers"]:
        x = transformer_layer(x, lp, num_heads=num_heads, num_src_tokens=ns,
                              seq_len=T, tq=tq)

    tkn_tgt_out = x[:, ns:T]                        # (B, nt, D)

    # untokenize_output: norm_out fused as input-LN, final sigmoid fused in epilogue.
    out = linear(tkn_tgt_out.reshape(B * nt, D), params["w_untok"], params["b_untok"],
                 ln_in=(params["norm_out_g"], params["norm_out_b"]),
                 activation="sigmoid", out_dtype=jnp.float32)
    out = out.reshape(B, n_tgt, hp, wp, C * p * p)
    tgt_img = unpatchify(out, p, C)                 # (B, n_tgt, C, H, W)
    return tgt_img, None


# ----------------------------- deterministic parameter init -----------------------------

def init_params(key, *, C, p, d_model, num_heads, num_layers, d_ff):
    keys = iter(jax.random.split(key, 4 + 4 * num_layers))

    def w(shape, scale=0.02):
        # Weights created directly in bf16 (MXU-native) so no per-call casts remain.
        return (scale * jax.random.normal(next(keys), shape,
                                          dtype=jnp.float32)).astype(jnp.bfloat16)

    def vec0(n):
        return jnp.zeros((1, n), jnp.float32)

    def vec1(n):
        return jnp.ones((1, n), jnp.float32)

    params = {
        "w_tok_in": w(((C + 6) * p * p, d_model)),
        "b_tok_in": vec0(d_model),
        "w_tok_tgt": w((6 * p * p, d_model)),
        "b_tok_tgt": vec0(d_model),
        "norm_in_g": vec1(d_model),
        "norm_in_b": vec0(d_model),
        "norm_out_g": vec1(d_model),
        "norm_out_b": vec0(d_model),
        "w_untok": w((d_model, C * p * p)),
        "b_untok": vec0(C * p * p),
        "layers": [],
    }
    for _ in range(num_layers):
        params["layers"].append({
            "ln1_g": vec1(d_model),
            "ln1_b": vec0(d_model),
            "w_qkv": w((d_model, 3 * d_model)),
            "b_qkv": vec0(3 * d_model),
            "w_o": w((d_model, d_model)),
            "b_o": vec0(d_model),
            "ln2_g": vec1(d_model),
            "ln2_b": vec0(d_model),
            "w_ff1": w((d_model, d_ff)),
            "b_ff1": vec0(d_ff),
            "w_ff2": w((d_ff, d_model)),
            "b_ff2": vec0(d_model),
        })
    return params


# ----------------------------- main -----------------------------

if __name__ == "__main__":
    # Small config (vae_cfg=None => num_ray_channels=6, num_patch_channels=C).
    # head_dim = d_model/num_heads = 128 keeps attention blocks lane-dense.
    PATCH = 4
    C = 3
    H = W = 16
    B = 2
    N_SRC = 2
    N_TGT = 1
    D_MODEL = 256
    NUM_HEADS = 2
    NUM_LAYERS = 2
    D_FF = 512

    key = jax.random.PRNGKey(0)
    k1, k2, k3 = jax.random.split(key, 3)
    src_img = jax.random.uniform(k1, (B, N_SRC, C, H, W), dtype=jnp.float32)
    src_rays = jax.random.normal(k2, (B, N_SRC, 6, H, W), dtype=jnp.float32)
    tgt_rays = jax.random.normal(k3, (B, N_TGT, 6, H, W), dtype=jnp.float32)

    params = init_params(jax.random.PRNGKey(42), C=C, p=PATCH, d_model=D_MODEL,
                         num_heads=NUM_HEADS, num_layers=NUM_LAYERS, d_ff=D_FF)

    fwd = jax.jit(functools.partial(lvsm_forward, patch_size=PATCH, num_heads=NUM_HEADS))
    tgt_img, tgt_latent = fwd(params, src_img, src_rays, tgt_rays)
    jax.block_until_ready(tgt_img)

    assert tgt_img.shape == (B, N_TGT, C, H, W)
    assert tgt_latent is None
    assert bool(jnp.all(jnp.isfinite(tgt_img)))
    assert bool(jnp.all((tgt_img >= 0.0) & (tgt_img <= 1.0)))
    print("KERNEL_OK")
</pallas_src>

<mosaic_0001>
module attributes {stable_mosaic.version = 11 : i64} {
  func.func @_linear_kernel(%arg0: i32, %arg1: i32, %arg2: i32, %arg3: memref<32x144xbf16, #tpu.memory_space<vmem>>, %arg4: memref<144x256xbf16, #tpu.memory_space<vmem>>, %arg5: memref<1x256xf32, #tpu.memory_space<vmem>>, %arg6: memref<1x256xf32, #tpu.memory_space<vmem>>, %arg7: memref<1x256xf32, #tpu.memory_space<vmem>>, %arg8: memref<32x256xbf16, #tpu.memory_space<vmem>>) attributes {dimension_semantics = [#tpu.dimension_semantics<parallel>, #tpu.dimension_semantics<parallel>, #tpu.dimension_semantics<arbitrary>], iteration_bounds = array<i64: 2, 1, 1>, scalar_prefetch = 0 : i64, scratch_operands = 0 : i64, tpu.core_type = #tpu.core_type<tc>, window_params = [{transform_indices = @transform_0, window_bounds = array<i64: 32, 144>}, {transform_indices = @transform_1, window_bounds = array<i64: 144, 256>}, {transform_indices = @transform_2, window_bounds = array<i64: 1, 256>}, {transform_indices = @transform_3, window_bounds = array<i64: 1, 256>}, {transform_indices = @transform_4, window_bounds = array<i64: 1, 256>}, {transform_indices = @transform_5, window_bounds = array<i64: 32, 256>}]} {
    %c0 = arith.constant 0 : index
    %c0_0 = arith.constant 0 : index
    %0 = vector.load %arg3[%c0, %c0_0] : memref<32x144xbf16, #tpu.memory_space<vmem>>, vector<32x144xbf16>
    %c0_1 = arith.constant 0 : index
    %c0_2 = arith.constant 0 : index
    %1 = vector.load %arg4[%c0_1, %c0_2] : memref<144x256xbf16, #tpu.memory_space<vmem>>, vector<144x256xbf16>
    %cst = arith.constant dense<0.000000e+00> : vector<32x256xf32>
    %2 = tpu.matmul %0, %1, %cst {dimension_numbers = #tpu.dot_dimension_numbers<[1], [0], [0], [1], [0, 0, 1, 1], [], []>} : vector<32x144xbf16>, vector<144x256xbf16>, vector<32x256xf32> -> vector<32x256xf32>
    %c0_3 = arith.constant 0 : index
    %c0_4 = arith.constant 0 : index
    %3 = vector.load %arg5[%c0_3, %c0_4] : memref<1x256xf32, #tpu.memory_space<vmem>>, vector<1x256xf32>
    %4 = vector.broadcast %3 : vector<1x256xf32> to vector<32x256xf32>
    %5 = arith.addf %2, %4 : vector<32x256xf32>
    %cst_5 = arith.constant dense<0.000000e+00> : vector<32xf32>
    %6 = vector.multi_reduction <add>, %5, %cst_5 [1] : vector<32x256xf32> to vector<32xf32>
    %7 = vector.shape_cast %6 : vector<32xf32> to vector<32x1xf32>
    %8 = arith.mulf %5, %5 : vector<32x256xf32>
    %cst_6 = arith.constant dense<0.000000e+00> : vector<32xf32>
    %9 = vector.multi_reduction <add>, %8, %cst_6 [1] : vector<32x256xf32> to vector<32xf32>
    %10 = vector.shape_cast %9 : vector<32xf32> to vector<32x1xf32>
    %cst_7 = arith.constant 3.906250e-03 : f32
    %11 = vector.broadcast %cst_7 : f32 to vector<32x1xf32>
    %12 = arith.mulf %7, %11 : vector<32x1xf32>
    %cst_8 = arith.constant 3.906250e-03 : f32
    %13 = vector.broadcast %cst_8 : f32 to vector<32x1xf32>
    %14 = arith.mulf %10, %13 : vector<32x1xf32>
    %15 = arith.mulf %12, %12 : vector<32x1xf32>
    %16 = arith.subf %14, %15 : vector<32x1xf32>
    %17 = vector.broadcast %12 : vector<32x1xf32> to vector<32x256xf32>
    %18 = arith.subf %5, %17 : vector<32x256xf32>
    %cst_9 = arith.constant 9.99999974E-6 : f32
    %19 = vector.broadcast %cst_9 : f32 to vector<32x1xf32>
    %20 = arith.addf %16, %19 : vector<32x1xf32>
    %21 = math.rsqrt %20 : vector<32x1xf32>
    %22 = vector.broadcast %21 : vector<32x1xf32> to vector<32x256xf32>
    %23 = arith.mulf %18, %22 : vector<32x256xf32>
    %c0_10 = arith.constant 0 : index
    %c0_11 = arith.constant 0 : index
    %24 = vector.load %arg6[%c0_10, %c0_11] : memref<1x256xf32, #tpu.memory_space<vmem>>, vector<1x256xf32>
    %25 = vector.broadcast %24 : vector<1x256xf32> to vector<32x256xf32>
    %26 = arith.mulf %23, %25 : vector<32x256xf32>
    %c0_12 = arith.constant 0 : index
    %c0_13 = arith.constant 0 : index
    %27 = vector.load %arg7[%c0_12, %c0_13] : memref<1x256xf32, #tpu.memory_space<vmem>>, vector<1x256xf32>
    %28 = vector.broadcast %27 : vector<1x256xf32> to vector<32x256xf32>
    %29 = arith.addf %26, %28 : vector<32x256xf32>
    %30 = arith.truncf %29 : vector<32x256xf32> to vector<32x256xbf16>
    %c0_14 = arith.constant 0 : index
    %c0_15 = arith.constant 0 : index
    %31 = vector.load %arg8[%c0_14, %c0_15] : memref<32x256xbf16, #tpu.memory_space<vmem>>, vector<32x256xbf16>
    tpu.vector_store %arg8[%c0_14, %c0_15], %30 {strides = array<i32>} : memref<32x256xbf16, #tpu.memory_space<vmem>>, vector<32x256xbf16>,
    return
  }
  func.func @transform_0(%arg0: i32, %arg1: i32, %arg2: i32) -> (i32, i32) {
    %c0_i32 = arith.constant 0 : i32
    return %arg0, %arg2 : i32, i32
  }
  func.func @transform_1(%arg0: i32, %arg1: i32, %arg2: i32) -> (i32, i32) {
    %c0_i32 = arith.constant 0 : i32
    return %arg2, %arg1 : i32, i32
  }
  func.func @transform_2(%arg0: i32, %arg1: i32, %arg2: i32) -> (i32, i32) {
    %c0_i32 = arith.constant 0 : i32
    %c0_i32_0 = arith.constant 0 : i32
    return %c0_i32, %arg1 : i32, i32
  }
  func.func @transform_3(%arg0: i32, %arg1: i32, %arg2: i32) -> (i32, i32) {
    %c0_i32 = arith.constant 0 : i32
    %c0_i32_0 = arith.constant 0 : i32
    return %c0_i32, %arg1 : i32, i32
  }
  func.func @transform_4(%arg0: i32, %arg1: i32, %arg2: i32) -> (i32, i32) {
    %c0_i32 = arith.constant 0 : i32
    %c0_i32_0 = arith.constant 0 : i32
    return %c0_i32, %arg1 : i32, i32
  }
  func.func @transform_5(%arg0: i32, %arg1: i32, %arg2: i32) -> (i32, i32) {
    %c0_i32 = arith.constant 0 : i32
    return %arg0, %arg1 : i32, i32
  }
}

module attributes {stable_mosaic.version = 11 : i64} {
  func.func @_linear_kernel(%arg0: i32, %arg1: i32, %arg2: i32, %arg3: memref<16x96xbf16, #tpu.memory_space<vmem>>, %arg4: memref<96x256xbf16, #tpu.memory_space<vmem>>, %arg5: memref<1x256xf32, #tpu.memory_space<vmem>>, %arg6: memref<1x256xf32, #tpu.memory_space<vmem>>, %arg7: memref<1x256xf32, #tpu.memory_space<vmem>>, %arg8: memref<16x256xbf16, #tpu.memory_space<vmem>>) attributes {dimension_semantics = [#tpu.dimension_semantics<parallel>, #tpu.dimension_semantics<parallel>, #tpu.dimension_semantics<arbitrary>], iteration_bounds = array<i64: 2, 1, 1>, scalar_prefetch = 0 : i64, scratch_operands = 0 : i64, tpu.core_type = #tpu.core_type<tc>, window_params = [{transform_indices = @transform_0, window_bounds = array<i64: 16, 96>}, {transform_indices = @transform_1, window_bounds = array<i64: 96, 256>}, {transform_indices = @transform_2, window_bounds = array<i64: 1, 256>}, {transform_indices = @transform_3, window_bounds = array<i64: 1, 256>}, {transform_indices = @transform_4, window_bounds = array<i64: 1, 256>}, {transform_indices = @transform_5, window_bounds = array<i64: 16, 256>}]} {
    %c0 = arith.constant 0 : index
    %c0_0 = arith.constant 0 : index
    %0 = vector.load %arg3[%c0, %c0_0] : memref<16x96xbf16, #tpu.memory_space<vmem>>, vector<16x96xbf16>
    %c0_1 = arith.constant 0 : index
    %c0_2 = arith.constant 0 : index
    %1 = vector.load %arg4[%c0_1, %c0_2] : memref<96x256xbf16, #tpu.memory_space<vmem>>, vector<96x256xbf16>
    %cst = arith.constant dense<0.000000e+00> : vector<16x256xf32>
    %2 = tpu.matmul %0, %1, %cst {dimension_numbers = #tpu.dot_dimension_numbers<[1], [0], [0], [1], [0, 0, 1, 1], [], []>} : vector<16x96xbf16>, vector<96x256xbf16>, vector<16x256xf32> -> vector<16x256xf32>
    %c0_3 = arith.constant 0 : index
    %c0_4 = arith.constant 0 : index
    %3 = vector.load %arg5[%c0_3, %c0_4] : memref<1x256xf32, #tpu.memory_space<vmem>>, vector<1x256xf32>
    %4 = vector.broadcast %3 : vector<1x256xf32> to vector<16x256xf32>
    %5 = arith.addf %2, %4 : vector<16x256xf32>
    %cst_5 = arith.constant dense<0.000000e+00> : vector<16xf32>
    %6 = vector.multi_reduction <add>, %5, %cst_5 [1] : vector<16x256xf32> to vector<16xf32>
    %7 = vector.shape_cast %6 : vector<16xf32> to vector<16x1xf32>
    %8 = arith.mulf %5, %5 : vector<16x256xf32>
    %cst_6 = arith.constant dense<0.000000e+00> : vector<16xf32>
    %9 = vector.multi_reduction <add>, %8, %cst_6 [1] : vector<16x256xf32> to vector<16xf32>
    %10 = vector.shape_cast %9 : vector<16xf32> to vector<16x1xf32>
    %cst_7 = arith.constant 3.906250e-03 : f32
    %11 = vector.broadcast %cst_7 : f32 to vector<16x1xf32>
    %12 = arith.mulf %7, %11 : vector<16x1xf32>
    %cst_8 = arith.constant 3.906250e-03 : f32
    %13 = vector.broadcast %cst_8 : f32 to vector<16x1xf32>
    %14 = arith.mulf %10, %13 : vector<16x1xf32>
    %15 = arith.mulf %12, %12 : vector<16x1xf32>
    %16 = arith.subf %14, %15 : vector<16x1xf32>
    %17 = vector.broadcast %12 : vector<16x1xf32> to vector<16x256xf32>
    %18 = arith.subf %5, %17 : vector<16x256xf32>
    %cst_9 = arith.constant 9.99999974E-6 : f32
    %19 = vector.broadcast %cst_9 : f32 to vector<16x1xf32>
    %20 = arith.addf %16, %19 : vector<16x1xf32>
    %21 = math.rsqrt %20 : vector<16x1xf32>
    %22 = vector.broadcast %21 : vector<16x1xf32> to vector<16x256xf32>
    %23 = arith.mulf %18, %22 : vector<16x256xf32>
    %c0_10 = arith.constant 0 : index
    %c0_11 = arith.constant 0 : index
    %24 = vector.load %arg6[%c0_10, %c0_11] : memref<1x256xf32, #tpu.memory_space<vmem>>, vector<1x256xf32>
    %25 = vector.broadcast %24 : vector<1x256xf32> to vector<16x256xf32>
    %26 = arith.mulf %23, %25 : vector<16x256xf32>
    %c0_12 = arith.constant 0 : index
    %c0_13 = arith.constant 0 : index
    %27 = vector.load %arg7[%c0_12, %c0_13] : memref<1x256xf32, #tpu.memory_space<vmem>>, vector<1x256xf32>
    %28 = vector.broadcast %27 : vector<1x256xf32> to vector<16x256xf32>
    %29 = arith.addf %26, %28 : vector<16x256xf32>
    %30 = arith.truncf %29 : vector<16x256xf32> to vector<16x256xbf16>
    %c0_14 = arith.constant 0 : index
    %c0_15 = arith.constant 0 : index
    %31 = vector.load %arg8[%c0_14, %c0_15] : memref<16x256xbf16, #tpu.memory_space<vmem>>, vector<16x256xbf16>
    tpu.vector_store %arg8[%c0_14, %c0_15], %30 {strides = array<i32>} : memref<16x256xbf16, #tpu.memory_space<vmem>>, vector<16x256xbf16>,
    return
  }
  func.func @transform_0(%arg0: i32, %arg1: i32, %arg2: i32) -> (i32, i32) {
    %c0_i32 = arith.constant 0 : i32
    return %arg0, %arg2 : i32, i32
  }
  func.func @transform_1(%arg0: i32, %arg1: i32, %arg2: i32) -> (i32, i32) {
    %c0_i32 = arith.constant 0 : i32
    return %arg2, %arg1 : i32, i32
  }
  func.func @transform_2(%arg0: i32, %arg1: i32, %arg2: i32) -> (i32, i32) {
    %c0_i32 = arith.constant 0 : i32
    %c0_i32_0 = arith.constant 0 : i32
    return %c0_i32, %arg1 : i32, i32
  }
  func.func @transform_3(%arg0: i32, %arg1: i32, %arg2: i32) -> (i32, i32) {
    %c0_i32 = arith.constant 0 : i32
    %c0_i32_0 = arith.constant 0 : i32
    return %c0_i32, %arg1 : i32, i32
  }
  func.func @transform_4(%arg0: i32, %arg1: i32, %arg2: i32) -> (i32, i32) {
    %c0_i32 = arith.constant 0 : i32
    %c0_i32_0 = arith.constant 0 : i32
    return %c0_i32, %arg1 : i32, i32
  }
  func.func @transform_5(%arg0: i32, %arg1: i32, %arg2: i32) -> (i32, i32) {
    %c0_i32 = arith.constant 0 : i32
    return %arg0, %arg1 : i32, i32
  }
}

module attributes {stable_mosaic.version = 11 : i64} {
  func.func @_linear_kernel(%arg0: i32, %arg1: i32, %arg2: i32, %arg3: memref<48x256xbf16, #tpu.memory_space<vmem>>, %arg4: memref<256x256xbf16, #tpu.memory_space<vmem>>, %arg5: memref<1x256xf32, #tpu.memory_space<vmem>>, %arg6: memref<1x256xf32, #tpu.memory_space<vmem>>, %arg7: memref<1x256xf32, #tpu.memory_space<vmem>>, %arg8: memref<48x256xbf16, #tpu.memory_space<vmem>>, %arg9: memref<48x256xbf16, #tpu.memory_space<vmem>>) attributes {dimension_semantics = [#tpu.dimension_semantics<parallel>, #tpu.dimension_semantics<arbitrary>, #tpu.dimension_semantics<arbitrary>], iteration_bounds = array<i64: 2, 3, 1>, scalar_prefetch = 0 : i64, scratch_operands = 1 : i64, tpu.core_type = #tpu.core_type<tc>, window_params = [{transform_indices = @transform_0, window_bounds = array<i64: 48, 256>}, {transform_indices = @transform_1, window_bounds = array<i64: 256, 256>}, {transform_indices = @transform_2, window_bounds = array<i64: 1, 256>}, {pipeline_mode = #tpu.pipeline_mode<synchronous>, transform_indices = @transform_3, window_bounds = array<i64: 1, 256>}, {pipeline_mode = #tpu.pipeline_mode<synchronous>, transform_indices = @transform_4, window_bounds = array<i64: 1, 256>}, {transform_indices = @transform_5, window_bounds = array<i64: 48, 256>}]} {
    %c0_i32 = arith.constant 0 : i32
    %0 = arith.cmpi eq, %arg1, %c0_i32 : i32
    %1 = arith.extui %0 : i1 to i32
    %c0_i32_0 = arith.constant 0 : i32
    %2 = arith.cmpi ne, %1, %c0_i32_0 : i32
    scf.if %2 {
      %c0_8 = arith.constant 0 : index
      %c0_9 = arith.constant 0 : index
      %11 = vector.load %arg3[%c0_8, %c0_9] : memref<48x256xbf16, #tpu.memory_space<vmem>>, vector<48x256xbf16>
      %12 = arith.extf %11 : vector<48x256xbf16> to vector<48x256xf32>
      %cst_10 = arith.constant dense<0.000000e+00> : vector<48xf32>
      %13 = vector.multi_reduction <add>, %12, %cst_10 [1] : vector<48x256xf32> to vector<48xf32>
      %14 = vector.shape_cast %13 : vector<48xf32> to vector<48x1xf32>
      %15 = arith.mulf %12, %12 : vector<48x256xf32>
      %cst_11 = arith.constant dense<0.000000e+00> : vector<48xf32>
      %16 = vector.multi_reduction <add>, %15, %cst_11 [1] : vector<48x256xf32> to vector<48xf32>
      %17 = vector.shape_cast %16 : vector<48xf32> to vector<48x1xf32>
      %cst_12 = arith.constant 3.906250e-03 : f32
      %18 = vector.broadcast %cst_12 : f32 to vector<48x1xf32>
      %19 = arith.mulf %14, %18 : vector<48x1xf32>
      %cst_13 = arith.constant 3.906250e-03 : f32
      %20 = vector.broadcast %cst_13 : f32 to vector<48x1xf32>
      %21 = arith.mulf %17, %20 : vector<48x1xf32>
      %22 = arith.mulf %19, %19 : vector<48x1xf32>
      %23 = arith.subf %21, %22 : vector<48x1xf32>
      %24 = vector.broadcast %19 : vector<48x1xf32> to vector<48x256xf32>
      %25 = arith.subf %12, %24 : vector<48x256xf32>
      %cst_14 = arith.constant 9.99999974E-6 : f32
      %26 = vector.broadcast %cst_14 : f32 to vector<48x1xf32>
      %27 = arith.addf %23, %26 : vector<48x1xf32>
      %28 = math.rsqrt %27 : vector<48x1xf32>
      %29 = vector.broadcast %28 : vector<48x1xf32> to vector<48x256xf32>
      %30 = arith.mulf %25, %29 : vector<48x256xf32>
      %c0_15 = arith.constant 0 : index
      %c0_16 = arith.constant 0 : index
      %31 = vector.load %arg6[%c0_15, %c0_16] : memref<1x256xf32, #tpu.memory_space<vmem>>, vector<1x256xf32>
      %32 = vector.broadcast %31 : vector<1x256xf32> to vector<48x256xf32>
      %33 = arith.mulf %30, %32 : vector<48x256xf32>
      %c0_17 = arith.constant 0 : index
      %c0_18 = arith.constant 0 : index
      %34 = vector.load %arg7[%c0_17, %c0_18] : memref<1x256xf32, #tpu.memory_space<vmem>>, vector<1x256xf32>
      %35 = vector.broadcast %34 : vector<1x256xf32> to vector<48x256xf32>
      %36 = arith.addf %33, %35 : vector<48x256xf32>
      %37 = arith.truncf %36 : vector<48x256xf32> to vector<48x256xbf16>
      %c0_19 = arith.constant 0 : index
      %c0_20 = arith.constant 0 : index
      %38 = vector.load %arg9[%c0_19, %c0_20] : memref<48x256xbf16, #tpu.memory_space<vmem>>, vector<48x256xbf16>
      tpu.vector_store %arg9[%c0_19, %c0_20], %37 {strides = array<i32>} : memref<48x256xbf16, #tpu.memory_space<vmem>>, vector<48x256xbf16>,
    } else {
    }
    %c0 = arith.constant 0 : index
    %c0_1 = arith.constant 0 : index
    %3 = vector.load %arg9[%c0, %c0_1] : memref<48x256xbf16, #tpu.memory_space<vmem>>, vector<48x256xbf16>
    %c0_2 = arith.constant 0 : index
    %c0_3 = arith.constant 0 : index
    %4 = vector.load %arg4[%c0_2, %c0_3] : memref<256x256xbf16, #tpu.memory_space<vmem>>, vector<256x256xbf16>
    %cst = arith.constant dense<0.000000e+00> : vector<48x256xf32>
    %5 = tpu.matmul %3, %4, %cst {dimension_numbers = #tpu.dot_dimension_numbers<[1], [0], [0], [1], [0, 0, 1, 1], [], []>} : vector<48x256xbf16>, vector<256x256xbf16>, vector<48x256xf32> -> vector<48x256xf32>
    %c0_4 = arith.constant 0 : index
    %c0_5 = arith.constant 0 : index
    %6 = vector.load %arg5[%c0_4, %c0_5] : memref<1x256xf32, #tpu.memory_space<vmem>>, vector<1x256xf32>
    %7 = vector.broadcast %6 : vector<1x256xf32> to vector<48x256xf32>
    %8 = arith.addf %5, %7 : vector<48x256xf32>
    %9 = arith.truncf %8 : vector<48x256xf32> to vector<48x256xbf16>
    %c0_6 = arith.constant 0 : index
    %c0_7 = arith.constant 0 : index
    %10 = vector.load %arg8[%c0_6, %c0_7] : memref<48x256xbf16, #tpu.memory_space<vmem>>, vector<48x256xbf16>
    tpu.vector_store %arg8[%c0_6, %c0_7], %9 {strides = array<i32>} : memref<48x256xbf16, #tpu.memory_space<vmem>>, vector<48x256xbf16>,
    return
  }
  func.func @transform_0(%arg0: i32, %arg1: i32, %arg2: i32) -> (i32, i32) {
    %c0_i32 = arith.constant 0 : i32
    return %arg0, %arg2 : i32, i32
  }
  func.func @transform_1(%arg0: i32, %arg1: i32, %arg2: i32) -> (i32, i32) {
    %c0_i32 = arith.constant 0 : i32
    return %arg2, %arg1 : i32, i32
  }
  func.func @transform_2(%arg0: i32, %arg1: i32, %arg2: i32) -> (i32, i32) {
    %c0_i32 = arith.constant 0 : i32
    %c0_i32_0 = arith.constant 0 : i32
    return %c0_i32, %arg1 : i32, i32
  }
  func.func @transform_3(%arg0: i32, %arg1: i32, %arg2: i32) -> (i32, i32) {
    %c0_i32 = arith.constant 0 : i32
    %c0_i32_0 = arith.constant 0 : i32
    %c0_i32_1 = arith.constant 0 : i32
    return %c0_i32, %c0_i32_0 : i32, i32
  }
  func.func @transform_4(%arg0: i32, %arg1: i32, %arg2: i32) -> (i32, i32) {
    %c0_i32 = arith.constant 0 : i32
    %c0_i32_0 = arith.constant 0 : i32
    %c0_i32_1 = arith.constant 0 : i32
    return %c0_i32, %c0_i32_0 : i32, i32
  }
  func.func @transform_5(%arg0: i32, %arg1: i32, %arg2: i32) -> (i32, i32) {
    %c0_i32 = arith.constant 0 : i32
    return %arg0, %arg1 : i32, i32
  }
}

module attributes {stable_mosaic.version = 11 : i64} {
  func.func @_attn_single_block_kernel(%arg0: i32, %arg1: i32, %arg2: i32, %arg3: memref<1x48x128xbf16, #tpu.memory_space<vmem>>, %arg4: memref<1x48x128xbf16, #tpu.memory_space<vmem>>, %arg5: memref<1x48x128xbf16, #tpu.memory_space<vmem>>, %arg6: memref<1x48x128xbf16, #tpu.memory_space<vmem>>) attributes {dimension_semantics = [#tpu.dimension_semantics<parallel>, #tpu.dimension_semantics<parallel>, #tpu.dimension_semantics<parallel>], iteration_bounds = array<i64: 2, 2, 1>, scalar_prefetch = 0 : i64, scratch_operands = 0 : i64, tpu.core_type = #tpu.core_type<tc>, window_params = [{transform_indices = @transform_0, window_bounds = array<i64: 1, 48, 128>}, {transform_indices = @transform_1, window_bounds = array<i64: 1, 48, 128>}, {transform_indices = @transform_2, window_bounds = array<i64: 1, 48, 128>}, {transform_indices = @transform_3, window_bounds = array<i64: 1, 48, 128>}]} {
    %c0 = arith.constant 0 : index
    %c0_0 = arith.constant 0 : index
    %c0_1 = arith.constant 0 : index
    %0 = vector.load %arg3[%c0, %c0_0, %c0_1] : memref<1x48x128xbf16, #tpu.memory_space<vmem>>, vector<1x48x128xbf16>
    %1 = vector.shape_cast %0 : vector<1x48x128xbf16> to vector<48x128xbf16>
    %c0_2 = arith.constant 0 : index
    %c0_3 = arith.constant 0 : index
    %c0_4 = arith.constant 0 : index
    %2 = vector.load %arg4[%c0_2, %c0_3, %c0_4] : memref<1x48x128xbf16, #tpu.memory_space<vmem>>, vector<1x48x128xbf16>
    %3 = vector.shape_cast %2 : vector<1x48x128xbf16> to vector<48x128xbf16>
    %cst = arith.constant dense<0.000000e+00> : vector<48x48xf32>
    %4 = tpu.matmul %1, %3, %cst {dimension_numbers = #tpu.dot_dimension_numbers<[1], [1], [0], [0], [0, 0, 1, 0], [], []>} : vector<48x128xbf16>, vector<48x128xbf16>, vector<48x48xf32> -> vector<48x48xf32>
    %cst_5 = arith.constant 0.0883883461 : f32
    %5 = vector.broadcast %cst_5 : f32 to vector<48x48xf32>
    %6 = arith.mulf %4, %5 : vector<48x48xf32>
    %7 = tpu.iota {dimensions = array<i32: 0>} : vector<48x1xi32>
    %8 = tpu.iota {dimensions = array<i32: 1>} : vector<1x48xi32>
    %c32_i32 = arith.constant 32 : i32
    %9 = vector.broadcast %c32_i32 : i32 to vector<1x48xi32>
    %10 = arith.cmpi slt, %8, %9 : vector<1x48xi32>
    %c32_i32_6 = arith.constant 32 : i32
    %11 = vector.broadcast %c32_i32_6 : i32 to vector<48x1xi32>
    %12 = arith.cmpi sge, %7, %11 : vector<48x1xi32>
    %13 = vector.broadcast %10 : vector<1x48xi1> to vector<48x48xi1>
    %14 = vector.broadcast %12 : vector<48x1xi1> to vector<48x48xi1>
    %15 = arith.ori %13, %14 : vector<48x48xi1>
    %c48_i32 = arith.constant 48 : i32
    %16 = vector.broadcast %c48_i32 : i32 to vector<1x48xi32>
    %17 = arith.cmpi slt, %8, %16 : vector<1x48xi32>
    %18 = vector.broadcast %17 : vector<1x48xi1> to vector<48x48xi1>
    %19 = arith.andi %15, %18 : vector<48x48xi1>
    %cst_7 = arith.constant -1.000000e+30 : f32
    %20 = vector.broadcast %cst_7 : f32 to vector<48x48xf32>
    %21 = arith.select %19, %6, %20 : vector<48x48xi1>, vector<48x48xf32>
    %cst_8 = arith.constant dense<0xFF800000> : vector<48xf32>
    %22 = vector.multi_reduction <maximumf>, %21, %cst_8 [1] : vector<48x48xf32> to vector<48xf32>
    %23 = vector.shape_cast %22 : vector<48xf32> to vector<48x1xf32>
    %24 = vector.broadcast %23 : vector<48x1xf32> to vector<48x48xf32>
    %25 = arith.subf %21, %24 : vector<48x48xf32>
    %26 = math.exp %25 : vector<48x48xf32>
    %cst_9 = arith.constant dense<0.000000e+00> : vector<48xf32>
    %27 = vector.multi_reduction <add>, %26, %cst_9 [1] : vector<48x48xf32> to vector<48xf32>
    %28 = vector.shape_cast %27 : vector<48xf32> to vector<48x1xf32>
    %29 = arith.truncf %26 : vector<48x48xf32> to vector<48x48xbf16>
    %c0_10 = arith.constant 0 : index
    %c0_11 = arith.constant 0 : index
    %c0_12 = arith.constant 0 : index
    %30 = vector.load %arg5[%c0_10, %c0_11, %c0_12] : memref<1x48x128xbf16, #tpu.memory_space<vmem>>, vector<1x48x128xbf16>
    %31 = vector.shape_cast %30 : vector<1x48x128xbf16> to vector<48x128xbf16>
    %cst_13 = arith.constant dense<0.000000e+00> : vector<48x128xf32>
    %32 = tpu.matmul %29, %31, %cst_13 {dimension_numbers = #tpu.dot_dimension_numbers<[1], [0], [0], [1], [0, 0, 1, 1], [], []>} : vector<48x48xbf16>, vector<48x128xbf16>, vector<48x128xf32> -> vector<48x128xf32>
    %33 = tpu.reciprocal %28 {approx = true} : vector<48x1xf32> -> vector<48x1xf32>
    %34 = vector.broadcast %33 : vector<48x1xf32> to vector<48x128xf32>
    %35 = arith.mulf %32, %34 : vector<48x128xf32>
    %36 = arith.truncf %35 : vector<48x128xf32> to vector<48x128xbf16>
    %c0_14 = arith.constant 0 : index
    %c0_15 = arith.constant 0 : index
    %c0_16 = arith.constant 0 : index
    %37 = vector.load %arg6[%c0_14, %c0_15, %c0_16] : memref<1x48x128xbf16, #tpu.memory_space<vmem>>, vector<1x48x128xbf16>
    %38 = vector.shape_cast %37 : vector<1x48x128xbf16> to vector<48x128xbf16>
    %39 = vector.shape_cast %36 : vector<48x128xbf16> to vector<1x48x128xbf16>
    tpu.vector_store %arg6[%c0_14, %c0_15, %c0_16], %39 {strides = array<i32>} : memref<1x48x128xbf16, #tpu.memory_space<vmem>>, vector<1x48x128xbf16>,
    return
  }
  func.func @transform_0(%arg0: i32, %arg1: i32, %arg2: i32) -> (i32, i32, i32) {
    %c0_i32 = arith.constant 0 : i32
    return %arg0, %arg2, %arg1 : i32, i32, i32
  }
  func.func @transform_1(%arg0: i32, %arg1: i32, %arg2: i32) -> (i32, i32, i32) {
    %c2_i32 = arith.constant 2 : i32
    %0 = arith.addi %c2_i32, %arg1 : i32
    %c0_i32 = arith.constant 0 : i32
    %c0_i32_0 = arith.constant 0 : i32
    return %arg0, %c0_i32, %0 : i32, i32, i32
  }
  func.func @transform_2(%arg0: i32, %arg1: i32, %arg2: i32) -> (i32, i32, i32) {
    %c4_i32 = arith.constant 4 : i32
    %0 = arith.addi %c4_i32, %arg1 : i32
    %c0_i32 = arith.constant 0 : i32
    %c0_i32_0 = arith.constant 0 : i32
    return %arg0, %c0_i32, %0 : i32, i32, i32
  }
  func.func @transform_3(%arg0: i32, %arg1: i32, %arg2: i32) -> (i32, i32, i32) {
    %c0_i32 = arith.constant 0 : i32
    return %arg0, %arg2, %arg1 : i32, i32, i32
  }
}

module attributes {stable_mosaic.version = 11 : i64} {
  func.func @_linear_kernel(%arg0: i32, %arg1: i32, %arg2: i32, %arg3: memref<48x256xbf16, #tpu.memory_space<vmem>>, %arg4: memref<256x256xbf16, #tpu.memory_space<vmem>>, %arg5: memref<1x256xf32, #tpu.memory_space<vmem>>, %arg6: memref<1x256xf32, #tpu.memory_space<vmem>>, %arg7: memref<1x256xf32, #tpu.memory_space<vmem>>, %arg8: memref<48x256xbf16, #tpu.memory_space<vmem>>, %arg9: memref<48x256xbf16, #tpu.memory_space<vmem>>) attributes {dimension_semantics = [#tpu.dimension_semantics<parallel>, #tpu.dimension_semantics<arbitrary>, #tpu.dimension_semantics<arbitrary>], iteration_bounds = array<i64: 2, 2, 1>, scalar_prefetch = 0 : i64, scratch_operands = 1 : i64, tpu.core_type = #tpu.core_type<tc>, window_params = [{transform_indices = @transform_0, window_bounds = array<i64: 48, 256>}, {transform_indices = @transform_1, window_bounds = array<i64: 256, 256>}, {transform_indices = @transform_2, window_bounds = array<i64: 1, 256>}, {pipeline_mode = #tpu.pipeline_mode<synchronous>, transform_indices = @transform_3, window_bounds = array<i64: 1, 256>}, {pipeline_mode = #tpu.pipeline_mode<synchronous>, transform_indices = @transform_4, window_bounds = array<i64: 1, 256>}, {transform_indices = @transform_5, window_bounds = array<i64: 48, 256>}]} {
    %c0_i32 = arith.constant 0 : i32
    %0 = arith.cmpi eq, %arg1, %c0_i32 : i32
    %1 = arith.extui %0 : i1 to i32
    %c0_i32_0 = arith.constant 0 : i32
    %2 = arith.cmpi ne, %1, %c0_i32_0 : i32
    scf.if %2 {
      %c0_12 = arith.constant 0 : index
      %c0_13 = arith.constant 0 : index
      %24 = vector.load %arg3[%c0_12, %c0_13] : memref<48x256xbf16, #tpu.memory_space<vmem>>, vector<48x256xbf16>
      %25 = arith.extf %24 : vector<48x256xbf16> to vector<48x256xf32>
      %cst_14 = arith.constant dense<0.000000e+00> : vector<48xf32>
      %26 = vector.multi_reduction <add>, %25, %cst_14 [1] : vector<48x256xf32> to vector<48xf32>
      %27 = vector.shape_cast %26 : vector<48xf32> to vector<48x1xf32>
      %28 = arith.mulf %25, %25 : vector<48x256xf32>
      %cst_15 = arith.constant dense<0.000000e+00> : vector<48xf32>
      %29 = vector.multi_reduction <add>, %28, %cst_15 [1] : vector<48x256xf32> to vector<48xf32>
      %30 = vector.shape_cast %29 : vector<48xf32> to vector<48x1xf32>
      %cst_16 = arith.constant 3.906250e-03 : f32
      %31 = vector.broadcast %cst_16 : f32 to vector<48x1xf32>
      %32 = arith.mulf %27, %31 : vector<48x1xf32>
      %cst_17 = arith.constant 3.906250e-03 : f32
      %33 = vector.broadcast %cst_17 : f32 to vector<48x1xf32>
      %34 = arith.mulf %30, %33 : vector<48x1xf32>
      %35 = arith.mulf %32, %32 : vector<48x1xf32>
      %36 = arith.subf %34, %35 : vector<48x1xf32>
      %37 = vector.broadcast %32 : vector<48x1xf32> to vector<48x256xf32>
      %38 = arith.subf %25, %37 : vector<48x256xf32>
      %cst_18 = arith.constant 9.99999974E-6 : f32
      %39 = vector.broadcast %cst_18 : f32 to vector<48x1xf32>
      %40 = arith.addf %36, %39 : vector<48x1xf32>
      %41 = math.rsqrt %40 : vector<48x1xf32>
      %42 = vector.broadcast %41 : vector<48x1xf32> to vector<48x256xf32>
      %43 = arith.mulf %38, %42 : vector<48x256xf32>
      %c0_19 = arith.constant 0 : index
      %c0_20 = arith.constant 0 : index
      %44 = vector.load %arg6[%c0_19, %c0_20] : memref<1x256xf32, #tpu.memory_space<vmem>>, vector<1x256xf32>
      %45 = vector.broadcast %44 : vector<1x256xf32> to vector<48x256xf32>
      %46 = arith.mulf %43, %45 : vector<48x256xf32>
      %c0_21 = arith.constant 0 : index
      %c0_22 = arith.constant 0 : index
      %47 = vector.load %arg7[%c0_21, %c0_22] : memref<1x256xf32, #tpu.memory_space<vmem>>, vector<1x256xf32>
      %48 = vector.broadcast %47 : vector<1x256xf32> to vector<48x256xf32>
      %49 = arith.addf %46, %48 : vector<48x256xf32>
      %50 = arith.truncf %49 : vector<48x256xf32> to vector<48x256xbf16>
      %c0_23 = arith.constant 0 : index
      %c0_24 = arith.constant 0 : index
      %51 = vector.load %arg9[%c0_23, %c0_24] : memref<48x256xbf16, #tpu.memory_space<vmem>>, vector<48x256xbf16>
      tpu.vector_store %arg9[%c0_23, %c0_24], %50 {strides = array<i32>} : memref<48x256xbf16, #tpu.memory_space<vmem>>, vector<48x256xbf16>,
    } else {
    }
    %c0 = arith.constant 0 : index
    %c0_1 = arith.constant 0 : index
    %3 = vector.load %arg9[%c0, %c0_1] : memref<48x256xbf16, #tpu.memory_space<vmem>>, vector<48x256xbf16>
    %c0_2 = arith.constant 0 : index
    %c0_3 = arith.constant 0 : index
    %4 = vector.load %arg4[%c0_2, %c0_3] : memref<256x256xbf16, #tpu.memory_space<vmem>>, vector<256x256xbf16>
    %cst = arith.constant dense<0.000000e+00> : vector<48x256xf32>
    %5 = tpu.matmul %3, %4, %cst {dimension_numbers = #tpu.dot_dimension_numbers<[1], [0], [0], [1], [0, 0, 1, 1], [], []>} : vector<48x256xbf16>, vector<256x256xbf16>, vector<48x256xf32> -> vector<48x256xf32>
    %c0_4 = arith.constant 0 : index
    %c0_5 = arith.constant 0 : index
    %6 = vector.load %arg5[%c0_4, %c0_5] : memref<1x256xf32, #tpu.memory_space<vmem>>, vector<1x256xf32>
    %7 = vector.broadcast %6 : vector<1x256xf32> to vector<48x256xf32>
    %8 = arith.addf %5, %7 : vector<48x256xf32>
    %cst_6 = arith.constant 5.000000e-01 : f32
    %9 = vector.broadcast %cst_6 : f32 to vector<48x256xf32>
    %10 = arith.mulf %9, %8 : vector<48x256xf32>
    %cst_7 = arith.constant 4.471500e-02 : f32
    %11 = vector.broadcast %cst_7 : f32 to vector<48x256xf32>
    %12 = arith.mulf %11, %8 : vector<48x256xf32>
    %13 = arith.mulf %12, %8 : vector<48x256xf32>
    %14 = arith.mulf %13, %8 : vector<48x256xf32>
    %15 = arith.addf %8, %14 : vector<48x256xf32>
    %cst_8 = arith.constant 0.797884583 : f32
    %16 = vector.broadcast %cst_8 : f32 to vector<48x256xf32>
    %17 = arith.mulf %16, %15 : vector<48x256xf32>
    %18 = math.tanh %17 : vector<48x256xf32>
    %cst_9 = arith.constant 1.000000e+00 : f32
    %19 = vector.broadcast %cst_9 : f32 to vector<48x256xf32>
    %20 = arith.addf %19, %18 : vector<48x256xf32>
    %21 = arith.mulf %10, %20 : vector<48x256xf32>
    %22 = arith.truncf %21 : vector<48x256xf32> to vector<48x256xbf16>
    %c0_10 = arith.constant 0 : index
    %c0_11 = arith.constant 0 : index
    %23 = vector.load %arg8[%c0_10, %c0_11] : memref<48x256xbf16, #tpu.memory_space<vmem>>, vector<48x256xbf16>
    tpu.vector_store %arg8[%c0_10, %c0_11], %22 {strides = array<i32>} : memref<48x256xbf16, #tpu.memory_space<vmem>>, vector<48x256xbf16>,
    return
  }
  func.func @transform_0(%arg0: i32, %arg1: i32, %arg2: i32) -> (i32, i32) {
    %c0_i32 = arith.constant 0 : i32
    return %arg0, %arg2 : i32, i32
  }
  func.func @transform_1(%arg0: i32, %arg1: i32, %arg2: i32) -> (i32, i32) {
    %c0_i32 = arith.constant 0 : i32
    return %arg2, %arg1 : i32, i32
  }
  func.func @transform_2(%arg0: i32, %arg1: i32, %arg2: i32) -> (i32, i32) {
    %c0_i32 = arith.constant 0 : i32
    %c0_i32_0 = arith.constant 0 : i32
    return %c0_i32, %arg1 : i32, i32
  }
  func.func @transform_3(%arg0: i32, %arg1: i32, %arg2: i32) -> (i32, i32) {
    %c0_i32 = arith.constant 0 : i32
    %c0_i32_0 = arith.constant 0 : i32
    %c0_i32_1 = arith.constant 0 : i32
    return %c0_i32, %c0_i32_0 : i32, i32
  }
  func.func @transform_4(%arg0: i32, %arg1: i32, %arg2: i32) -> (i32, i32) {
    %c0_i32 = arith.constant 0 : i32
    %c0_i32_0 = arith.constant 0 : i32
    %c0_i32_1 = arith.constant 0 : i32
    return %c0_i32, %c0_i32_0 : i32, i32
  }
  func.func @transform_5(%arg0: i32, %arg1: i32, %arg2: i32) -> (i32, i32) {
    %c0_i32 = arith.constant 0 : i32
    return %arg0, %arg1 : i32, i32
  }
}

module attributes {stable_mosaic.version = 11 : i64} {
  func.func @_linear_kernel(%arg0: i32, %arg1: i32, %arg2: i32, %arg3: memref<48x256xbf16, #tpu.memory_space<vmem>>, %arg4: memref<256x256xbf16, #tpu.memory_space<vmem>>, %arg5: memref<1x256xf32, #tpu.memory_space<vmem>>, %arg6: memref<48x256xbf16, #tpu.memory_space<vmem>>, %arg7: memref<48x256xbf16, #tpu.memory_space<vmem>>) attributes {dimension_semantics = [#tpu.dimension_semantics<parallel>, #tpu.dimension_semantics<parallel>, #tpu.dimension_semantics<arbitrary>], iteration_bounds = array<i64: 2, 1, 1>, scalar_prefetch = 0 : i64, scratch_operands = 0 : i64, tpu.core_type = #tpu.core_type<tc>, window_params = [{transform_indices = @transform_0, window_bounds = array<i64: 48, 256>}, {transform_indices = @transform_1, window_bounds = array<i64: 256, 256>}, {transform_indices = @transform_2, window_bounds = array<i64: 1, 256>}, {transform_indices = @transform_3, window_bounds = array<i64: 48, 256>}, {transform_indices = @transform_4, window_bounds = array<i64: 48, 256>}]} {
    %c0 = arith.constant 0 : index
    %c0_0 = arith.constant 0 : index
    %0 = vector.load %arg3[%c0, %c0_0] : memref<48x256xbf16, #tpu.memory_space<vmem>>, vector<48x256xbf16>
    %c0_1 = arith.constant 0 : index
    %c0_2 = arith.constant 0 : index
    %1 = vector.load %arg4[%c0_1, %c0_2] : memref<256x256xbf16, #tpu.memory_space<vmem>>, vector<256x256xbf16>
    %cst = arith.constant dense<0.000000e+00> : vector<48x256xf32>
    %2 = tpu.matmul %0, %1, %cst {dimension_numbers = #tpu.dot_dimension_numbers<[1], [0], [0], [1], [0, 0, 1, 1], [], []>} : vector<48x256xbf16>, vector<256x256xbf16>, vector<48x256xf32> -> vector<48x256xf32>
    %c0_3 = arith.constant 0 : index
    %c0_4 = arith.constant 0 : index
    %3 = vector.load %arg5[%c0_3, %c0_4] : memref<1x256xf32, #tpu.memory_space<vmem>>, vector<1x256xf32>
    %4 = vector.broadcast %3 : vector<1x256xf32> to vector<48x256xf32>
    %5 = arith.addf %2, %4 : vector<48x256xf32>
    %c0_5 = arith.constant 0 : index
    %c0_6 = arith.constant 0 : index
    %6 = vector.load %arg6[%c0_5, %c0_6] : memref<48x256xbf16, #tpu.memory_space<vmem>>, vector<48x256xbf16>
    %7 = arith.extf %6 : vector<48x256xbf16> to vector<48x256xf32>
    %8 = arith.addf %5, %7 : vector<48x256xf32>
    %9 = arith.truncf %8 : vector<48x256xf32> to vector<48x256xbf16>
    %c0_7 = arith.constant 0 : index
    %c0_8 = arith.constant 0 : index
    %10 = vector.load %arg7[%c0_7, %c0_8] : memref<48x256xbf16, #tpu.memory_space<vmem>>, vector<48x256xbf16>
    tpu.vector_store %arg7[%c0_7, %c0_8], %9 {strides = array<i32>} : memref<48x256xbf16, #tpu.memory_space<vmem>>, vector<48x256xbf16>,
    return
  }
  func.func @transform_0(%arg0: i32, %arg1: i32, %arg2: i32) -> (i32, i32) {
    %c0_i32 = arith.constant 0 : i32
    return %arg0, %arg2 : i32, i32
  }
  func.func @transform_1(%arg0: i32, %arg1: i32, %arg2: i32) -> (i32, i32) {
    %c0_i32 = arith.constant 0 : i32
    return %arg2, %arg1 : i32, i32
  }
  func.func @transform_2(%arg0: i32, %arg1: i32, %arg2: i32) -> (i32, i32) {
    %c0_i32 = arith.constant 0 : i32
    %c0_i32_0 = arith.constant 0 : i32
    return %c0_i32, %arg1 : i32, i32
  }
  func.func @transform_3(%arg0: i32, %arg1: i32, %arg2: i32) -> (i32, i32) {
    %c0_i32 = arith.constant 0 : i32
    return %arg0, %arg1 : i32, i32
  }
  func.func @transform_4(%arg0: i32, %arg1: i32, %arg2: i32) -> (i32, i32) {
    %c0_i32 = arith.constant 0 : i32
    return %arg0, %arg1 : i32, i32
  }
}

module attributes {stable_mosaic.version = 11 : i64} {
  func.func @_linear_kernel(%arg0: i32, %arg1: i32, %arg2: i32, %arg3: memref<48x512xbf16, #tpu.memory_space<vmem>>, %arg4: memref<512x256xbf16, #tpu.memory_space<vmem>>, %arg5: memref<1x256xf32, #tpu.memory_space<vmem>>, %arg6: memref<48x256xbf16, #tpu.memory_space<vmem>>, %arg7: memref<48x256xbf16, #tpu.memory_space<vmem>>) attributes {dimension_semantics = [#tpu.dimension_semantics<parallel>, #tpu.dimension_semantics<parallel>, #tpu.dimension_semantics<arbitrary>], iteration_bounds = array<i64: 2, 1, 1>, scalar_prefetch = 0 : i64, scratch_operands = 0 : i64, tpu.core_type = #tpu.core_type<tc>, window_params = [{transform_indices = @transform_0, window_bounds = array<i64: 48, 512>}, {transform_indices = @transform_1, window_bounds = array<i64: 512, 256>}, {transform_indices = @transform_2, window_bounds = array<i64: 1, 256>}, {transform_indices = @transform_3, window_bounds = array<i64: 48, 256>}, {transform_indices = @transform_4, window_bounds = array<i64: 48, 256>}]} {
    %c0 = arith.constant 0 : index
    %c0_0 = arith.constant 0 : index
    %0 = vector.load %arg3[%c0, %c0_0] : memref<48x512xbf16, #tpu.memory_space<vmem>>, vector<48x512xbf16>
    %c0_1 = arith.constant 0 : index
    %c0_2 = arith.constant 0 : index
    %1 = vector.load %arg4[%c0_1, %c0_2] : memref<512x256xbf16, #tpu.memory_space<vmem>>, vector<512x256xbf16>
    %cst = arith.constant dense<0.000000e+00> : vector<48x256xf32>
    %2 = tpu.matmul %0, %1, %cst {dimension_numbers = #tpu.dot_dimension_numbers<[1], [0], [0], [1], [0, 0, 1, 1], [], []>} : vector<48x512xbf16>, vector<512x256xbf16>, vector<48x256xf32> -> vector<48x256xf32>
    %c0_3 = arith.constant 0 : index
    %c0_4 = arith.constant 0 : index
    %3 = vector.load %arg5[%c0_3, %c0_4] : memref<1x256xf32, #tpu.memory_space<vmem>>, vector<1x256xf32>
    %4 = vector.broadcast %3 : vector<1x256xf32> to vector<48x256xf32>
    %5 = arith.addf %2, %4 : vector<48x256xf32>
    %c0_5 = arith.constant 0 : index
    %c0_6 = arith.constant 0 : index
    %6 = vector.load %arg6[%c0_5, %c0_6] : memref<48x256xbf16, #tpu.memory_space<vmem>>, vector<48x256xbf16>
    %7 = arith.extf %6 : vector<48x256xbf16> to vector<48x256xf32>
    %8 = arith.addf %5, %7 : vector<48x256xf32>
    %9 = arith.truncf %8 : vector<48x256xf32> to vector<48x256xbf16>
    %c0_7 = arith.constant 0 : index
    %c0_8 = arith.constant 0 : index
    %10 = vector.load %arg7[%c0_7, %c0_8] : memref<48x256xbf16, #tpu.memory_space<vmem>>, vector<48x256xbf16>
    tpu.vector_store %arg7[%c0_7, %c0_8], %9 {strides = array<i32>} : memref<48x256xbf16, #tpu.memory_space<vmem>>, vector<48x256xbf16>,
    return
  }
  func.func @transform_0(%arg0: i32, %arg1: i32, %arg2: i32) -> (i32, i32) {
    %c0_i32 = arith.constant 0 : i32
    return %arg0, %arg2 : i32, i32
  }
  func.func @transform_1(%arg0: i32, %arg1: i32, %arg2: i32) -> (i32, i32) {
    %c0_i32 = arith.constant 0 : i32
    return %arg2, %arg1 : i32, i32
  }
  func.func @transform_2(%arg0: i32, %arg1: i32, %arg2: i32) -> (i32, i32) {
    %c0_i32 = arith.constant 0 : i32
    %c0_i32_0 = arith.constant 0 : i32
    return %c0_i32, %arg1 : i32, i32
  }
  func.func @transform_3(%arg0: i32, %arg1: i32, %arg2: i32) -> (i32, i32) {
    %c0_i32 = arith.constant 0 : i32
    return %arg0, %arg1 : i32, i32
  }
  func.func @transform_4(%arg0: i32, %arg1: i32, %arg2: i32) -> (i32, i32) {
    %c0_i32 = arith.constant 0 : i32
    return %arg0, %arg1 : i32, i32
  }
}

module attributes {stable_mosaic.version = 11 : i64} {
  func.func @_linear_kernel(%arg0: i32, %arg1: i32, %arg2: i32, %arg3: memref<16x256xbf16, #tpu.memory_space<vmem>>, %arg4: memref<256x128xbf16, #tpu.memory_space<vmem>>, %arg5: memref<1x128xf32, #tpu.memory_space<vmem>>, %arg6: memref<1x256xf32, #tpu.memory_space<vmem>>, %arg7: memref<1x256xf32, #tpu.memory_space<vmem>>, %arg8: memref<16x128xf32, #tpu.memory_space<vmem>>) attributes {dimension_semantics = [#tpu.dimension_semantics<parallel>, #tpu.dimension_semantics<parallel>, #tpu.dimension_semantics<arbitrary>], iteration_bounds = array<i64: 2, 1, 1>, scalar_prefetch = 0 : i64, scratch_operands = 0 : i64, tpu.core_type = #tpu.core_type<tc>, window_params = [{transform_indices = @transform_0, window_bounds = array<i64: 16, 256>}, {transform_indices = @transform_1, window_bounds = array<i64: 256, 128>}, {transform_indices = @transform_2, window_bounds = array<i64: 1, 128>}, {pipeline_mode = #tpu.pipeline_mode<synchronous>, transform_indices = @transform_3, window_bounds = array<i64: 1, 256>}, {pipeline_mode = #tpu.pipeline_mode<synchronous>, transform_indices = @transform_4, window_bounds = array<i64: 1, 256>}, {transform_indices = @transform_5, window_bounds = array<i64: 16, 128>}]} {
    %c0 = arith.constant 0 : index
    %c0_0 = arith.constant 0 : index
    %0 = vector.load %arg3[%c0, %c0_0] : memref<16x256xbf16, #tpu.memory_space<vmem>>, vector<16x256xbf16>
    %1 = arith.extf %0 : vector<16x256xbf16> to vector<16x256xf32>
    %cst = arith.constant dense<0.000000e+00> : vector<16xf32>
    %2 = vector.multi_reduction <add>, %1, %cst [1] : vector<16x256xf32> to vector<16xf32>
    %3 = vector.shape_cast %2 : vector<16xf32> to vector<16x1xf32>
    %4 = arith.mulf %1, %1 : vector<16x256xf32>
    %cst_1 = arith.constant dense<0.000000e+00> : vector<16xf32>
    %5 = vector.multi_reduction <add>, %4, %cst_1 [1] : vector<16x256xf32> to vector<16xf32>
    %6 = vector.shape_cast %5 : vector<16xf32> to vector<16x1xf32>
    %cst_2 = arith.constant 3.906250e-03 : f32
    %7 = vector.broadcast %cst_2 : f32 to vector<16x1xf32>
    %8 = arith.mulf %3, %7 : vector<16x1xf32>
    %cst_3 = arith.constant 3.906250e-03 : f32
    %9 = vector.broadcast %cst_3 : f32 to vector<16x1xf32>
    %10 = arith.mulf %6, %9 : vector<16x1xf32>
    %11 = arith.mulf %8, %8 : vector<16x1xf32>
    %12 = arith.subf %10, %11 : vector<16x1xf32>
    %13 = vector.broadcast %8 : vector<16x1xf32> to vector<16x256xf32>
    %14 = arith.subf %1, %13 : vector<16x256xf32>
    %cst_4 = arith.constant 9.99999974E-6 : f32
    %15 = vector.broadcast %cst_4 : f32 to vector<16x1xf32>
    %16 = arith.addf %12, %15 : vector<16x1xf32>
    %17 = math.rsqrt %16 : vector<16x1xf32>
    %18 = vector.broadcast %17 : vector<16x1xf32> to vector<16x256xf32>
    %19 = arith.mulf %14, %18 : vector<16x256xf32>
    %c0_5 = arith.constant 0 : index
    %c0_6 = arith.constant 0 : index
    %20 = vector.load %arg6[%c0_5, %c0_6] : memref<1x256xf32, #tpu.memory_space<vmem>>, vector<1x256xf32>
    %21 = vector.broadcast %20 : vector<1x256xf32> to vector<16x256xf32>
    %22 = arith.mulf %19, %21 : vector<16x256xf32>
    %c0_7 = arith.constant 0 : index
    %c0_8 = arith.constant 0 : index
    %23 = vector.load %arg7[%c0_7, %c0_8] : memref<1x256xf32, #tpu.memory_space<vmem>>, vector<1x256xf32>
    %24 = vector.broadcast %23 : vector<1x256xf32> to vector<16x256xf32>
    %25 = arith.addf %22, %24 : vector<16x256xf32>
    %26 = arith.truncf %25 : vector<16x256xf32> to vector<16x256xbf16>
    %c0_9 = arith.constant 0 : index
    %c0_10 = arith.constant 0 : index
    %27 = vector.load %arg4[%c0_9, %c0_10] : memref<256x128xbf16, #tpu.memory_space<vmem>>, vector<256x128xbf16>
    %cst_11 = arith.constant dense<0.000000e+00> : vector<16x128xf32>
    %28 = tpu.matmul %26, %27, %cst_11 {dimension_numbers = #tpu.dot_dimension_numbers<[1], [0], [0], [1], [0, 0, 1, 1], [], []>} : vector<16x256xbf16>, vector<256x128xbf16>, vector<16x128xf32> -> vector<16x128xf32>
    %c0_12 = arith.constant 0 : index
    %c0_13 = arith.constant 0 : index
    %29 = vector.load %arg5[%c0_12, %c0_13] : memref<1x128xf32, #tpu.memory_space<vmem>>, vector<1x128xf32>
    %30 = vector.broadcast %29 : vector<1x128xf32> to vector<16x128xf32>
    %31 = arith.addf %28, %30 : vector<16x128xf32>
    %32 = arith.negf %31 : vector<16x128xf32>
    %33 = math.exp %32 : vector<16x128xf32>
    %cst_14 = arith.constant 1.000000e+00 : f32
    %34 = vector.broadcast %cst_14 : f32 to vector<16x128xf32>
    %35 = arith.addf %34, %33 : vector<16x128xf32>
    %36 = arith.divf %34, %35 : vector<16x128xf32>
    %c0_15 = arith.constant 0 : index
    %c0_16 = arith.constant 0 : index
    %37 = vector.load %arg8[%c0_15, %c0_16] : memref<16x128xf32, #tpu.memory_space<vmem>>, vector<16x128xf32>
    tpu.vector_store %arg8[%c0_15, %c0_16], %36 {strides = array<i32>} : memref<16x128xf32, #tpu.memory_space<vmem>>, vector<16x128xf32>,
    return
  }
  func.func @transform_0(%arg0: i32, %arg1: i32, %arg2: i32) -> (i32, i32) {
    %c0_i32 = arith.constant 0 : i32
    return %arg0, %arg2 : i32, i32
  }
  func.func @transform_1(%arg0: i32, %arg1: i32, %arg2: i32) -> (i32, i32) {
    %c0_i32 = arith.constant 0 : i32
    return %arg2, %arg1 : i32, i32
  }
  func.func @transform_2(%arg0: i32, %arg1: i32, %arg2: i32) -> (i32, i32) {
    %c0_i32 = arith.constant 0 : i32
    %c0_i32_0 = arith.constant 0 : i32
    return %c0_i32, %arg1 : i32, i32
  }
  func.func @transform_3(%arg0: i32, %arg1: i32, %arg2: i32) -> (i32, i32) {
    %c0_i32 = arith.constant 0 : i32
    %c0_i32_0 = arith.constant 0 : i32
    %c0_i32_1 = arith.constant 0 : i32
    return %c0_i32, %c0_i32_0 : i32, i32
  }
  func.func @transform_4(%arg0: i32, %arg1: i32, %arg2: i32) -> (i32, i32) {
    %c0_i32 = arith.constant 0 : i32
    %c0_i32_0 = arith.constant 0 : i32
    %c0_i32_1 = arith.constant 0 : i32
    return %c0_i32, %c0_i32_0 : i32, i32
  }
  func.func @transform_5(%arg0: i32, %arg1: i32, %arg2: i32) -> (i32, i32) {
    %c0_i32 = arith.constant 0 : i32
    return %arg0, %arg1 : i32, i32
  }
}

</mosaic_0001>

<bundles_post_ra>
// kernel: lvsm_forward.13
= control target key start
LH: loop header
LB: loop body
LE: loop exit
PB: predicated region body
PF: predicated region fallthrough
CT: control target
= control target key end

     0   :  { %s1058_s18 = smov 0   ;;  %s1060_s19 = smov 0   ;;  %s1225_s0 = inlined_call_operand.vmem [shape: bf16[64,144], index: 0, kind: input, shape index: {}]   ;;  %s1226_s1 = inlined_call_operand.vmem [shape: bf16[144,256], index: 1, kind: input, shape index: {}]   ;;  %s1227_s2 = inlined_call_operand.vmem [shape: f32[1,256], index: 2, kind: input, shape index: {}]   ;;  %s1228_s3 = inlined_call_operand.vmem [shape: f32[1,256], index: 3, kind: input, shape index: {}]   ;;  %s1229_s4 = inlined_call_operand.vmem [shape: f32[1,256], index: 4, kind: input, shape index: {}]   ;;  %s1230_s5 = inlined_call_operand.vmem [shape: bf16[64,256], index: 5, kind: output, shape index: {}]  }
   0x1   :  { %s1062_s20 = smov 0  }
   0x2 LB: > { %s34_s21 = sadd.s32 1, %s1022_s19  ;;  %p878_p0 = scmp.ge.s32.totalorder %s1026_s20, 1  ;;  %s1026_s20 = sphi %s1062_s20, %s15_s20   ;;  %s1022_s19 = sphi %s1060_s19, %s1232_s19   ;;  %s1018_s18 = sphi %s1058_s18, %s1231_s18  }
   0x3   : > { %p36_p1 = scmp.ge.s32.totalorder %s34_s21, 2  ;;  %p266_p2 = scmp.lt.s32.totalorder %s1026_s20, 3 }
   0x5   : > { %s1234_s21 = smov (%p36_p1, %s34_s21), 0  ;;  %p267_p3 = pnand %p878_p0, %p266_p2 }
   0x6   : > { %v963_v0 = vld [vmem:[%s1226_s1 + $0x4] ss:$8 sps:$4 sm:$0xff] (!%p267_p3)   ;;  %s879_s24 = sshll.u32 (!%p267_p3), %s1018_s18, 2  ;;  %v965_v1 = vld [vmem:[%s1226_s1] ss:$8 sps:$4 sm:$0xff] (!%p267_p3)   ;;  %vm520_vm0 = vcmask (!%p267_p3), 130048   ;;  %v402_v22 = vlaneseq (!%p267_p3) }
   0x7   : > { %270 = sbr.rel (%p267_p3) target bundleno = 441 (0x1b9), region = 40  ;;  %p328_p4 = scmp.lt.s32.totalorder (!%p267_p3), %s879_s24, 7  ;;  %527 = vmatprep.subr.bf16.mxu0 (!%p267_p3), %v963_v0  ;;  %921 = vmatprep.subr.bf16.mxu1 (!%p267_p3), %v963_v0  ;;  %v966_v2 = vld [vmem:[%s1226_s1 + $0x14] ss:$8 sps:$4 sm:$0xff] (!%p267_p3)   ;;  %v968_v3 = vld [vmem:[%s1226_s1 + $0x10] ss:$8 sps:$4 sm:$0xff] (!%p267_p3)  }
   0x8   : > { %528 = vmatpush1.bf16.msra.mxu0 (!%p267_p3), %v965_v1  ;;  %930 = vmatpush1.bf16.msra.mxu1 (!%p267_p3), %v965_v1  ;;  %v969_v4 = vld [vmem:[%s1226_s1 + $0x24] ss:$8 sps:$4 sm:$0xff] (!%p267_p3)   ;;  %v971_v5 = vld [vmem:[%s1226_s1 + $0x20] ss:$8 sps:$4 sm:$0xff] (!%p267_p3)   ;;  %v972_v6 = vld [vmem:[%s1226_s1 + $0x34] ss:$8 sps:$4 sm:$0xff] (!%p267_p3)  }
   0x9   : > { %529 = vmatprep.subr.bf16.mxu0 (!%p267_p3), %v966_v2  ;;  %922 = vmatprep.subr.bf16.mxu1 (!%p267_p3), %v966_v2  ;;  %v974_v7 = vld [vmem:[%s1226_s1 + $0x30] ss:$8 sps:$4 sm:$0xff] (!%p267_p3)   ;;  %v975_v8 = vld [vmem:[%s1226_s1 + $0x44] ss:$8 sps:$4 sm:$0xff] (!%p267_p3)   ;;  %v977_v11 = vld [vmem:[%s1226_s1 + $0x40] ss:$8 sps:$4 sm:$0xff] (!%p267_p3)  }
   0xa   : > { %v978_v12 = vld [vmem:[%s1226_s1 + $0x54] ss:$8 sps:$4 sm:$0xff] (!%p267_p3)   ;;  %v980_v13 = vld [vmem:[%s1226_s1 + $0x50] ss:$8 sps:$4 sm:$0xff] (!%p267_p3)   ;;  %v981_v14 = vld [vmem:[%s1226_s1 + $0x64] ss:$8 sps:$4 sm:$0xff] (!%p267_p3)  }
   0xb   : > { %v983_v15 = vld [vmem:[%s1226_s1 + $0x60] ss:$8 sps:$4 sm:$0xff] (!%p267_p3)   ;;  %v984_v16 = vld [vmem:[%s1226_s1 + $0x74] ss:$8 sps:$4 sm:$0xff] (!%p267_p3)   ;;  %v986_v17 = vld [vmem:[%s1226_s1 + $0x70] ss:$8 sps:$4 sm:$0xff] (!%p267_p3)  }
   0xc   : > { %530 = vmatpush1.bf16.msra.mxu0 (!%p267_p3), %v968_v3  ;;  %931 = vmatpush1.bf16.msra.mxu1 (!%p267_p3), %v968_v3  ;;  %v987_v18 = vld [vmem:[%s1226_s1 + $0x84] ss:$8 sps:$4 sm:$0xff] (!%p267_p3)   ;;  %v989_v19 = vld [vmem:[%s1226_s1 + $0x80] ss:$8 sps:$4 sm:$0xff] (!%p267_p3)   ;;  %v403_v23 = vshrl.u32 (!%p267_p3), %v402_v22, 7 }
   0xd   : > { %531 = vmatprep.subr.bf16.mxu0 (!%p267_p3), %v969_v4  ;;  %923 = vmatprep.subr.bf16.mxu1 (!%p267_p3), %v969_v4  ;;  %v400_v25 = vld [vmem:[%s1227_s2] sm:$0x3] (!%p267_p3) }
   0xe   : > { %s1236_s24 = smov (!%p328_p4, %s879_s24), 7  ;;  %v1144_v24 = vsub.s32 0, %v403_v23  ;;  %v1149_v26 = vsub.s32 1, %v403_v23  ;;  %v652_v23 = vld [vmem:[%s1228_s3] sm:$0x3] }
   0xf   : > { %s915_s10 = sshll.u32 %s1236_s24, 3 }
  0x10   : > { %s1105_s15 = scalar_lea.vmem %s1225_s0, %s915_s10  ;;  %532 = vmatpush1.bf16.msra.mxu0 %v971_v5  ;;  %932 = vmatpush1.bf16.msra.mxu1 %v971_v5  ;;  %v405_v27 = vrot.slane %v400_v25, %v1144_v24  ;;  %v409_v28 = vrot.slane %v400_v25, %v1149_v26  ;;  %s374_s30 = scalar_lea.vmem %s1230_s5, %s915_s10 }
  0x11   : > { %533 = vmatprep.subr.bf16.mxu0 %v972_v6  ;;  %924 = vmatprep.subr.bf16.mxu1 %v972_v6  ;;  %v992_v9 = vld [vmem:[%s1105_s15 + $0x4] ss:$8 sps:$4 sm:$0xff]   ;;  %v995_v10 = vld [vmem:[%s1105_s15 + $0x14] ss:$8 sps:$4 sm:$0xff]   ;;  %v990_v20 = vld [vmem:[%s1105_s15] ss:$8 sps:$4 sm:$0xff]  }
  0x12   : > { %907 = vmatprep.mubr.msk.bf16.mxu0 %vm520_vm0, %v992_v9  ;;  %908 = vmatprep.mubr.msk.bf16.mxu1 %vm520_vm0, %v995_v10  ;;  %v993_v21 = vld [vmem:[%s1105_s15 + $0x10] ss:$8 sps:$4 sm:$0xff]  }
  0x14   : > { %534 = vmatpush1.bf16.msra.mxu0 %v974_v7  ;;  %933 = vmatpush1.bf16.msra.mxu1 %v974_v7 }
  0x15   : > { %535 = vmatprep.subr.bf16.mxu0 %v975_v8  ;;  %925 = vmatprep.subr.bf16.mxu1 %v975_v8 }
  0x18   : > { %536 = vmatpush1.bf16.msra.mxu0 %v977_v11  ;;  %934 = vmatpush1.bf16.msra.mxu1 %v977_v11 }
  0x19   : > { %537 = vmatprep.subr.bf16.mxu0 %v978_v12  ;;  %926 = vmatprep.subr.bf16.mxu1 %v978_v12 }
  0x1c   : > { %538 = vmatpush1.bf16.msra.mxu0 %v980_v13  ;;  %935 = vmatpush1.bf16.msra.mxu1 %v980_v13 }
  0x1d   : > { %539 = vmatprep.subr.bf16.mxu0 %v981_v14  ;;  %927 = vmatprep.subr.bf16.mxu1 %v981_v14 }
  0x20   : > { %540 = vmatpush1.bf16.msra.mxu0 %v983_v15  ;;  %936 = vmatpush1.bf16.msra.mxu1 %v983_v15 }
  0x21   : > { %541 = vmatprep.subr.bf16.mxu0 %v984_v16  ;;  %928 = vmatprep.subr.bf16.mxu1 %v984_v16 }
  0x24   : > { %542 = vmatpush1.bf16.msra.mxu0 %v986_v17  ;;  %937 = vmatpush1.bf16.msra.mxu1 %v986_v17 }
  0x25   : > { %543 = vmatprep.subr.bf16.mxu0 %v987_v18  ;;  %929 = vmatprep.subr.bf16.mxu1 %v987_v18 }
  0x28   : > { %544 = vmatpush1.bf16.msra.mxu0 %v989_v19  ;;  %938 = vmatpush1.bf16.msra.mxu1 %v989_v19 }
  0x2b   : > { %560 = vmatmul.mubr.bf16.vlgmr.msra.gmra.mrb[0].mxu0 %v990_v20  ;;  %570 = vmatmul.mubr.bf16.vlgmr.msra.gmra.mrb[0].mxu1 %v993_v21 }
  0xfe   : > { %v561_v29 = vpop.f32.mrb[0].mxu0  ;;  %v571_v30 = vpop.f32.mrb[0].mxu1 }
  0xff   : > { %v1153_v31 = vadd.f32 %v561_v29, %v405_v27  ;;  %v1155_v32 = vadd.f32 %v571_v30, %v405_v27  ;;  %v563_v33 = vpop.f32.mrb[1].mxu0  ;;  %v573_v34 = vpop.f32.mrb[1].mxu1  ;;  %v672_v29 = vld [vmem:[%s1229_s4] sm:$0x3]  ;;  %v661_v30 = vrot.slane %v652_v23, %v1149_v26 }
 0x100   : > { %v1157_v35 = vadd.f32 %v563_v33, %v409_v28  ;;  %v1159_v36 = vadd.f32 %v573_v34, %v409_v28  ;;  %v565_v37 = vpop.f32.mrb[2].mxu0  ;;  %v575_v38 = vpop.f32.mrb[2].mxu1 }
 0x101   : > { %v1161_v39 = vadd.f32 %v565_v37, %v405_v27  ;;  %v567_v40 = vpop.f32.mrb[3].mxu0  ;;  %v577_v41 = vpop.f32.mrb[3].mxu1  ;;  %v592_v45 = vmul.f32 %v1153_v31, %v1153_v31  ;;  %v1173_v47 = vadd.f32 %v575_v38, %v405_v27  ;;  %v596_v54 = vmul.f32 %v1155_v32, %v1155_v32 }
 0x102   : > { %v1163_v42 = vadd.f32 %v567_v40, %v409_v28  ;;  %v586_v43 = vadd.f32 %v1159_v36, %v1155_v32  ;;  %v580_v44 = vadd.f32 %v1157_v35, %v1153_v31  ;;  %v593_v46 = vmul.f32 %v1157_v35, %v1157_v35 }
 0x103   : > { %v1175_v48 = vadd.f32 %v577_v41, %v409_v28  ;;  %v594_v51 = vmul.f32 %v1161_v39, %v1161_v39  ;;  %v598_v53 = vmul.f32 %v1173_v47, %v1173_v47  ;;  %v597_v58 = vmul.f32 %v1159_v36, %v1159_v36 }
 0x104   : > { %587 = vadd.xlane.f32.xlu1 %v586_v43  ;;  %581 = vadd.xlane.f32.xlu0 %v580_v44  ;;  %v600_v49 = vadd.f32 %v593_v46, %v592_v45  ;;  %v583_v50 = vadd.f32 %v1163_v42, %v1161_v39  ;;  %v595_v52 = vmul.f32 %v1163_v42, %v1163_v42 }
 0x105   : > { %v589_v56 = vadd.f32 %v1175_v48, %v1173_v47  ;;  %v599_v57 = vmul.f32 %v1175_v48, %v1175_v48  ;;  %v606_v60 = vadd.f32 %v597_v58, %v596_v54  ;;  %v657_v28 = vrot.slane %v652_v23, %v1144_v24 }
 0x106   : > { %v603_v55 = vadd.f32 %v595_v52, %v594_v51  ;;  %v677_v38 = vrot.slane %v672_v29, %v1144_v24  ;;  %v681_v40 = vrot.slane %v672_v29, %v1149_v26 }
 0x107   : > { %v609_v59 = vadd.f32 %v599_v57, %v598_v53 }
 0x108   : > { %601 = vadd.xlane.f32.xlu1 %v600_v49  ;;  %584 = vadd.xlane.f32.xlu0 %v583_v50 }
 0x10c   : > { %604 = vadd.xlane.f32.xlu1 %v603_v55  ;;  %590 = vadd.xlane.f32.xlu0 %v589_v56 }
 0x110   : > { %610 = vadd.xlane.f32.xlu1 %v609_v59  ;;  %607 = vadd.xlane.f32.xlu0 %v606_v60 }
 0x191   : > { %v588_v61 = vpop.xlane.xlu1 %587  ;;  %v582_v62 = vpop.xlane.xlu0 %581 }
 0x192   : > { %v612_v63 = vmul.f32 0.00390625, %v582_v62  ;;  %v614_v6 = vmul.f32 0.00390625, %v588_v61 }
 0x194   : > { %v620_v3 = vmul.f32 %v612_v63, %v612_v63  ;;  %v622_v15 = vmul.f32 %v614_v6, %v614_v6  ;;  %v628_v33 = vsub.f32 %v1153_v31, %v612_v63  ;;  %v629_v34 = vsub.f32 %v1157_v35, %v612_v63 }
 0x195   : > { %v602_v0 = vpop.xlane.xlu1 %601  ;;  %v585_v1 = vpop.xlane.xlu0 %584  ;;  %v633_v56 = vsub.f32 %v1159_v36, %v614_v6 }
 0x196   : > { %v616_v2 = vmul.f32 0.00390625, %v602_v0  ;;  %v613_v4 = vmul.f32 0.00390625, %v585_v1 }
 0x198   : > { %v624_v5 = vsub.f32 %v616_v2, %v620_v3  ;;  %v621_v11 = vmul.f32 %v613_v4, %v613_v4  ;;  %v630_v46 = vsub.f32 %v1161_v39, %v613_v4  ;;  %v631_v49 = vsub.f32 %v1163_v42, %v613_v4 }
 0x199   : > { %v605_v7 = vpop.xlane.xlu1 %604  ;;  %v591_v8 = vpop.xlane.xlu0 %590  ;;  %v632_v42 = vsub.f32 %v1155_v32, %v614_v6 }
 0x19a   : > { %v636_v9 = vadd.f32 1e-05, %v624_v5  ;;  %v617_v10 = vmul.f32 0.00390625, %v605_v7  ;;  %v615_v12 = vmul.f32 0.00390625, %v591_v8 }
 0x19c   : > { %996 = vrsqrt.f32 %v636_v9  ;;  %v625_v13 = vsub.f32 %v617_v10, %v621_v11  ;;  %v623_v19 = vmul.f32 %v615_v12, %v615_v12  ;;  %v634_v24 = vsub.f32 %v1173_v47, %v615_v12 }
 0x19d   : > { %v611_v14 = vpop.xlane.xlu1 %610  ;;  %v608_v16 = vpop.xlane.xlu0 %607  ;;  %v635_v55 = vsub.f32 %v1175_v48, %v615_v12 }
 0x19e   : > { %v637_v17 = vadd.f32 1e-05, %v625_v13  ;;  %v619_v18 = vmul.f32 0.00390625, %v611_v14  ;;  %v618_v20 = vmul.f32 0.00390625, %v608_v16 }
 0x1a0   : > { %998 = vrsqrt.f32 %v637_v17  ;;  %v627_v21 = vsub.f32 %v619_v18, %v623_v19  ;;  %v626_v22 = vsub.f32 %v618_v20, %v622_v15 }
 0x1a2   : > { %v639_v25 = vadd.f32 1e-05, %v627_v21  ;;  %v638_v27 = vadd.f32 1e-05, %v626_v22 }
 0x1a4   : > { %1000 = vrsqrt.f32 %v639_v25 }
 0x1a5   : > { %1002 = vrsqrt.f32 %v638_v27 }
 0x1a6   : > { %v997_v37 = vpop.eup %996 }
 0x1a7   : > { %v644_v41 = vmul.f32 %v997_v37, %v628_v33  ;;  %v645_v43 = vmul.f32 %v997_v37, %v629_v34 }
 0x1a9   : > { %v664_v44 = vmul.f32 %v657_v28, %v644_v41  ;;  %v665_v45 = vmul.f32 %v661_v30, %v645_v43 }
 0x1aa   : > { %v999_v50 = vpop.eup %998 }
 0x1ab   : > { %v684_v51 = vadd.f32 %v677_v38, %v664_v44  ;;  %v685_v31 = vadd.f32 %v681_v40, %v665_v45  ;;  %v646_v52 = vmul.f32 %v999_v50, %v630_v46  ;;  %v647_v35 = vmul.f32 %v999_v50, %v631_v49 }
 0x1ad   : > { %v917_v26 = vpack.c.bf16 %v685_v31, %v684_v51  ;;  %v666_v53 = vmul.f32 %v657_v28, %v646_v52  ;;  %v667_v54 = vmul.f32 %v661_v30, %v647_v35 }
 0x1ae   : > { %v1001_v39 = vpop.eup %1000 }
 0x1af   : > { %v1003_v57 = vpop.eup %1002  ;;  %716 = vst [vmem:[%s374_s30] sm:$0xff] %v917_v26  ;;  %v686_v58 = vadd.f32 %v677_v38, %v666_v53  ;;  %v687_v59 = vadd.f32 %v681_v40, %v667_v54  ;;  %v650_v60 = vmul.f32 %v1001_v39, %v634_v24  ;;  %v651_v61 = vmul.f32 %v1001_v39, %v635_v55 }
 0x1b0   : > { %v648_v62 = vmul.f32 %v1003_v57, %v632_v42  ;;  %v649_v63 = vmul.f32 %v1003_v57, %v633_v56 }
 0x1b1   : > { %v918_v0 = vpack.c.bf16 %v687_v59, %v686_v58  ;;  %v670_v47 = vmul.f32 %v657_v28, %v650_v60  ;;  %v671_v1 = vmul.f32 %v661_v30, %v651_v61 }
 0x1b2   : > { %v668_v2 = vmul.f32 %v657_v28, %v648_v62  ;;  %v669_v3 = vmul.f32 %v661_v30, %v649_v63 }
 0x1b3   : > { %717 = vst [vmem:[%s374_s30 + $0x8] sm:$0xff] %v918_v0  ;;  %v690_v48 = vadd.f32 %v677_v38, %v670_v47  ;;  %v691_v4 = vadd.f32 %v681_v40, %v671_v1 }
 0x1b4   : > { %v688_v5 = vadd.f32 %v677_v38, %v668_v2  ;;  %v689_v32 = vadd.f32 %v681_v40, %v669_v3 }
 0x1b5   : > { %v920_v7 = vpack.c.bf16 %v691_v4, %v690_v48 }
 0x1b6   : > { %v919_v36 = vpack.c.bf16 %v689_v32, %v688_v5 }
 0x1b7   : > { %719 = vst [vmem:[%s374_s30 + $0x18] sm:$0xff] %v920_v7 }
 0x1b8   : > { %718 = vst [vmem:[%s374_s30 + $0x10] sm:$0xff] %v919_v36 }
 0x1b9 PF: > { %s15_s20 = sadd.s32 1, %s1026_s20   ;;  %s1231_s18 = smov %s1022_s19 }
 0x1ba   : > { %p12_p5 = scmp.ge.s32.totalorder %s15_s20, 4   ;;  %s1232_s19 = smov %s1234_s21 }
 0x1bc   :  { %14 = sbr.rel (!%p12_p5) target bundleno = 2 (0x2), region = 82 }

// kernel: lvsm_forward.14
= control target key start
LH: loop header
LB: loop body
LE: loop exit
PB: predicated region body
PF: predicated region fallthrough
CT: control target
= control target key end

     0   :  { %s875_s18 = smov 0   ;;  %s877_s19 = smov 0   ;;  %s957_s0 = inlined_call_operand.vmem [shape: bf16[32,96], index: 0, kind: input, shape index: {}]   ;;  %s958_s1 = inlined_call_operand.vmem [shape: bf16[96,256], index: 1, kind: input, shape index: {}]   ;;  %s959_s2 = inlined_call_operand.vmem [shape: f32[1,256], index: 2, kind: input, shape index: {}]   ;;  %s960_s3 = inlined_call_operand.vmem [shape: f32[1,256], index: 3, kind: input, shape index: {}]   ;;  %s961_s4 = inlined_call_operand.vmem [shape: f32[1,256], index: 4, kind: input, shape index: {}]   ;;  %s962_s5 = inlined_call_operand.vmem [shape: bf16[32,256], index: 5, kind: output, shape index: {}]  }
   0x1   :  { %s879_s20 = smov 0  }
   0x2 LB: > { %s34_s21 = sadd.s32 1, %s838_s19  ;;  %p745_p0 = scmp.ge.s32.totalorder %s842_s20, 1  ;;  %s842_s20 = sphi %s879_s20, %s15_s20   ;;  %s838_s19 = sphi %s877_s19, %s964_s19   ;;  %s834_s18 = sphi %s875_s18, %s963_s18  }
   0x3   : > { %p36_p1 = scmp.ge.s32.totalorder %s34_s21, 2  ;;  %p263_p2 = scmp.lt.s32.totalorder %s842_s20, 3 }
   0x5   : > { %s966_s21 = smov (%p36_p1, %s34_s21), 0  ;;  %p264_p3 = pnand %p745_p0, %p263_p2 }
   0x6   : > { %v797_v0 = vld [vmem:[%s958_s1 + $0x4] ss:$8 sps:$4 sm:$0xff] (!%p264_p3)   ;;  %s746_s24 = sshll.u32 (!%p264_p3), %s834_s18, 1  ;;  %v799_v1 = vld [vmem:[%s958_s1] ss:$8 sps:$4 sm:$0xff] (!%p264_p3)   ;;  %v844_v2 = vmov (!%p264_p3), 0   ;;  %v386_v14 = vlaneseq (!%p264_p3) }
   0x7   : > { %267 = sbr.rel (%p264_p3) target bundleno = 422 (0x1a6), region = 40  ;;  %497 = vmatprep.mubr.bf16.mxu0 (!%p264_p3), %v844_v2  ;;  %p322_p4 = scmp.lt.s32.totalorder (!%p264_p3), %s746_s24, 3  ;;  %465 = vmatprep.subr.bf16.mxu0 (!%p264_p3), %v797_v0  ;;  %v800_v3 = vld [vmem:[%s958_s1 + $0x14] ss:$8 sps:$4 sm:$0xff] (!%p264_p3)   ;;  %v802_v4 = vld [vmem:[%s958_s1 + $0x10] ss:$8 sps:$4 sm:$0xff] (!%p264_p3)  }
   0x8   : > { %466 = vmatpush1.bf16.msra.mxu0 (!%p264_p3), %v799_v1  ;;  %v803_v5 = vld [vmem:[%s958_s1 + $0x24] ss:$8 sps:$4 sm:$0xff] (!%p264_p3)   ;;  %v805_v6 = vld [vmem:[%s958_s1 + $0x20] ss:$8 sps:$4 sm:$0xff] (!%p264_p3)   ;;  %v806_v7 = vld [vmem:[%s958_s1 + $0x34] ss:$8 sps:$4 sm:$0xff] (!%p264_p3)  }
   0x9   : > { %467 = vmatprep.subr.bf16.mxu0 (!%p264_p3), %v800_v3  ;;  %v808_v8 = vld [vmem:[%s958_s1 + $0x30] ss:$8 sps:$4 sm:$0xff] (!%p264_p3)   ;;  %v809_v9 = vld [vmem:[%s958_s1 + $0x44] ss:$8 sps:$4 sm:$0xff] (!%p264_p3)   ;;  %v811_v10 = vld [vmem:[%s958_s1 + $0x40] ss:$8 sps:$4 sm:$0xff] (!%p264_p3)  }
   0xa   : > { %v812_v11 = vld [vmem:[%s958_s1 + $0x54] ss:$8 sps:$4 sm:$0xff] (!%p264_p3)   ;;  %v814_v12 = vld [vmem:[%s958_s1 + $0x50] ss:$8 sps:$4 sm:$0xff] (!%p264_p3)   ;;  %vm461_vm0 = vcmask (!%p264_p3), 785408   ;;  %v387_v15 = vshrl.u32 (!%p264_p3), %v386_v14, 7 }
   0xb   : > { %v384_v17 = vld [vmem:[%s959_s2] sm:$0x3] (!%p264_p3) }
   0xc   : > { %468 = vmatpush1.bf16.msra.mxu0 (!%p264_p3), %v802_v4  ;;  %v388_v16 = vsub.s32 (!%p264_p3), 0, %v387_v15  ;;  %v392_v18 = vsub.s32 (!%p264_p3), 1, %v387_v15  ;;  %v544_v51 = vld [vmem:[%s960_s3] sm:$0x3] (!%p264_p3) }
   0xd   : > { %469 = vmatprep.subr.bf16.mxu0 (!%p264_p3), %v803_v5  ;;  %v560_v52 = vld [vmem:[%s961_s4] sm:$0x3] (!%p264_p3) }
   0xe   : > { %s968_s24 = smov (!%p322_p4, %s746_s24), 3  ;;  %v389_v19 = vrot.slane %v384_v17, %v388_v16  ;;  %v393_v20 = vrot.slane %v384_v17, %v392_v18  ;;  %v549_v53 = vrot.slane %v544_v51, %v388_v16  ;;  %v553_v54 = vrot.slane %v544_v51, %v392_v18 }
   0xf   : > { %s747_s8 = sshll.u32 %s968_s24, 2  ;;  %v565_v58 = vrot.slane %v560_v52, %v388_v16  ;;  %v569_v59 = vrot.slane %v560_v52, %v392_v18  ;;  %s769_s11 = sshll.u32 %s968_s24, 3 }
  0x10   : > { %s328_s13 = scalar_lea.vmem %s957_s0, %s747_s8  ;;  %470 = vmatpush1.bf16.msra.mxu0 %v805_v6  ;;  %s366_s14 = scalar_lea.vmem %s962_s5, %s769_s11 }
  0x11   : > { %471 = vmatprep.subr.bf16.mxu0 %v806_v7  ;;  %v815_v13 = vld [vmem:[%s328_s13] sm:$0xff]  }
  0x14   : > { %472 = vmatpush1.bf16.msra.mxu0 %v808_v8 }
  0x15   : > { %473 = vmatprep.subr.bf16.mxu0 %v809_v9 }
  0x18   : > { %474 = vmatpush1.bf16.msra.mxu0 %v811_v10 }
  0x19   : > { %475 = vmatprep.subr.bf16.mxu0 %v812_v11 }
  0x1c   : > { %476 = vmatpush1.bf16.msra.mxu0 %v814_v12 }
  0x1f   : > { %764 = vmatmul.mubr.msk.bf16.vlgmr.msra.gmra.mrb[0].mxu0 %vm461_vm0, %v815_v13 }
  0xf2   : > { %v499_v21 = vpop.f32.mrb[0].mxu0 }
  0xf3   : > { %v500_v22 = vadd.f32 %v499_v21, %v389_v19  ;;  %v501_v23 = vpop.f32.mrb[1].mxu0 }
  0xf4   : > { %v502_v24 = vadd.f32 %v501_v23, %v393_v20  ;;  %v503_v25 = vpop.f32.mrb[2].mxu0 }
  0xf5   : > { %v504_v26 = vadd.f32 %v503_v25, %v389_v19  ;;  %v505_v27 = vpop.f32.mrb[3].mxu0  ;;  %v514_v28 = vmul.f32 %v500_v22, %v500_v22 }
  0xf6   : > { %v506_v29 = vadd.f32 %v505_v27, %v393_v20  ;;  %v508_v30 = vadd.f32 %v502_v24, %v500_v22  ;;  %v515_v31 = vmul.f32 %v502_v24, %v502_v24 }
  0xf7   : > { %v516_v33 = vmul.f32 %v504_v26, %v504_v26 }
  0xf8   : > { %509 = vadd.xlane.f32.xlu0 %v508_v30  ;;  %v518_v32 = vadd.f32 %v515_v31, %v514_v28  ;;  %v517_v34 = vmul.f32 %v506_v29, %v506_v29  ;;  %v511_v35 = vadd.f32 %v506_v29, %v504_v26 }
  0xfa   : > { %519 = vadd.xlane.f32.xlu1 %v518_v32  ;;  %v521_v36 = vadd.f32 %v517_v34, %v516_v33 }
  0xfc   : > { %512 = vadd.xlane.f32.xlu0 %v511_v35 }
  0xfe   : > { %522 = vadd.xlane.f32.xlu1 %v521_v36 }
 0x185   : > { %v510_v37 = vpop.xlane.xlu0 %509 }
 0x186   : > { %v524_v38 = vmul.f32 0.00390625, %v510_v37 }
 0x187   : > { %v520_v39 = vpop.xlane.xlu1 %519 }
 0x188   : > { %v526_v40 = vmul.f32 0.00390625, %v520_v39  ;;  %v528_v41 = vmul.f32 %v524_v38, %v524_v38  ;;  %v532_v55 = vsub.f32 %v500_v22, %v524_v38  ;;  %v533_v56 = vsub.f32 %v502_v24, %v524_v38 }
 0x189   : > { %v513_v42 = vpop.xlane.xlu0 %512 }
 0x18a   : > { %v530_v43 = vsub.f32 %v526_v40, %v528_v41  ;;  %v525_v44 = vmul.f32 0.00390625, %v513_v42 }
 0x18b   : > { %v523_v45 = vpop.xlane.xlu1 %522 }
 0x18c   : > { %v536_v46 = vadd.f32 1e-05, %v530_v43  ;;  %v527_v47 = vmul.f32 0.00390625, %v523_v45  ;;  %v529_v48 = vmul.f32 %v525_v44, %v525_v44  ;;  %v534_v0 = vsub.f32 %v504_v26, %v525_v44 }
 0x18d   : > { %v535_v1 = vsub.f32 %v506_v29, %v525_v44 }
 0x18e   : > { %816 = vrsqrt.f32 %v536_v46  ;;  %v531_v49 = vsub.f32 %v527_v47, %v529_v48 }
 0x190   : > { %v537_v50 = vadd.f32 1e-05, %v531_v49 }
 0x192   : > { %818 = vrsqrt.f32 %v537_v50 }
 0x198   : > { %v817_v57 = vpop.eup %816 }
 0x199   : > { %v540_v60 = vmul.f32 %v817_v57, %v532_v55  ;;  %v541_v61 = vmul.f32 %v817_v57, %v533_v56 }
 0x19b   : > { %v556_v62 = vmul.f32 %v549_v53, %v540_v60  ;;  %v557_v63 = vmul.f32 %v553_v54, %v541_v61 }
 0x19c   : > { %v819_v2 = vpop.eup %818 }
 0x19d   : > { %v572_v3 = vadd.f32 %v565_v58, %v556_v62  ;;  %v573_v4 = vadd.f32 %v569_v59, %v557_v63  ;;  %v542_v5 = vmul.f32 %v819_v2, %v534_v0  ;;  %v543_v6 = vmul.f32 %v819_v2, %v535_v1 }
 0x19f   : > { %v770_v7 = vpack.c.bf16 %v573_v4, %v572_v3  ;;  %v558_v8 = vmul.f32 %v549_v53, %v542_v5  ;;  %v559_v9 = vmul.f32 %v553_v54, %v543_v6 }
 0x1a1   : > { %588 = vst [vmem:[%s366_s14] sm:$0xff] %v770_v7  ;;  %v574_v10 = vadd.f32 %v565_v58, %v558_v8  ;;  %v575_v11 = vadd.f32 %v569_v59, %v559_v9 }
 0x1a3   : > { %v771_v12 = vpack.c.bf16 %v575_v11, %v574_v10 }
 0x1a5   : > { %589 = vst [vmem:[%s366_s14 + $0x8] sm:$0xff] %v771_v12 }
 0x1a6 PF: > { %s15_s20 = sadd.s32 1, %s842_s20   ;;  %s963_s18 = smov %s838_s19 }
 0x1a7   : > { %p12_p5 = scmp.ge.s32.totalorder %s15_s20, 4   ;;  %s964_s19 = smov %s966_s21 }
 0x1a9   :  { %14 = sbr.rel (!%p12_p5) target bundleno = 2 (0x2), region = 82 }

// kernel: lvsm_forward.15
= control target key start
LH: loop header
LB: loop body
LE: loop exit
PB: predicated region body
PF: predicated region fallthrough
CT: control target
= control target key end

     0   :  { %s1837_s0 = inlined_call_operand.vmem [shape: bf16[96,256], index: 0, kind: input, shape index: {}]   ;;  %s1838_s1 = inlined_call_operand.vmem [shape: bf16[256,768], index: 1, kind: input, shape index: {}]   ;;  %s1839_s2 = inlined_call_operand.vmem [shape: f32[1,768], index: 2, kind: input, shape index: {}]   ;;  %s1840_s3 = inlined_call_operand.vmem [shape: f32[1,256], index: 3, kind: input, shape index: {}]   ;;  %s1841_s4 = inlined_call_operand.vmem [shape: f32[1,256], index: 4, kind: input, shape index: {}]   ;;  %s1842_s5 = inlined_call_operand.vmem [shape: bf16[96,768], index: 5, kind: output, shape index: {}]  }
   0x1   :  { %1843 = sst [smem:[#allocation5_spill]] %s1838_s1 }
   0x2   :  { %s1474_s18 = smov 0   ;;  %s1476_s19 = smov 0  }
   0x3   :  { %s1478_s20 = smov 0   ;;  %s1480_s21 = smov 0  }
   0x4   :  { %s1482_s22 = smov 0   ;;  %s1484_s23 = smov 0  }
   0x5   :  { %s1486_s24 = smov 0   ;;  %s1488_s25 = smov 0  }
   0x6   :  { %s1490_s26 = smov 0  }
   0x7 LB: > { %s1142_s27 = sadd.s32 4294967295, %s1442_s26   ;;  %s30_s28 = sadd.s32 1, %s1434_s24  ;;  %s1442_s26 = sphi %s1490_s26, %s15_s26   ;;  %s1438_s25 = sphi %s1488_s25, %s1853_s25   ;;  %s1434_s24 = sphi %s1486_s24, %s1852_s24   ;;  %s1430_s23 = sphi %s1484_s23, %s1851_s23   ;;  %s1426_s22 = sphi %s1482_s22, %s1850_s22   ;;  %s1422_s21 = sphi %s1480_s21, %s1849_s21   ;;  %s1418_s20 = sphi %s1478_s20, %s1848_s20   ;;  %s1414_s19 = sphi %s1476_s19, %s1847_s19   ;;  %s1410_s18 = sphi %s1474_s18, %s1846_s18  }
   0x8   : > { %p32_p0 = scmp.ge.s32.totalorder %s30_s28, 3  ;;  %s34_s29 = sadd.s32 1, %s1438_s25 }
   0x9   : > { %s71_s30 = sadd.s32 1, %s1422_s21  ;;  %p78_p1 = scmp.ne.s32.totalorder %s1422_s21, %s1418_s20 }
   0xa   : > { %s1855_s28 = smov (%p32_p0, %s30_s28), 0  ;;  %s1857_s29 = smov (!%p32_p0, %s34_s29), %s1438_s25 }
   0xb   : > { %s67_s6 = ssub.s32 %s1434_s24, %s1855_s28  ;;  %p79_p2 = scmp.eq.s32.totalorder %s1442_s26, 0 }
   0xc   : > { %p36_p3 = scmp.ge.s32.totalorder %s1857_s29, 2  ;;  %p69_p4 = scmp.eq.s32.totalorder %s67_s6, 0 }
   0xd   : > { %p80_p5 = por %p79_p2, %p78_p1  ;;  %s167_s7 = sadd.s32 1, %s1414_s19 }
   0xe   : > { %s1859_s29 = smov (%p36_p3, %s1857_s29), 0  ;;  %p177_p6 = scmp.ne.s32.totalorder %s1414_s19, %s1410_s18 }
   0xf   : > { %s1535_s8 = scalar_select %p69_p4, %s1422_s21, %s71_s30  }
  0x10   : > { %s162_s9 = ssub.s32 %s1438_s25, %s1859_s29  ;;  %p178_p7 = scmp.eq.s32.totalorder %s1142_s27, 5 }
  0x11   : > { %s164_s10 = sor.u32 %s162_s9, %s67_s6  ;;  %p1145_p10 = scmp.ge.s32.totalorder %s1442_s26, 6 }
  0x12   : > { %p165_p8 = scmp.eq.s32.totalorder %s164_s10, 0  ;;  %p1541_p9 = por %p178_p7, %p177_p6 }
  0x13   : > { %206 = sbr.rel (%p1145_p10) target bundleno = 52 (0x34), region = 24 }
  0x14   : > { %s1546_s12 = scalar_select %p165_p8, %s1414_s19, %s167_s7  }
  0x1a   : > { %224 = sbr.rel (!%p80_p5) target bundleno = 52 (0x34), region = 32  ;;  %s226_s13 = sand.u32 (%p80_p5), 1, %s1422_s21  }
  0x1b   : > { %s1197_s14 = sshll.u32 (%p80_p5), %s1434_s24, 3  ;;  %s1146_s15 = sshll.u32 (%p80_p5), %s226_s13, 8 }
  0x1c   : > { %s1845_s1 = sld [smem:[#allocation5_spill]] (%p80_p5)  ;;  %s1559_s30 = scalar_lea.vmem (%p80_p5), [#allocation3], %s1146_s15 }
  0x22   : > { %s1554_s27 = scalar_lea.vmem %s1845_s1, %s1197_s14 }
  0x23   : > { %v324_v0 = vld [vmem:[%s1554_s27] sm:$0xff]  ;;  %v326_v1 = vld [vmem:[%s1554_s27 + $0x18] sm:$0xff]  ;;  %v328_v2 = vld [vmem:[%s1554_s27 + $0x30] sm:$0xff] }
  0x24   : > { %325 = vst [vmem:[%s1559_s30] sm:$0xff] %v324_v0  ;;  %327 = vst [vmem:[%s1559_s30 + $0x8] sm:$0xff] %v326_v1  ;;  %v330_v3 = vld [vmem:[%s1554_s27 + $0x48] sm:$0xff]  ;;  %v332_v4 = vld [vmem:[%s1554_s27 + $0x60] sm:$0xff] }
  0x25   : > { %329 = vst [vmem:[%s1559_s30 + $0x10] sm:$0xff] %v328_v2  ;;  %v334_v5 = vld [vmem:[%s1554_s27 + $0x78] sm:$0xff]  ;;  %331 = vst [vmem:[%s1559_s30 + $0x18] sm:$0xff] %v330_v3  ;;  %v336_v6 = vld [vmem:[%s1554_s27 + $0x90] sm:$0xff] }
  0x26   : > { %333 = vst [vmem:[%s1559_s30 + $0x20] sm:$0xff] %v332_v4  ;;  %335 = vst [vmem:[%s1559_s30 + $0x28] sm:$0xff] %v334_v5  ;;  %v338_v7 = vld [vmem:[%s1554_s27 + $0xa8] sm:$0xff]  ;;  %v340_v8 = vld [vmem:[%s1554_s27 + $0xc0] sm:$0xff] }
  0x27   : > { %337 = vst [vmem:[%s1559_s30 + $0x30] sm:$0xff] %v336_v6  ;;  %339 = vst [vmem:[%s1559_s30 + $0x38] sm:$0xff] %v338_v7  ;;  %v342_v9 = vld [vmem:[%s1554_s27 + $0xd8] sm:$0xff]  ;;  %v344_v10 = vld [vmem:[%s1554_s27 + $0xf0] sm:$0xff] }
  0x28   : > { %341 = vst [vmem:[%s1559_s30 + $0x40] sm:$0xff] %v340_v8  ;;  %v346_v11 = vld [vmem:[%s1554_s27 + $0x108] sm:$0xff]  ;;  %343 = vst [vmem:[%s1559_s30 + $0x48] sm:$0xff] %v342_v9  ;;  %v348_v12 = vld [vmem:[%s1554_s27 + $0x120] sm:$0xff] }
  0x29   : > { %345 = vst [vmem:[%s1559_s30 + $0x50] sm:$0xff] %v344_v10  ;;  %347 = vst [vmem:[%s1559_s30 + $0x58] sm:$0xff] %v346_v11  ;;  %v350_v13 = vld [vmem:[%s1554_s27 + $0x138] sm:$0xff]  ;;  %v352_v14 = vld [vmem:[%s1554_s27 + $0x150] sm:$0xff] }
  0x2a   : > { %349 = vst [vmem:[%s1559_s30 + $0x60] sm:$0xff] %v348_v12  ;;  %351 = vst [vmem:[%s1559_s30 + $0x68] sm:$0xff] %v350_v13  ;;  %v354_v15 = vld [vmem:[%s1554_s27 + $0x168] sm:$0xff]  ;;  %v356_v16 = vld [vmem:[%s1554_s27 + $0x180] sm:$0xff] }
  0x2b   : > { %353 = vst [vmem:[%s1559_s30 + $0x70] sm:$0xff] %v352_v14  ;;  %v358_v17 = vld [vmem:[%s1554_s27 + $0x198] sm:$0xff]  ;;  %355 = vst [vmem:[%s1559_s30 + $0x78] sm:$0xff] %v354_v15  ;;  %v360_v18 = vld [vmem:[%s1554_s27 + $0x1b0] sm:$0xff] }
  0x2c   : > { %357 = vst [vmem:[%s1559_s30 + $0x80] sm:$0xff] %v356_v16  ;;  %359 = vst [vmem:[%s1559_s30 + $0x88] sm:$0xff] %v358_v17  ;;  %v362_v19 = vld [vmem:[%s1554_s27 + $0x1c8] sm:$0xff]  ;;  %v364_v20 = vld [vmem:[%s1554_s27 + $0x1e0] sm:$0xff] }
  0x2d   : > { %361 = vst [vmem:[%s1559_s30 + $0x90] sm:$0xff] %v360_v18  ;;  %363 = vst [vmem:[%s1559_s30 + $0x98] sm:$0xff] %v362_v19  ;;  %v366_v21 = vld [vmem:[%s1554_s27 + $0x1f8] sm:$0xff]  ;;  %v368_v22 = vld [vmem:[%s1554_s27 + $0x210] sm:$0xff] }
  0x2e   : > { %365 = vst [vmem:[%s1559_s30 + $0xa0] sm:$0xff] %v364_v20  ;;  %v370_v23 = vld [vmem:[%s1554_s27 + $0x228] sm:$0xff]  ;;  %367 = vst [vmem:[%s1559_s30 + $0xa8] sm:$0xff] %v366_v21  ;;  %v372_v24 = vld [vmem:[%s1554_s27 + $0x240] sm:$0xff] }
  0x2f   : > { %369 = vst [vmem:[%s1559_s30 + $0xb0] sm:$0xff] %v368_v22  ;;  %371 = vst [vmem:[%s1559_s30 + $0xb8] sm:$0xff] %v370_v23  ;;  %v374_v25 = vld [vmem:[%s1554_s27 + $0x258] sm:$0xff]  ;;  %v376_v26 = vld [vmem:[%s1554_s27 + $0x270] sm:$0xff] }
  0x30   : > { %373 = vst [vmem:[%s1559_s30 + $0xc0] sm:$0xff] %v372_v24  ;;  %375 = vst [vmem:[%s1559_s30 + $0xc8] sm:$0xff] %v374_v25  ;;  %v378_v27 = vld [vmem:[%s1554_s27 + $0x288] sm:$0xff]  ;;  %v380_v28 = vld [vmem:[%s1554_s27 + $0x2a0] sm:$0xff] }
  0x31   : > { %377 = vst [vmem:[%s1559_s30 + $0xd0] sm:$0xff] %v376_v26  ;;  %v382_v29 = vld [vmem:[%s1554_s27 + $0x2b8] sm:$0xff]  ;;  %379 = vst [vmem:[%s1559_s30 + $0xd8] sm:$0xff] %v378_v27  ;;  %v384_v30 = vld [vmem:[%s1554_s27 + $0x2d0] sm:$0xff] }
  0x32   : > { %381 = vst [vmem:[%s1559_s30 + $0xe0] sm:$0xff] %v380_v28  ;;  %383 = vst [vmem:[%s1559_s30 + $0xe8] sm:$0xff] %v382_v29  ;;  %v386_v31 = vld [vmem:[%s1554_s27 + $0x2e8] sm:$0xff] }
  0x33   : > { %385 = vst [vmem:[%s1559_s30 + $0xf0] sm:$0xff] %v384_v30  ;;  %387 = vst [vmem:[%s1559_s30 + $0xf8] sm:$0xff] %v386_v31 }
  0x34 PF: > { %p1149_p11 = scmp.ge.s32.totalorder %s1442_s26, 1  ;;  %p400_p12 = scmp.lt.s32.totalorder %s1442_s26, 7 }
  0x36   : > { %p401_p13 = pnand %p1149_p11, %p400_p12 }
  0x37   : > { %s407_s6 = sand.u32 (!%p401_p13), 1, %s1418_s20   ;;  %s444_s7 = sand.u32 (!%p401_p13), 1, %s1410_s18  }
  0x38   : > { %404 = sbr.rel (%p401_p13) target bundleno = 563 (0x233), region = 74  ;;  %s1150_s9 = sshll.u32 (!%p401_p13), %s407_s6, 8 }
  0x39   : > { %s1237_s10 = smul.u32 (!%p401_p13), 48, %s444_s7  ;;  %s1628_s14 = sshll.u32 (!%p401_p13), %s1426_s22, 1 }
  0x3a   : > { %s447_s13 = smul.u32 (!%p401_p13), 6, %s1430_s23  ;;  %p462_p1 = scmp.lt.s32.totalorder (!%p401_p13), %s1628_s14, 5 }
  0x3b   : > { %s1641_s7 = scalar_lea.vmem (!%p401_p13), [#allocation3], %s1150_s9  ;;  %s1643_s1 = scalar_lea.vmem (!%p401_p13), [#allocation4], %s1237_s10 }
  0x3c   : > { %p449_p0 = scmp.lt.s32.totalorder (!%p401_p13), %s447_s13, 11  ;;  %p1154_p2 = scmp.ne.s32.totalorder (!%p401_p13), %s1426_s22, 0 }
  0x3f   : > { %s1861_s13 = smov (!%p449_p0, %s447_s13), 11  ;;  %471 = sbr.rel (%p1154_p2) target bundleno = 262 (0x106), region = 82 }
  0x40   : > { %s1632_s15 = scalar_select %p462_p1, %s1628_s14, 5 }
  0x41   : > { %s1198_s16 = sshll.u32 %s1861_s13, 3  ;;  %v600_v26 = vlaneseq (!%p1154_p2) }
  0x42   : > { %s456_s30 = scalar_lea.vmem %s1837_s0, %s1198_s16  ;;  %s464_s6 = scalar_lea.vmem %s1839_s2, %s1632_s15 }
  0x43   : > { %v474_v32 = vld [vmem:[%s456_s30 + $0x10] sm:$0xff] (!%p1154_p2)  ;;  %v472_v33 = vld [vmem:[%s456_s30] sm:$0xff] (!%p1154_p2)  ;;  %v475_v34 = vld [vmem:[%s456_s30 + $0x18] sm:$0xff] (!%p1154_p2) }
  0x44   : > { %v1646_v35 = vunpack.c.l.bf16 (!%p1154_p2), %v474_v32  ;;  %v1648_v36 = vunpack.c.h.bf16 (!%p1154_p2), %v474_v32  ;;  %v1650_v37 = vunpack.c.l.bf16 (!%p1154_p2), %v472_v33  ;;  %v1652_v38 = vunpack.c.h.bf16 (!%p1154_p2), %v472_v33  ;;  %v473_v39 = vld [vmem:[%s456_s30 + $0x8] sm:$0xff] (!%p1154_p2)  ;;  %v476_v45 = vld [vmem:[%s456_s30 + $0x20] sm:$0xff] (!%p1154_p2) }
  0x45   : > { %v477_v40 = vld [vmem:[%s456_s30 + $0x28] sm:$0xff] (!%p1154_p2)  ;;  %v1654_v41 = vunpack.c.l.bf16 (!%p1154_p2), %v475_v34  ;;  %v1656_v42 = vunpack.c.h.bf16 (!%p1154_p2), %v475_v34  ;;  %v1658_v43 = vunpack.c.l.bf16 (!%p1154_p2), %v473_v39  ;;  %v1660_v44 = vunpack.c.h.bf16 (!%p1154_p2), %v473_v39 }
  0x46   : > { %v496_v46 = vadd.f32 %v1648_v36, %v1646_v35  ;;  %v490_v47 = vadd.f32 %v1652_v38, %v1650_v37  ;;  %v1666_v48 = vunpack.c.l.bf16 %v477_v40  ;;  %v1668_v49 = vunpack.c.h.bf16 %v477_v40 }
  0x47   : > { %v499_v50 = vadd.f32 %v1656_v42, %v1654_v41  ;;  %v493_v51 = vadd.f32 %v1660_v44, %v1658_v43  ;;  %v1674_v52 = vunpack.c.l.bf16 %v476_v45  ;;  %v1676_v53 = vunpack.c.h.bf16 %v476_v45 }
  0x48   : > { %497 = vadd.xlane.f32.xlu1 %v496_v46  ;;  %491 = vadd.xlane.f32.xlu0 %v490_v47  ;;  %v505_v54 = vadd.f32 %v1668_v49, %v1666_v48  ;;  %v510_v55 = vmul.f32 %v1658_v43, %v1658_v43  ;;  %v511_v56 = vmul.f32 %v1660_v44, %v1660_v44  ;;  %v601_v47 = vshrl.u32 %v600_v26, 7 }
  0x49   : > { %v502_v57 = vadd.f32 %v1676_v53, %v1674_v52  ;;  %v508_v58 = vmul.f32 %v1650_v37, %v1650_v37  ;;  %v509_v59 = vmul.f32 %v1652_v38, %v1652_v38  ;;  %v514_v61 = vmul.f32 %v1654_v41, %v1654_v41 }
  0x4a   : > { %v523_v60 = vadd.f32 %v511_v56, %v510_v55  ;;  %v515_v62 = vmul.f32 %v1656_v42, %v1656_v42  ;;  %v512_v0 = vmul.f32 %v1646_v35, %v1646_v35  ;;  %v513_v1 = vmul.f32 %v1648_v36, %v1648_v36 }
  0x4b   : > { %v520_v63 = vadd.f32 %v509_v59, %v508_v58  ;;  %v518_v2 = vmul.f32 %v1666_v48, %v1666_v48  ;;  %v519_v3 = vmul.f32 %v1668_v49, %v1668_v49  ;;  %v516_v4 = vmul.f32 %v1674_v52, %v1674_v52 }
  0x4c   : > { %500 = vadd.xlane.f32.xlu1 %v499_v50  ;;  %494 = vadd.xlane.f32.xlu0 %v493_v51  ;;  %v529_v5 = vadd.f32 %v515_v62, %v514_v61  ;;  %v526_v6 = vadd.f32 %v513_v1, %v512_v0  ;;  %v517_v7 = vmul.f32 %v1676_v53, %v1676_v53  ;;  %v602_v62 = vsub.s32 0, %v601_v47  ;;  %v598_v1 = vld [vmem:[%s1840_s3] sm:$0x3] }
  0x4d   : > { %v535_v8 = vadd.f32 %v519_v3, %v518_v2  ;;  %v606_v2 = vsub.s32 1, %v601_v47 }
  0x4e   : > { %v532_v9 = vadd.f32 %v517_v7, %v516_v4 }
  0x50   : > { %506 = vadd.xlane.f32.xlu1 %v505_v54  ;;  %503 = vadd.xlane.f32.xlu0 %v502_v57 }
  0x54   : > { %524 = vadd.xlane.f32.xlu1 %v523_v60  ;;  %521 = vadd.xlane.f32.xlu0 %v520_v63 }
  0x58   : > { %530 = vadd.xlane.f32.xlu1 %v529_v5  ;;  %527 = vadd.xlane.f32.xlu0 %v526_v6  ;;  %v603_v5 = vrot.slane %v598_v1, %v602_v62  ;;  %v622_v6 = vld [vmem:[%s1841_s4] sm:$0x3] }
  0x5c   : > { %536 = vadd.xlane.f32.xlu1 %v535_v8  ;;  %533 = vadd.xlane.f32.xlu0 %v532_v9  ;;  %v607_v9 = vrot.slane %v598_v1, %v606_v2 }
  0xd5   : > { %v498_v10 = vpop.xlane.xlu1 %497  ;;  %v492_v11 = vpop.xlane.xlu0 %491 }
  0xd6   : > { %v1706_v16 = vmul.f32 0.00390625, %v492_v11  ;;  %v1708_v18 = vmul.f32 0.00390625, %v498_v10 }
  0xd8   : > { %v550_v24 = vmul.f32 %v1706_v16, %v1706_v16  ;;  %v552_v33 = vmul.f32 %v1708_v18, %v1708_v18  ;;  %v562_v11 = vsub.f32 %v1650_v37, %v1706_v16 }
  0xd9   : > { %v501_v12 = vpop.xlane.xlu1 %500  ;;  %v495_v13 = vpop.xlane.xlu0 %494 }
  0xda   : > { %v539_v17 = vmul.f32 0.00390625, %v495_v13  ;;  %v1710_v19 = vmul.f32 0.00390625, %v501_v12  ;;  %v563_v12 = vsub.f32 %v1652_v38, %v1706_v16 }
  0xdc   : > { %v551_v23 = vmul.f32 %v539_v17, %v539_v17  ;;  %v553_v31 = vmul.f32 %v1710_v19, %v1710_v19  ;;  %v564_v7 = vsub.f32 %v1658_v43, %v539_v17  ;;  %v565_v8 = vsub.f32 %v1660_v44, %v539_v17 }
  0xdd   : > { %v507_v14 = vpop.xlane.xlu1 %506  ;;  %v504_v15 = vpop.xlane.xlu0 %503  ;;  %v567_v43 = vsub.f32 %v1648_v36, %v1708_v18  ;;  %v569_v37 = vsub.f32 %v1656_v42, %v1710_v19 }
  0xde   : > { %v1714_v29 = vmul.f32 0.00390625, %v507_v14  ;;  %v1716_v30 = vmul.f32 0.00390625, %v504_v15  ;;  %v627_v14 = vrot.slane %v622_v6, %v602_v62  ;;  %v631_v15 = vrot.slane %v622_v6, %v606_v2 }
  0xe0   : > { %v555_v54 = vmul.f32 %v1714_v29, %v1714_v29  ;;  %v554_v56 = vmul.f32 %v1716_v30, %v1716_v30 }
  0xe1   : > { %v525_v20 = vpop.xlane.xlu1 %524  ;;  %v522_v21 = vpop.xlane.xlu0 %521 }
  0xe2   : > { %v545_v22 = vmul.f32 0.00390625, %v525_v20  ;;  %v544_v25 = vmul.f32 0.00390625, %v522_v21 }
  0xe4   : > { %v557_v27 = vsub.f32 %v545_v22, %v551_v23  ;;  %v556_v28 = vsub.f32 %v544_v25, %v550_v24  ;;  %v566_v22 = vsub.f32 %v1646_v35, %v1708_v18  ;;  %v568_v23 = vsub.f32 %v1654_v41, %v1710_v19 }
  0xe5   : > { %v531_v32 = vpop.xlane.xlu1 %530  ;;  %v528_v34 = vpop.xlane.xlu0 %527  ;;  %v572_v25 = vsub.f32 %v1666_v48, %v1714_v29  ;;  %v573_v35 = vsub.f32 %v1668_v49, %v1714_v29  ;;  %v570_v19 = vsub.f32 %v1674_v52, %v1716_v30  ;;  %v571_v48 = vsub.f32 %v1676_v53, %v1716_v30 }
  0xe6   : > { %v575_v39 = vadd.f32 1e-05, %v557_v27  ;;  %v574_v40 = vadd.f32 1e-05, %v556_v28  ;;  %v547_v45 = vmul.f32 0.00390625, %v531_v32  ;;  %v546_v46 = vmul.f32 0.00390625, %v528_v34 }
  0xe8   : > { %1312 = vrsqrt.f32 %v575_v39  ;;  %v559_v50 = vsub.f32 %v547_v45, %v553_v31  ;;  %v558_v51 = vsub.f32 %v546_v46, %v552_v33 }
  0xe9   : > { %1314 = vrsqrt.f32 %v574_v40  ;;  %v537_v55 = vpop.xlane.xlu1 %536  ;;  %v534_v57 = vpop.xlane.xlu0 %533 }
  0xea   : > { %v577_v58 = vadd.f32 1e-05, %v559_v50  ;;  %v576_v59 = vadd.f32 1e-05, %v558_v51  ;;  %v549_v60 = vmul.f32 0.00390625, %v537_v55  ;;  %v548_v61 = vmul.f32 0.00390625, %v534_v57 }
  0xec   : > { %1316 = vrsqrt.f32 %v577_v58  ;;  %v561_v63 = vsub.f32 %v549_v60, %v555_v54  ;;  %v560_v0 = vsub.f32 %v548_v61, %v554_v56 }
  0xed   : > { %1318 = vrsqrt.f32 %v576_v59 }
  0xee   : > { %v579_v3 = vadd.f32 1e-05, %v561_v63  ;;  %v578_v4 = vadd.f32 1e-05, %v560_v0 }
  0xf0   : > { %1320 = vrsqrt.f32 %v579_v3 }
  0xf1   : > { %1322 = vrsqrt.f32 %v578_v4 }
  0xf2   : > { %v1313_v10 = vpop.eup %1312 }
  0xf3   : > { %v1315_v13 = vpop.eup %1314  ;;  %v588_v20 = vmul.f32 %v1313_v10, %v564_v7  ;;  %v589_v21 = vmul.f32 %v1313_v10, %v565_v8 }
  0xf4   : > { %v586_v44 = vmul.f32 %v1315_v13, %v562_v11  ;;  %v587_v17 = vmul.f32 %v1315_v13, %v563_v12 }
  0xf5   : > { %v612_v38 = vmul.f32 %v603_v5, %v588_v20  ;;  %v613_v16 = vmul.f32 %v607_v9, %v589_v21 }
  0xf6   : > { %v1317_v24 = vpop.eup %1316  ;;  %v610_v26 = vmul.f32 %v603_v5, %v586_v44  ;;  %v611_v27 = vmul.f32 %v607_v9, %v587_v17 }
  0xf7   : > { %v1319_v36 = vpop.eup %1318  ;;  %v636_v18 = vadd.f32 %v627_v14, %v612_v38  ;;  %v637_v28 = vadd.f32 %v631_v15, %v613_v16  ;;  %v592_v31 = vmul.f32 %v1317_v24, %v568_v23  ;;  %v593_v32 = vmul.f32 %v1317_v24, %v569_v37 }
  0xf8   : > { %v634_v41 = vadd.f32 %v627_v14, %v610_v26  ;;  %v635_v33 = vadd.f32 %v631_v15, %v611_v27  ;;  %v590_v34 = vmul.f32 %v1319_v36, %v566_v22  ;;  %v591_v42 = vmul.f32 %v1319_v36, %v567_v43 }
  0xf9   : > { %v616_v39 = vmul.f32 %v603_v5, %v592_v31  ;;  %v617_v40 = vmul.f32 %v607_v9, %v593_v32 }
  0xfa   : > { %v1321_v49 = vpop.eup %1320  ;;  %v646_v29 = vpack.c.bf16 %v636_v18, %v634_v41  ;;  %v647_v45 = vpack.c.bf16 %v637_v28, %v635_v33  ;;  %v614_v46 = vmul.f32 %v603_v5, %v590_v34  ;;  %v615_v47 = vmul.f32 %v607_v9, %v591_v42 }
  0xfb   : > { %v1323_v50 = vpop.eup %1322  ;;  %v640_v51 = vadd.f32 %v627_v14, %v616_v39  ;;  %v641_v54 = vadd.f32 %v631_v15, %v617_v40  ;;  %v596_v55 = vmul.f32 %v1321_v49, %v572_v25  ;;  %v597_v56 = vmul.f32 %v1321_v49, %v573_v35 }
  0xfc   : > { %652 = vst [vmem:[#allocation2] sm:$0xff] %v646_v29  ;;  %653 = vst [vmem:[#allocation2 + $0x8] sm:$0xff] %v647_v45  ;;  %v638_v57 = vadd.f32 %v627_v14, %v614_v46  ;;  %v639_v58 = vadd.f32 %v631_v15, %v615_v47  ;;  %v594_v52 = vmul.f32 %v1323_v50, %v570_v19 }
  0xfd   : > { %v595_v59 = vmul.f32 %v1323_v50, %v571_v48  ;;  %v620_v60 = vmul.f32 %v603_v5, %v596_v55  ;;  %v621_v53 = vmul.f32 %v607_v9, %v597_v56 }
  0xfe   : > { %v648_v30 = vpack.c.bf16 %v640_v51, %v638_v57  ;;  %v649_v61 = vpack.c.bf16 %v641_v54, %v639_v58  ;;  %v618_v62 = vmul.f32 %v603_v5, %v594_v52 }
  0xff   : > { %v619_v63 = vmul.f32 %v607_v9, %v595_v59  ;;  %v644_v0 = vadd.f32 %v627_v14, %v620_v60  ;;  %v645_v1 = vadd.f32 %v631_v15, %v621_v53 }
 0x100   : > { %654 = vst [vmem:[#allocation2 + $0x10] sm:$0xff] %v648_v30  ;;  %655 = vst [vmem:[#allocation2 + $0x18] sm:$0xff] %v649_v61  ;;  %v642_v2 = vadd.f32 %v627_v14, %v618_v62 }
 0x101   : > { %v643_v3 = vadd.f32 %v631_v15, %v619_v63 }
 0x102   : > { %v650_v4 = vpack.c.bf16 %v644_v0, %v642_v2 }
 0x103   : > { %v651_v6 = vpack.c.bf16 %v645_v1, %v643_v3 }
 0x104   : > { %656 = vst [vmem:[#allocation2 + $0x20] sm:$0xff] %v650_v4 }
 0x105   : > { %657 = vst [vmem:[#allocation2 + $0x28] sm:$0xff] %v651_v6 }
 0x106 PF: > { %v1324_v5 = vld [vmem:[%s1641_s7 + $0x4] ss:$8 sps:$4 sm:$0xff]   ;;  %v1326_v7 = vld [vmem:[%s1641_s7] ss:$8 sps:$4 sm:$0xff]   ;;  %v1327_v8 = vld [vmem:[%s1641_s7 + $0x14] ss:$8 sps:$4 sm:$0xff]   ;;  %v698_v49 = vlaneseq }
 0x107   : > { %1205 = vmatprep.subr.bf16.mxu1 %v1324_v5  ;;  %868 = vmatprep.subr.bf16.mxu0 %v1324_v5  ;;  %v1329_v9 = vld [vmem:[%s1641_s7 + $0x10] ss:$8 sps:$4 sm:$0xff]   ;;  %v1330_v10 = vld [vmem:[%s1641_s7 + $0x24] ss:$8 sps:$4 sm:$0xff]   ;;  %v1332_v11 = vld [vmem:[%s1641_s7 + $0x20] ss:$8 sps:$4 sm:$0xff]  }
 0x108   : > { %1221 = vmatpush1.bf16.msra.mxu1 %v1326_v7  ;;  %869 = vmatpush1.bf16.msra.mxu0 %v1326_v7  ;;  %v1333_v12 = vld [vmem:[%s1641_s7 + $0x34] ss:$8 sps:$4 sm:$0xff]   ;;  %v1335_v13 = vld [vmem:[%s1641_s7 + $0x30] ss:$8 sps:$4 sm:$0xff]   ;;  %v1336_v14 = vld [vmem:[%s1641_s7 + $0x44] ss:$8 sps:$4 sm:$0xff]  }
 0x109   : > { %1206 = vmatprep.subr.bf16.mxu1 %v1327_v8  ;;  %870 = vmatprep.subr.bf16.mxu0 %v1327_v8  ;;  %v1338_v15 = vld [vmem:[%s1641_s7 + $0x40] ss:$8 sps:$4 sm:$0xff]   ;;  %v1339_v20 = vld [vmem:[%s1641_s7 + $0x54] ss:$8 sps:$4 sm:$0xff]   ;;  %v1341_v21 = vld [vmem:[%s1641_s7 + $0x50] ss:$8 sps:$4 sm:$0xff]  }
 0x10a   : > { %v1342_v22 = vld [vmem:[%s1641_s7 + $0x64] ss:$8 sps:$4 sm:$0xff]   ;;  %v659_v44 = vld [vmem:[#allocation2 + $0x8] sm:$0xff]  ;;  %v1344_v17 = vld [vmem:[%s1641_s7 + $0x60] ss:$8 sps:$4 sm:$0xff]   ;;  %v699_v29 = vshrl.u32 %v698_v49, 7 }
 0x10b   : > { %v661_v43 = vld [vmem:[#allocation2 + $0x18] sm:$0xff]  ;;  %v1345_v23 = vld [vmem:[%s1641_s7 + $0x74] ss:$8 sps:$4 sm:$0xff]   ;;  %900 = vmatprep.mubr.bf16.mxu0 %v659_v44  ;;  %v1347_v37 = vld [vmem:[%s1641_s7 + $0x70] ss:$8 sps:$4 sm:$0xff]   ;;  %s1239_s15 = smul.u32 (%p1541_p9), 36, %s1430_s23 }
 0x10c   : > { %1222 = vmatpush1.bf16.msra.mxu1 %v1329_v9  ;;  %871 = vmatpush1.bf16.msra.mxu0 %v1329_v9  ;;  %v1348_v38 = vld [vmem:[%s1641_s7 + $0x84] ss:$8 sps:$4 sm:$0xff]   ;;  %v1350_v16 = vld [vmem:[%s1641_s7 + $0x80] ss:$8 sps:$4 sm:$0xff]   ;;  %v1351_v24 = vld [vmem:[%s1641_s7 + $0x94] ss:$8 sps:$4 sm:$0xff]  }
 0x10d   : > { %1207 = vmatprep.subr.bf16.mxu1 %v1330_v10  ;;  %872 = vmatprep.subr.bf16.mxu0 %v1330_v10  ;;  %v1353_v25 = vld [vmem:[%s1641_s7 + $0x90] ss:$8 sps:$4 sm:$0xff]   ;;  %v1354_v35 = vld [vmem:[%s1641_s7 + $0xa4] ss:$8 sps:$4 sm:$0xff]   ;;  %v1356_v26 = vld [vmem:[%s1641_s7 + $0xa0] ss:$8 sps:$4 sm:$0xff]   ;;  %s983_s27 = sadd.s32 (%p1541_p9), %s1239_s15, %s1628_s14 }
 0x10e   : > { %910 = vmatprep.mubr.bf16.mxu1 %v661_v43  ;;  %v1357_v27 = vld [vmem:[%s1641_s7 + $0xb4] ss:$8 sps:$4 sm:$0xff]   ;;  %v1359_v36 = vld [vmem:[%s1641_s7 + $0xb0] ss:$8 sps:$4 sm:$0xff]   ;;  %v1360_v18 = vld [vmem:[%s1641_s7 + $0xc4] ss:$8 sps:$4 sm:$0xff]  }
 0x10f   : > { %v1362_v28 = vld [vmem:[%s1641_s7 + $0xc0] ss:$8 sps:$4 sm:$0xff]   ;;  %v1363_v31 = vld [vmem:[%s1641_s7 + $0xd4] ss:$8 sps:$4 sm:$0xff]   ;;  %v1365_v32 = vld [vmem:[%s1641_s7 + $0xd0] ss:$8 sps:$4 sm:$0xff]  }
 0x110   : > { %1223 = vmatpush1.bf16.msra.mxu1 %v1332_v11  ;;  %873 = vmatpush1.bf16.msra.mxu0 %v1332_v11  ;;  %v1366_v41 = vld [vmem:[%s1641_s7 + $0xe4] ss:$8 sps:$4 sm:$0xff]   ;;  %v1368_v33 = vld [vmem:[%s1641_s7 + $0xe0] ss:$8 sps:$4 sm:$0xff]   ;;  %v1369_v34 = vld [vmem:[%s1641_s7 + $0xf4] ss:$8 sps:$4 sm:$0xff]  }
 0x111   : > { %1208 = vmatprep.subr.bf16.mxu1 %v1333_v12  ;;  %874 = vmatprep.subr.bf16.mxu0 %v1333_v12  ;;  %v1371_v42 = vld [vmem:[%s1641_s7 + $0xf0] ss:$8 sps:$4 sm:$0xff]   ;;  %v660_v19 = vld [vmem:[#allocation2 + $0x10] sm:$0xff]  ;;  %v700_v45 = vsub.s32 0, %v699_v29  ;;  %v704_v47 = vsub.s32 1, %v699_v29  ;;  %s1194_s30 = sshll.u32 (%p1541_p9), %s983_s27, 2 }
 0x112   : > { %v658_v48 = vld [vmem:[#allocation2] sm:$0xff]  ;;  %v663_v39 = vld [vmem:[#allocation2 + $0x28] sm:$0xff]  ;;  %s985_s18 = scalar_lea.vmem (%p1541_p9), %s1842_s5, %s1194_s30 }
 0x113   : > { %v662_v40 = vld [vmem:[#allocation2 + $0x20] sm:$0xff] }
 0x114   : > { %1224 = vmatpush1.bf16.msra.mxu1 %v1335_v13  ;;  %875 = vmatpush1.bf16.msra.mxu0 %v1335_v13  ;;  %v696_v46 = vld [vmem:[%s464_s6] sm:$0x3] }
 0x115   : > { %1209 = vmatprep.subr.bf16.mxu1 %v1336_v14  ;;  %876 = vmatprep.subr.bf16.mxu0 %v1336_v14  ;;  %v701_v50 = vrot.slane %v696_v46, %v700_v45  ;;  %v705_v51 = vrot.slane %v696_v46, %v704_v47 }
 0x118   : > { %1225 = vmatpush1.bf16.msra.mxu1 %v1338_v15  ;;  %877 = vmatpush1.bf16.msra.mxu0 %v1338_v15 }
 0x119   : > { %1210 = vmatprep.subr.bf16.mxu1 %v1339_v20  ;;  %878 = vmatprep.subr.bf16.mxu0 %v1339_v20 }
 0x11c   : > { %1226 = vmatpush1.bf16.msra.mxu1 %v1341_v21  ;;  %879 = vmatpush1.bf16.msra.mxu0 %v1341_v21 }
 0x11d   : > { %1211 = vmatprep.subr.bf16.mxu1 %v1342_v22  ;;  %880 = vmatprep.subr.bf16.mxu0 %v1342_v22 }
 0x120   : > { %1227 = vmatpush1.bf16.msra.mxu1 %v1344_v17  ;;  %881 = vmatpush1.bf16.msra.mxu0 %v1344_v17 }
 0x121   : > { %1212 = vmatprep.subr.bf16.mxu1 %v1345_v23  ;;  %882 = vmatprep.subr.bf16.mxu0 %v1345_v23 }
 0x124   : > { %1228 = vmatpush1.bf16.msra.mxu1 %v1347_v37  ;;  %883 = vmatpush1.bf16.msra.mxu0 %v1347_v37 }
 0x125   : > { %1213 = vmatprep.subr.bf16.mxu1 %v1348_v38  ;;  %884 = vmatprep.subr.bf16.mxu0 %v1348_v38 }
 0x128   : > { %1229 = vmatpush1.bf16.msra.mxu1 %v1350_v16  ;;  %885 = vmatpush1.bf16.msra.mxu0 %v1350_v16 }
 0x129   : > { %1214 = vmatprep.subr.bf16.mxu1 %v1351_v24  ;;  %886 = vmatprep.subr.bf16.mxu0 %v1351_v24 }
 0x12c   : > { %1230 = vmatpush1.bf16.msra.mxu1 %v1353_v25  ;;  %887 = vmatpush1.bf16.msra.mxu0 %v1353_v25 }
 0x12d   : > { %1215 = vmatprep.subr.bf16.mxu1 %v1354_v35  ;;  %888 = vmatprep.subr.bf16.mxu0 %v1354_v35 }
 0x130   : > { %1231 = vmatpush1.bf16.msra.mxu1 %v1356_v26  ;;  %889 = vmatpush1.bf16.msra.mxu0 %v1356_v26 }
 0x131   : > { %1216 = vmatprep.subr.bf16.mxu1 %v1357_v27  ;;  %890 = vmatprep.subr.bf16.mxu0 %v1357_v27 }
 0x134   : > { %1232 = vmatpush1.bf16.msra.mxu1 %v1359_v36  ;;  %891 = vmatpush1.bf16.msra.mxu0 %v1359_v36 }
 0x135   : > { %1217 = vmatprep.subr.bf16.mxu1 %v1360_v18  ;;  %892 = vmatprep.subr.bf16.mxu0 %v1360_v18 }
 0x138   : > { %1233 = vmatpush1.bf16.msra.mxu1 %v1362_v28  ;;  %893 = vmatpush1.bf16.msra.mxu0 %v1362_v28 }
 0x139   : > { %1218 = vmatprep.subr.bf16.mxu1 %v1363_v31  ;;  %894 = vmatprep.subr.bf16.mxu0 %v1363_v31 }
 0x13c   : > { %1234 = vmatpush1.bf16.msra.mxu1 %v1365_v32  ;;  %895 = vmatpush1.bf16.msra.mxu0 %v1365_v32 }
 0x13d   : > { %1219 = vmatprep.subr.bf16.mxu1 %v1366_v41  ;;  %896 = vmatprep.subr.bf16.mxu0 %v1366_v41 }
 0x140   : > { %1235 = vmatpush1.bf16.msra.mxu1 %v1368_v33  ;;  %897 = vmatpush1.bf16.msra.mxu0 %v1368_v33 }
 0x141   : > { %1220 = vmatprep.subr.bf16.mxu1 %v1369_v34  ;;  %898 = vmatprep.subr.bf16.mxu0 %v1369_v34 }
 0x144   : > { %1236 = vmatpush1.bf16.msra.mxu1 %v1371_v42  ;;  %899 = vmatpush1.bf16.msra.mxu0 %v1371_v42 }
 0x147   : > { %911 = vmatmul.mubr.bf16.vlgmr.msra.gmra.mrb[0].mxu1 %v660_v19  ;;  %901 = vmatmul.mubr.bf16.vlgmr.msra.gmra.mrb[0].mxu0 %v658_v48 }
 0x148   : > { %920 = vmatprep.mubr.bf16.mxu1 %v663_v39 }
 0x14f   : > { %921 = vmatmul.mubr.bf16.gmra.mrb[4].mxu1 %v662_v40 }
 0x21a   : > { %v912_v54 = vpop.f32.mrb[0].mxu1  ;;  %v902_v55 = vpop.f32.mrb[0].mxu0 }
 0x21b   : > { %v913_v56 = vadd.f32 %v912_v54, %v701_v50  ;;  %v914_v57 = vpop.f32.mrb[1].mxu1  ;;  %v903_v58 = vadd.f32 %v902_v55, %v701_v50  ;;  %v904_v52 = vpop.f32.mrb[1].mxu0 }
 0x21c   : > { %v915_v59 = vadd.f32 %v914_v57, %v705_v51  ;;  %v916_v60 = vpop.f32.mrb[2].mxu1  ;;  %v905_v53 = vadd.f32 %v904_v52, %v705_v51  ;;  %v906_v30 = vpop.f32.mrb[2].mxu0 }
 0x21d   : > { %v917_v61 = vadd.f32 %v916_v60, %v701_v50  ;;  %v918_v62 = vpop.f32.mrb[3].mxu1  ;;  %v907_v63 = vadd.f32 %v906_v30, %v701_v50  ;;  %v908_v0 = vpop.f32.mrb[3].mxu0 }
 0x21e   : > { %v1201_v1 = vpack.c.bf16 %v915_v59, %v913_v56  ;;  %v919_v2 = vadd.f32 %v918_v62, %v705_v51  ;;  %v1199_v3 = vpack.c.bf16 %v905_v53, %v903_v58  ;;  %v909_v4 = vadd.f32 %v908_v0, %v705_v51 }
 0x220   : > { %969 = vst [vmem:[%s1643_s1 + $0x10] sm:$0xff] %v1201_v1  ;;  %v1202_v6 = vpack.c.bf16 %v919_v2, %v917_v61  ;;  %967 = vst [vmem:[%s1643_s1] sm:$0xff] %v1199_v3  ;;  %v1200_v5 = vpack.c.bf16 %v909_v4, %v907_v63 }
 0x222   : > { %970 = vst [vmem:[%s1643_s1 + $0x18] sm:$0xff] %v1202_v6  ;;  %968 = vst [vmem:[%s1643_s1 + $0x8] sm:$0xff] %v1200_v5  ;;  %v922_v7 = vpop.f32.mrb[4].mxu1 }
 0x223   : > { %v923_v8 = vadd.f32 %v922_v7, %v701_v50  ;;  %v924_v9 = vpop.f32.mrb[5].mxu1 }
 0x224   : > { %v925_v10 = vadd.f32 %v924_v9, %v705_v51  ;;  %v926_v11 = vpop.f32.mrb[6].mxu1  ;;  %979 = sbr.rel (!%p1541_p9) target bundleno = 563 (0x233), region = 86 }
 0x225   : > { %v927_v12 = vadd.f32 %v926_v11, %v701_v50  ;;  %v928_v13 = vpop.f32.mrb[7].mxu1 }
 0x226   : > { %v1203_v14 = vpack.c.bf16 %v925_v10, %v923_v8  ;;  %v929_v15 = vadd.f32 %v928_v13, %v705_v51 }
 0x227   : > { %v1023_v21 = vld [vmem:[%s1643_s1] sm:$0xff] (%p1541_p9)  ;;  %v1027_v43 = vld [vmem:[%s1643_s1 + $0x10] sm:$0xff] (%p1541_p9) }
 0x228   : > { %971 = vst [vmem:[%s1643_s1 + $0x20] sm:$0xff] %v1203_v14  ;;  %v1204_v20 = vpack.c.bf16 %v929_v15, %v927_v12  ;;  %1024 = vst [vmem:[%s985_s18] sm:$0xff] (%p1541_p9), %v1023_v21 }
 0x229   : > { %v1025_v22 = vld [vmem:[%s1643_s1 + $0x8] sm:$0xff] (%p1541_p9)  ;;  %v1029_v44 = vld [vmem:[%s1643_s1 + $0x18] sm:$0xff] (%p1541_p9)  ;;  %1028 = vst [vmem:[%s985_s18 + $0x30] sm:$0xff] (%p1541_p9), %v1027_v43 }
 0x22a   : > { %972 = vst [vmem:[%s1643_s1 + $0x28] sm:$0xff] %v1204_v20  ;;  %1026 = vst [vmem:[%s985_s18 + $0x18] sm:$0xff] (%p1541_p9), %v1025_v22 }
 0x22b   : > { %1030 = vst [vmem:[%s985_s18 + $0x48] sm:$0xff] %v1029_v44 }
 0x22f   : > { %v1031_v17 = vld [vmem:[%s1643_s1 + $0x20] sm:$0xff] }
 0x230   : > { %1032 = vst [vmem:[%s985_s18 + $0x60] sm:$0xff] %v1031_v17 }
 0x231   : > { %v1033_v23 = vld [vmem:[%s1643_s1 + $0x28] sm:$0xff] }
 0x232   : > { %1034 = vst [vmem:[%s985_s18 + $0x78] sm:$0xff] %v1033_v23 }
 0x233 PF: > { %s15_s26 = sadd.s32 1, %s1442_s26   ;;  %s1846_s18 = smov %s1414_s19 }
 0x234   : > { %p12_p3 = scmp.ge.s32.totalorder %s15_s26, 8   ;;  %s1847_s19 = smov %s1546_s12 }
 0x235   : > { %s1848_s20 = smov %s1422_s21  ;;  %s1849_s21 = smov %s1535_s8 }
 0x236   : > { %s1850_s22 = smov %s1434_s24  ;;  %s1851_s23 = smov %s1438_s25 }
 0x237   : > { %s1852_s24 = smov %s1855_s28  ;;  %s1853_s25 = smov %s1859_s29 }
 0x238   :  { %14 = sbr.rel (!%p12_p3) target bundleno = 7 (0x7), region = 161 }

// kernel: lvsm_forward.16
= control target key start
LH: loop header
LB: loop body
LE: loop exit
PB: predicated region body
PF: predicated region fallthrough
CT: control target
= control target key end

     0   :  { %s1591_s0 = inlined_call_operand.vmem [shape: bf16[2,48,768], index: 0, kind: input, shape index: {}, may-alias: {0,1,2}]   ;;  %s1592_s1 = inlined_call_operand.vmem [shape: bf16[2,48,768], index: 1, kind: input, shape index: {}, may-alias: {0,1,2}]   ;;  %s1593_s2 = inlined_call_operand.vmem [shape: bf16[2,48,768], index: 2, kind: input, shape index: {}, may-alias: {0,1,2}]   ;;  %s1594_s3 = inlined_call_operand.vmem [shape: bf16[2,48,256], index: 3, kind: output, shape index: {}]  }
   0x1   :  { %1596 = sst [smem:[#allocation7_spill]] %s1594_s3 }
   0x2   :  { %s1338_s12 = smov 0   ;;  %s1340_s13 = smov 0  }
   0x3   :  { %s1342_s14 = smov 0   ;;  %s1344_s15 = smov 0  }
   0x4   :  { %s1346_s16 = smov 0   ;;  %s1348_s17 = smov 0  }
   0x5   :  { %s1350_s18 = smov 0   ;;  %s1352_s19 = smov 0  }
   0x6   :  { %s1354_s20 = smov 0   ;;  %s1356_s21 = smov 0  }
   0x7   :  { %s1358_s22 = smov 0  }
   0x8 LB: > { %s28_s24 = sadd.s32 1, %s1306_s20  ;;  %s32_s25 = sadd.s32 1, %s1310_s21  ;;  %s1314_s22 = sphi %s1358_s22, %s13_s22   ;;  %s1310_s21 = sphi %s1356_s21, %s1616_s21   ;;  %s1306_s20 = sphi %s1354_s20, %s1615_s20   ;;  %s1302_s19 = sphi %s1352_s19, %s1614_s19   ;;  %s1298_s18 = sphi %s1350_s18, %s1613_s18   ;;  %s1294_s17 = sphi %s1348_s17, %s1612_s17   ;;  %s1290_s16 = sphi %s1346_s16, %s1611_s16   ;;  %s1286_s15 = sphi %s1344_s15, %s1610_s15   ;;  %s1282_s14 = sphi %s1342_s14, %s1609_s14   ;;  %s1278_s13 = sphi %s1340_s13, %s1608_s13   ;;  %s1274_s12 = sphi %s1338_s12, %s1607_s12  }
   0x9   : > { %p30_p0 = scmp.ge.s32.totalorder %s28_s24, 2  ;;  %s43_s26 = sadd.s32 1, %s1294_s17 }
   0xa   : > { %p50_p1 = scmp.ne.s32.totalorder %s1294_s17, %s1290_s16  ;;  %p51_p2 = scmp.eq.s32.totalorder %s1314_s22, 0 }
   0xb   : > { %s1618_s24 = smov (%p30_p0, %s28_s24), 0  ;;  %s1620_s25 = smov (!%p30_p0, %s32_s25), %s1310_s21 }
   0xc   : > { %s39_s27 = ssub.s32 %s1306_s20, %s1618_s24  ;;  %p34_p3 = scmp.ge.s32.totalorder %s1620_s25, 2 }
   0xd   : > { %s66_s28 = sadd.s32 2, %s1306_s20  ;;  %p1411_p4 = por %p51_p2, %p50_p1 }
   0xe   : > { %s67_s30 = sadd.s32 2, %s1618_s24  ;;  %s1622_s25 = smov (%p34_p3, %s1620_s25), 0 }
   0xf   : > { %1598 = sst [smem:[#allocation6_spill]] %s1622_s25  ;;  %s69_s4 = ssub.s32 %s66_s28, %s67_s30 }
  0x10   : > { %s73_s5 = sadd.s32 1, %s1286_s15  ;;  %s36_s6 = ssub.s32 %s1310_s21, %s1622_s25 }
  0x11   : > { %p80_p5 = scmp.ne.s32.totalorder %s1286_s15, %s1282_s14  ;;  %s40_s7 = sor.u32 %s39_s27, %s36_s6 }
  0x12   : > { %s70_s8 = sor.u32 %s69_s4, %s36_s6  ;;  %p41_p6 = scmp.eq.s32.totalorder %s40_s7, 0 }
  0x13   : > { %p71_p7 = scmp.eq.s32.totalorder %s70_s8, 0  ;;  %p1425_p8 = por %p80_p5, %p51_p2 }
  0x14   : > { %s96_s10 = sadd.s32 4, %s1306_s20  ;;  %s97_s30 = sadd.s32 4, %s1618_s24 }
  0x15   : > { %s1431_s11 = scalar_select %p41_p6, %s1294_s17, %s43_s26  }
  0x16   : > { %s1434_s28 = scalar_select %p71_p7, %s1286_s15, %s73_s5  }
  0x17   : > { %s103_s23 = sadd.s32 1, %s1278_s13  ;;  %s99_s25 = ssub.s32 %s96_s10, %s97_s30 }
  0x18   : > { %p110_p9 = scmp.ne.s32.totalorder %s1278_s13, %s1274_s12  ;;  %s100_s27 = sor.u32 %s99_s25, %s36_s6 }
  0x19   : > { %s1600_s3 = sadd.s32 4294967295, %s1314_s22   ;;  %p101_p11 = scmp.eq.s32.totalorder %s100_s27, 0 }
  0x1a   : > { %p144_p10 = scmp.eq.s32.totalorder %s1600_s3, 3  ;;  %p1444_p12 = por %p110_p9, %p51_p2 }
  0x1b   : > { %s1456_s26 = scalar_select %p101_p11, %s1278_s13, %s103_s23  }
  0x1c   : > { %p1451_p13 = por %p144_p10, %p50_p1  ;;  %p988_p0 = scmp.ge.s32.totalorder %s1314_s22, 4 }
  0x1e   : > { %166 = sbr.rel (%p988_p0) target bundleno = 70 (0x46), region = 16 }
  0x25   : > { %169 = sbr.rel (!%p1411_p4) target bundleno = 48 (0x30), region = 20  ;;  %s171_s3 = sand.u32 (%p1411_p4), 1, %s1294_s17  }
  0x26   : > { %s1098_s25 = smul.u32 (%p1411_p4), 36, %s1310_s21 }
  0x27   : > { %s1097_s5 = smul.u32 (%p1411_p4), 24, %s171_s3 }
  0x28   : > { %s178_s6 = sadd.s32 (%p1411_p4), %s1306_s20, %s1098_s25 }
  0x29   : > { %s989_s8 = sshll.u32 (%p1411_p4), %s178_s6, 2  ;;  %s173_s23 = scalar_lea.vmem (%p1411_p4), [#allocation2], %s1097_s5 }
  0x2a   : > { %s180_s27 = scalar_lea.vmem (%p1411_p4), %s1591_s0, %s989_s8 }
  0x2b   : > { %v196_v0 = vld [vmem:[%s180_s27] sm:$0xf] (%p1411_p4)  ;;  %v198_v1 = vld [vmem:[%s180_s27 + $0x18] sm:$0xf] (%p1411_p4)  ;;  %v200_v2 = vld [vmem:[%s180_s27 + $0x30] sm:$0xf] (%p1411_p4) }
  0x2c   : > { %197 = vst [vmem:[%s173_s23] sm:$0xf] %v196_v0  ;;  %199 = vst [vmem:[%s173_s23 + $0x4] sm:$0xf] %v198_v1  ;;  %v202_v3 = vld [vmem:[%s180_s27 + $0x48] sm:$0xf] }
  0x2d   : > { %201 = vst [vmem:[%s173_s23 + $0x8] sm:$0xf] %v200_v2  ;;  %v204_v4 = vld [vmem:[%s180_s27 + $0x60] sm:$0xf]  ;;  %v206_v5 = vld [vmem:[%s180_s27 + $0x78] sm:$0xf] }
  0x2e   : > { %203 = vst [vmem:[%s173_s23 + $0xc] sm:$0xf] %v202_v3  ;;  %205 = vst [vmem:[%s173_s23 + $0x10] sm:$0xf] %v204_v4 }
  0x2f   : > { %207 = vst [vmem:[%s173_s23 + $0x14] sm:$0xf] %v206_v5 }
  0x30 PF: > { %242 = sbr.rel (!%p1425_p8) target bundleno = 59 (0x3b), region = 61  ;;  %s244_s29 = sand.u32 (%p1425_p8), 1, %s1286_s15  }
  0x31   : > { %s886_s3 = smul.u32 (%p1425_p8), 36, %s1310_s21 }
  0x32   : > { %s1099_s25 = smul.u32 (%p1425_p8), 24, %s244_s29 }
  0x33   : > { %s887_s5 = sadd.s32 (%p1425_p8), %s1306_s20, %s886_s3 }
  0x34   : > { %s990_s6 = sshll.u32 (%p1425_p8), %s887_s5, 2  ;;  %s246_s27 = scalar_lea.vmem (%p1425_p8), [#allocation3], %s1099_s25 }
  0x35   : > { %s889_s30 = scalar_lea.vmem (%p1425_p8), %s1592_s1, %s990_s6 }
  0x36   : > { %v991_v6 = vld [vmem:[%s889_s30 + $0x8] sm:$0xf] (%p1425_p8)  ;;  %v992_v7 = vld [vmem:[%s889_s30 + $0x20] sm:$0xf] (%p1425_p8)  ;;  %v993_v8 = vld [vmem:[%s889_s30 + $0x38] sm:$0xf] (%p1425_p8) }
  0x37   : > { %268 = vst [vmem:[%s246_s27] sm:$0xf] %v991_v6  ;;  %270 = vst [vmem:[%s246_s27 + $0x4] sm:$0xf] %v992_v7  ;;  %v994_v9 = vld [vmem:[%s889_s30 + $0x50] sm:$0xf] }
  0x38   : > { %272 = vst [vmem:[%s246_s27 + $0x8] sm:$0xf] %v993_v8  ;;  %v995_v10 = vld [vmem:[%s889_s30 + $0x68] sm:$0xf]  ;;  %v996_v11 = vld [vmem:[%s889_s30 + $0x80] sm:$0xf] }
  0x39   : > { %274 = vst [vmem:[%s246_s27 + $0xc] sm:$0xf] %v994_v9  ;;  %276 = vst [vmem:[%s246_s27 + $0x10] sm:$0xf] %v995_v10 }
  0x3a   : > { %278 = vst [vmem:[%s246_s27 + $0x14] sm:$0xf] %v996_v11 }
  0x3b PF: > { %313 = sbr.rel (!%p1444_p12) target bundleno = 70 (0x46), region = 102  ;;  %s315_s9 = sand.u32 (%p1444_p12), 1, %s1278_s13  }
  0x3c   : > { %s893_s23 = smul.u32 (%p1444_p12), 36, %s1310_s21 }
  0x3d   : > { %s1100_s29 = smul.u32 (%p1444_p12), 24, %s315_s9 }
  0x3e   : > { %s894_s3 = sadd.s32 (%p1444_p12), %s1306_s20, %s893_s23 }
  0x3f   : > { %s997_s25 = sshll.u32 (%p1444_p12), %s894_s3, 2  ;;  %s317_s10 = scalar_lea.vmem (%p1444_p12), [#allocation4], %s1100_s29 }
  0x40   : > { %s896_s8 = scalar_lea.vmem (%p1444_p12), %s1593_s2, %s997_s25 }
  0x41   : > { %v998_v12 = vld [vmem:[%s896_s8 + $0x10] sm:$0xf] (%p1444_p12)  ;;  %v999_v13 = vld [vmem:[%s896_s8 + $0x28] sm:$0xf] (%p1444_p12)  ;;  %v1000_v14 = vld [vmem:[%s896_s8 + $0x40] sm:$0xf] (%p1444_p12) }
  0x42   : > { %339 = vst [vmem:[%s317_s10] sm:$0xf] %v998_v12  ;;  %341 = vst [vmem:[%s317_s10 + $0x4] sm:$0xf] %v999_v13  ;;  %v1001_v15 = vld [vmem:[%s896_s8 + $0x58] sm:$0xf] }
  0x43   : > { %343 = vst [vmem:[%s317_s10 + $0x8] sm:$0xf] %v1000_v14  ;;  %v1002_v16 = vld [vmem:[%s896_s8 + $0x70] sm:$0xf]  ;;  %v1003_v17 = vld [vmem:[%s896_s8 + $0x88] sm:$0xf] }
  0x44   : > { %345 = vst [vmem:[%s317_s10 + $0xc] sm:$0xf] %v1001_v15  ;;  %347 = vst [vmem:[%s317_s10 + $0x10] sm:$0xf] %v1002_v16 }
  0x45   : > { %349 = vst [vmem:[%s317_s10 + $0x14] sm:$0xf] %v1003_v17 }
  0x46 PF: > { %p1004_p1 = scmp.ge.s32.totalorder %s1314_s22, 1  ;;  %p383_p2 = scmp.lt.s32.totalorder %s1314_s22, 5 }
  0x48   : > { %p384_p3 = pnand %p1004_p1, %p383_p2 }
  0x49   : > { %s397_s4 = sand.u32 (!%p384_p3), 1, %s1282_s14   ;;  %s390_s30 = sand.u32 (!%p384_p3), 1, %s1290_s16   ;;  %v1316_v18 = vmov (!%p384_p3), 0.0   ;;  %vm1317_vm0 = vmmov (!%p384_p3), 0   ;;  %v557_v25 = vlaneseq (!%p384_p3)  ;;  %vm601_vm4 = vcmask (!%p384_p3), 392192  }
  0x4a   : > { %387 = sbr.rel (%p384_p3) target bundleno = 724 (0x2d4), region = 143  ;;  %1061 = vmatprep.subr.bf16.mxu0 (!%p384_p3), %v1316_v18  ;;  %1067 = vmatprep.mubr.msk.bf16.mxu0 (!%p384_p3), %vm1317_vm0, %v1316_v18  ;;  %s404_s16 = sand.u32 (!%p384_p3), 1, %s1274_s12  }
  0x4b   : > { %s1102_s27 = smul.u32 (!%p384_p3), 24, %s397_s4  ;;  %1079 = vmatprep.subr.bf16.mxu1 (!%p384_p3), %v1316_v18  ;;  %1085 = vmatprep.mubr.msk.bf16.mxu1 (!%p384_p3), %vm1317_vm0, %v1316_v18  ;;  %v558_v26 = vand.u32 (!%p384_p3), 127, %v557_v25 }
  0x4c   : > { %s1490_s9 = smul.u32 (!%p384_p3), 24, %s390_s30 }
  0x4d   : > { %s399_s23 = scalar_lea.vmem (!%p384_p3), [#allocation3], %s1102_s27  ;;  %vm559_vm1 = vcmp.lt.s32.totalorder (!%p384_p3), %v558_v26, 32  ;;  %vm586_vm2 = vcmp.lt.s32.totalorder (!%p384_p3), %v558_v26, 48  ;;  %s1103_s29 = smul.u32 (!%p384_p3), 24, %s404_s16 }
  0x4e   : > { %v1195_v19 = vld [vmem:[%s399_s23] sm:$0xff] (!%p384_p3)   ;;  %s392_s14 = scalar_lea.vmem (!%p384_p3), [#allocation2], %s1490_s9  ;;  %v1196_v20 = vld [vmem:[%s399_s23 + $0x8] sm:$0xff] (!%p384_p3)   ;;  %v1197_v21 = vld [vmem:[%s399_s23 + $0x10] sm:$0xff] (!%p384_p3)   ;;  %s1540_s12 = scalar_lea.vmem (!%p384_p3), [#allocation5], %s1490_s9 }
  0x4f   : > { %1062 = vmatpush3.bf16.xpose.msra.mxu0 (!%p384_p3), %v1195_v19  ;;  %v1198_v22 = vld [vmem:[%s392_s14] sm:$0xff] (!%p384_p3)   ;;  %v1199_v23 = vld [vmem:[%s392_s14 + $0x8] sm:$0xff] (!%p384_p3)   ;;  %v1200_v24 = vld [vmem:[%s392_s14 + $0x10] sm:$0xff] (!%p384_p3)   ;;  %s406_s3 = scalar_lea.vmem (!%p384_p3), [#allocation4], %s1103_s29 }
  0x50   : > { %1063 = vmatprep.subr.bf16.mxu0 (!%p384_p3), %v1316_v18  ;;  %vm1503_vm3 = vmand (!%p384_p3), %vm559_vm1, %vm586_vm2  ;;  %v1201_v58 = vld [vmem:[%s406_s3] sm:$0xff] (!%p384_p3)   ;;  %v1202_v59 = vld [vmem:[%s406_s3 + $0x8] sm:$0xff] (!%p384_p3)  }
  0x51   : > { %1080 = vmatpush3.bf16.msra.mxu1 %v1201_v58  ;;  %v1203_v60 = vld [vmem:[%s406_s3 + $0x10] sm:$0xff]   ;;  %s1104_s25 = smul.u32 (%p1451_p13), 12, %s1302_s19  ;;  %s1605_s10 = sld [smem:[#allocation7_spill]] (%p1451_p13) }
  0x52   : > { %1081 = vmatprep.subr.bf16.mxu1 %v1316_v18 }
  0x53   : > { %s802_s5 = sadd.s32 (%p1451_p13), %s1298_s18, %s1104_s25 }
  0x54   : > { %s1023_s6 = sshll.u32 (%p1451_p13), %s802_s5, 2 }
  0x55   : > { %1082 = vmatpush3.bf16.msra.mxu1 %v1202_v59 }
  0x56   : > { %1083 = vmatprep.subr.bf16.mxu1 %v1316_v18 }
  0x57   : > { %1064 = vmatpush3.bf16.xpose.msra.mxu0 %v1196_v20  ;;  %s804_s4 = scalar_lea.vmem (%p1451_p13), %s1605_s10, %s1023_s6 }
  0x58   : > { %1065 = vmatprep.subr.bf16.mxu0 %v1316_v18 }
  0x59   : > { %1084 = vmatpush3.bf16.msra.mxu1 %v1203_v60 }
  0x5f   : > { %1066 = vmatpush3.bf16.xpose.msra.mxu0 %v1197_v21 }
  0x66   : > { %1068 = vmatmul.mubr.bf16.vlgmr.msra.gmra.mrb[0].mxu0 %v1198_v22 }
  0x67   : > { %1071 = vmatprep.mubr.msk.bf16.mxu0 %vm1317_vm0, %v1316_v18 }
  0x6e   : > { %1072 = vmatmul.mubr.bf16.gmra.mrb[4].mxu0 %v1199_v23 }
  0x6f   : > { %1075 = vmatprep.mubr.msk.bf16.mxu0 %vm1317_vm0, %v1316_v18 }
  0x76   : > { %1076 = vmatmul.mubr.bf16.gmra.mrb[8].mxu0 %v1200_v24 }
 0x139   : > { %v521_v27 = vpop.f32.mrb[0].mxu0 }
 0x13a   : > { %v544_v29 = vmul.f32 0.088388346, %v521_v27  ;;  %v1069_v30 = vpop.f32.mrb[1].mxu0 }
 0x13b   : > { %v524_v31 = vpop.f32.mrb[2].mxu0 }
 0x13c   : > { %v545_v32 = vmul.f32 0.088388346, %v524_v31  ;;  %v1070_v33 = vpop.f32.mrb[3].mxu0  ;;  %v595_v34 = vsel %vm1503_vm3, %v544_v29, -1e+30 }
 0x13d   : > { %v602_v35 = vsel %vm601_vm4, %v595_v34, -inf }
 0x13e   : > { %603 = vmax.xlane.f32.xlu0 %v602_v35  ;;  %v596_v36 = vsel %vm1503_vm3, %v545_v32, -1e+30 }
 0x13f   : > { %v605_v38 = vsel %vm601_vm4, %v596_v36, -inf }
 0x141   : > { %v529_v37 = vpop.f32.mrb[4].mxu0 }
 0x142   : > { %v546_v39 = vmul.f32 0.088388346, %v529_v37  ;;  %606 = vmax.xlane.f32.xlu0 %v605_v38  ;;  %v1073_v40 = vpop.f32.mrb[5].mxu0 }
 0x143   : > { %v532_v41 = vpop.f32.mrb[6].mxu0 }
 0x144   : > { %v547_v42 = vmul.f32 0.088388346, %v532_v41  ;;  %v1074_v43 = vpop.f32.mrb[7].mxu0  ;;  %v597_v44 = vsel %vm1503_vm3, %v546_v39, -1e+30 }
 0x145   : > { %v608_v45 = vsel %vm601_vm4, %v597_v44, -inf }
 0x146   : > { %609 = vmax.xlane.f32.xlu1 %v608_v45  ;;  %v598_v46 = vsel %vm1503_vm3, %v547_v42, -1e+30 }
 0x147   : > { %v611_v48 = vsel %vm601_vm4, %v598_v46, -inf }
 0x149   : > { %v537_v47 = vpop.f32.mrb[8].mxu0 }
 0x14a   : > { %v548_v49 = vmul.f32 0.088388346, %v537_v47  ;;  %612 = vmax.xlane.f32.xlu1 %v611_v48  ;;  %v1077_v50 = vpop.f32.mrb[9].mxu0 }
 0x14b   : > { %v540_v51 = vpop.f32.mrb[10].mxu0 }
 0x14c   : > { %v549_v52 = vmul.f32 0.088388346, %v540_v51  ;;  %v1078_v53 = vpop.f32.mrb[11].mxu0  ;;  %v599_v54 = vsel %vm586_vm2, %v548_v49, -1e+30 }
 0x14d   : > { %v614_v55 = vsel %vm601_vm4, %v599_v54, -inf }
 0x14e   : > { %615 = vmax.xlane.f32.xlu0 %v614_v55  ;;  %v600_v56 = vsel %vm586_vm2, %v549_v52, -1e+30 }
 0x14f   : > { %v617_v57 = vsel %vm601_vm4, %v600_v56, -inf }
 0x150   : > { %618 = vmax.xlane.f32.xlu1 %v617_v57 }
 0x1cb   : > { %v604_v61 = vpop.xlane.xlu0 %603 }
 0x1cc   : > { %v620_v62 = vsub.f32 %v595_v34, %v604_v61 }
 0x1ce   : > { %v626_v63 = vmul.f32 1.442695, %v620_v62 }
 0x1cf   : > { %v607_v0 = vpop.xlane.xlu0 %606 }
 0x1d0   : > { %1204 = vpow2.f32 %v626_v63  ;;  %v621_v1 = vsub.f32 %v596_v36, %v607_v0 }
 0x1d2   : > { %v628_v2 = vmul.f32 1.442695, %v621_v1 }
 0x1d3   : > { %v610_v3 = vpop.xlane.xlu1 %609 }
 0x1d4   : > { %1206 = vpow2.f32 %v628_v2  ;;  %v622_v4 = vsub.f32 %v597_v44, %v610_v3 }
 0x1d6   : > { %v630_v5 = vmul.f32 1.442695, %v622_v4 }
 0x1d7   : > { %v613_v6 = vpop.xlane.xlu1 %612 }
 0x1d8   : > { %1208 = vpow2.f32 %v630_v5  ;;  %v623_v7 = vsub.f32 %v598_v46, %v613_v6 }
 0x1da   : > { %v1205_v8 = vpop.eup %1204  ;;  %v632_v9 = vmul.f32 1.442695, %v623_v7 }
 0x1db   : > { %v616_v10 = vpop.xlane.xlu0 %615  ;;  %v638_v11 = vsel %vm601_vm4, %v1205_v8, 0.0 }
 0x1dc   : > { %1210 = vpow2.f32 %v632_v9  ;;  %v624_v12 = vsub.f32 %v599_v54, %v616_v10  ;;  %639 = vadd.xlane.f32.xlu0 %v638_v11 }
 0x1dd   : > { %v619_v13 = vpop.xlane.xlu1 %618 }
 0x1de   : > { %v1207_v14 = vpop.eup %1206  ;;  %v634_v15 = vmul.f32 1.442695, %v624_v12  ;;  %v625_v16 = vsub.f32 %v600_v56, %v619_v13 }
 0x1df   : > { %v641_v17 = vsel %vm601_vm4, %v1207_v14, 0.0  ;;  %v656_v19 = vpack.c.bf16 %v1207_v14, %v1205_v8 }
 0x1e0   : > { %1212 = vpow2.f32 %v634_v15  ;;  %v636_v20 = vmul.f32 1.442695, %v625_v16  ;;  %642 = vadd.xlane.f32.xlu1 %v641_v17 }
 0x1e1   : > { %1086 = vmatmul.mubr.msk.bf16.vlgmr.msra.gmra.mrb[0].mxu1 %vm601_vm4, %v656_v19 }
 0x1e2   : > { %v1209_v21 = vpop.eup %1208  ;;  %1214 = vpow2.f32 %v636_v20  ;;  %1089 = vmatprep.mubr.msk.bf16.mxu1 %vm1317_vm0, %v1316_v18 }
 0x1e3   : > { %v644_v22 = vsel %vm601_vm4, %v1209_v21, 0.0 }
 0x1e4   : > { %645 = vadd.xlane.f32.xlu0 %v644_v22 }
 0x1e6   : > { %v1211_v23 = vpop.eup %1210 }
 0x1e7   : > { %v647_v24 = vsel %vm601_vm4, %v1211_v23, 0.0  ;;  %v657_v25 = vpack.c.bf16 %v1211_v23, %v1209_v21 }
 0x1e8   : > { %648 = vadd.xlane.f32.xlu1 %v647_v24 }
 0x1e9   : > { %1090 = vmatmul.mubr.msk.bf16.gmra.mrb[4].mxu1 %vm601_vm4, %v657_v25 }
 0x1ea   : > { %v1213_v26 = vpop.eup %1212  ;;  %1093 = vmatprep.mubr.msk.bf16.mxu1 %vm1317_vm0, %v1316_v18 }
 0x1eb   : > { %v650_v27 = vsel %vm601_vm4, %v1213_v26, 0.0 }
 0x1ec   : > { %v1215_v28 = vpop.eup %1214  ;;  %651 = vadd.xlane.f32.xlu0 %v650_v27 }
 0x1ed   : > { %v653_v29 = vsel %vm601_vm4, %v1215_v28, 0.0  ;;  %v658_v30 = vpack.c.bf16 %v1215_v28, %v1213_v26 }
 0x1ee   : > { %654 = vadd.xlane.f32.xlu1 %v653_v29 }
 0x1f1   : > { %1094 = vmatmul.mubr.msk.bf16.gmra.mrb[8].mxu1 %vm601_vm4, %v658_v30 }
 0x269   : > { %v640_v31 = vpop.xlane.xlu0 %639 }
 0x26a   : > { %1216 = vrcp.f32 %v640_v31 }
 0x26d   : > { %v643_v32 = vpop.xlane.xlu1 %642 }
 0x26e   : > { %1218 = vrcp.f32 %v643_v32 }
 0x271   : > { %v646_v33 = vpop.xlane.xlu0 %645 }
 0x272   : > { %1220 = vrcp.f32 %v646_v33 }
 0x274   : > { %v1217_v35 = vpop.eup %1216 }
 0x275   : > { %v649_v34 = vpop.xlane.xlu1 %648 }
 0x276   : > { %1222 = vrcp.f32 %v649_v34 }
 0x278   : > { %v1219_v37 = vpop.eup %1218 }
 0x279   : > { %v652_v42 = vpop.xlane.xlu0 %651 }
 0x27a   : > { %1224 = vrcp.f32 %v652_v42 }
 0x27b   : > { %v655_v43 = vpop.xlane.xlu1 %654 }
 0x27c   : > { %1226 = vrcp.f32 %v655_v43  ;;  %v1221_v46 = vpop.eup %1220 }
 0x280   : > { %v1223_v48 = vpop.eup %1222 }
 0x284   : > { %v1225_v55 = vpop.eup %1224 }
 0x286   : > { %v1227_v57 = vpop.eup %1226 }
 0x2b4   : > { %v726_v18 = vpop.f32.mrb[0].mxu1 }
 0x2b5   : > { %v1087_v36 = vpop.f32.mrb[1].mxu1  ;;  %v755_v39 = vmul.f32 %v1217_v35, %v726_v18 }
 0x2b6   : > { %v729_v38 = vpop.f32.mrb[2].mxu1 }
 0x2b7   : > { %v756_v40 = vmul.f32 %v1219_v37, %v729_v38  ;;  %v1088_v41 = vpop.f32.mrb[3].mxu1 }
 0x2b9   : > { %v1035_v44 = vpack.c.bf16 %v756_v40, %v755_v39 }
 0x2bb   : > { %1036 = vst [vmem:[%s1540_s12] sm:$0xff] %v1035_v44  }
 0x2bc   : > { %v734_v45 = vpop.f32.mrb[4].mxu1 }
 0x2bd   : > { %v1091_v47 = vpop.f32.mrb[5].mxu1  ;;  %v757_v50 = vmul.f32 %v1221_v46, %v734_v45 }
 0x2be   : > { %v737_v49 = vpop.f32.mrb[6].mxu1 }
 0x2bf   : > { %v758_v51 = vmul.f32 %v1223_v48, %v737_v49  ;;  %v1092_v52 = vpop.f32.mrb[7].mxu1 }
 0x2c1   : > { %v1040_v53 = vpack.c.bf16 %v758_v51, %v757_v50 }
 0x2c2   : > { %v820_v63 = vld [vmem:[%s1540_s12] sm:$0xf] (%p1451_p13)  ;;  %v822_v0 = vld [vmem:[%s1540_s12 + $0x4] sm:$0xf] (%p1451_p13) }
 0x2c3   : > { %1047 = vst [vmem:[%s1540_s12 + $0x8] sm:$0xff] %v1040_v53   ;;  %821 = vst [vmem:[%s804_s4] sm:$0xf] (%p1451_p13), %v820_v63 }
 0x2c4   : > { %v742_v54 = vpop.f32.mrb[8].mxu1  ;;  %823 = vst [vmem:[%s804_s4 + $0x8] sm:$0xf] (%p1451_p13), %v822_v0 }
 0x2c5   : > { %v1095_v56 = vpop.f32.mrb[9].mxu1  ;;  %v759_v59 = vmul.f32 %v1225_v55, %v742_v54  ;;  %797 = sbr.rel (!%p1451_p13) target bundleno = 724 (0x2d4), region = 159 }
 0x2c6   : > { %v745_v58 = vpop.f32.mrb[10].mxu1 }
 0x2c7   : > { %v760_v60 = vmul.f32 %v1227_v57, %v745_v58  ;;  %v1096_v61 = vpop.f32.mrb[11].mxu1 }
 0x2c9   : > { %v1045_v62 = vpack.c.bf16 %v760_v60, %v759_v59 }
 0x2ca   : > { %v824_v1 = vld [vmem:[%s1540_s12 + $0x8] sm:$0xf] (%p1451_p13)  ;;  %v826_v2 = vld [vmem:[%s1540_s12 + $0xc] sm:$0xf] (%p1451_p13) }
 0x2cb   : > { %1048 = vst [vmem:[%s1540_s12 + $0x10] sm:$0xff] %v1045_v62   ;;  %825 = vst [vmem:[%s804_s4 + $0x10] sm:$0xf] (%p1451_p13), %v824_v1 }
 0x2cc   : > { %827 = vst [vmem:[%s804_s4 + $0x18] sm:$0xf] %v826_v2 }
 0x2d2   : > { %v828_v3 = vld [vmem:[%s1540_s12 + $0x10] sm:$0xf]  ;;  %v830_v4 = vld [vmem:[%s1540_s12 + $0x14] sm:$0xf] }
 0x2d3   : > { %829 = vst [vmem:[%s804_s4 + $0x20] sm:$0xf] %v828_v3  ;;  %831 = vst [vmem:[%s804_s4 + $0x28] sm:$0xf] %v830_v4 }
 0x2d4 PF: > { %s13_s22 = sadd.s32 1, %s1314_s22   ;;  %s1606_s30 = sld [smem:[#allocation6_spill]] }
 0x2d5   : > { %p10_p4 = scmp.ge.s32.totalorder %s13_s22, 6   ;;  %s1607_s12 = smov %s1278_s13 }
 0x2d6   : > { %s1608_s13 = smov %s1456_s26  ;;  %s1609_s14 = smov %s1286_s15 }
 0x2d7   : > { %s1610_s15 = smov %s1434_s28  ;;  %s1611_s16 = smov %s1294_s17 }
 0x2d8   : > { %s1612_s17 = smov %s1431_s11  ;;  %s1613_s18 = smov %s1306_s20 }
 0x2d9   : > { %s1614_s19 = smov %s1310_s21  ;;  %s1615_s20 = smov %s1618_s24 }
 0x2da   : > { %s1616_s21 = smov %s1606_s30  ;;  %12 = sbr.rel (!%p10_p4) target bundleno = 8 (0x8), region = 247 }

// kernel: lvsm_forward.17
= control target key start
LH: loop header
LB: loop body
LE: loop exit
PB: predicated region body
PF: predicated region fallthrough
CT: control target
= control target key end

     0   :  { %s1102_s15 = smov 0   ;;  %s1104_s16 = smov 0   ;;  %s1269_s0 = inlined_call_operand.vmem [shape: bf16[96,256], index: 0, kind: input, shape index: {}]   ;;  %s1270_s1 = inlined_call_operand.vmem [shape: bf16[256,256], index: 1, kind: input, shape index: {}]   ;;  %s1271_s2 = inlined_call_operand.vmem [shape: f32[1,256], index: 2, kind: input, shape index: {}]   ;;  %s1272_s3 = inlined_call_operand.vmem [shape: bf16[96,256], index: 3, kind: input, shape index: {}]   ;;  %s1273_s4 = inlined_call_operand.vmem [shape: bf16[96,256], index: 4, kind: output, shape index: {}]  }
   0x1   :  { %s1106_s17 = smov 0  }
   0x2 LB: > { %s33_s18 = sadd.s32 1, %s1071_s16  ;;  %p878_p0 = scmp.ge.s32.totalorder %s1075_s17, 1  ;;  %s1075_s17 = sphi %s1106_s17, %s14_s17   ;;  %s1071_s16 = sphi %s1104_s16, %s1275_s16   ;;  %s1067_s15 = sphi %s1102_s15, %s1274_s15  }
   0x3   : > { %p35_p1 = scmp.ge.s32.totalorder %s33_s18, 2  ;;  %p240_p2 = scmp.lt.s32.totalorder %s1075_s17, 3 }
   0x5   : > { %s1277_s18 = smov (%p35_p1, %s33_s18), 0  ;;  %p241_p3 = pnand %p878_p0, %p240_p2 }
   0x6   : > { %v996_v0 = vld [vmem:[%s1270_s1 + $0x4] ss:$8 sps:$4 sm:$0xff] (!%p241_p3)   ;;  %v998_v1 = vld [vmem:[%s1270_s1] ss:$8 sps:$4 sm:$0xff] (!%p241_p3)   ;;  %v999_v2 = vld [vmem:[%s1270_s1 + $0x14] ss:$8 sps:$4 sm:$0xff] (!%p241_p3)   ;;  %v393_v38 = vlaneseq (!%p241_p3) }
   0x7   : > { %244 = sbr.rel (%p241_p3) target bundleno = 301 (0x12d), region = 36  ;;  %940 = vmatprep.subr.bf16.mxu1 (!%p241_p3), %v996_v0  ;;  %593 = vmatprep.subr.bf16.mxu0 (!%p241_p3), %v996_v0  ;;  %v1001_v3 = vld [vmem:[%s1270_s1 + $0x10] ss:$8 sps:$4 sm:$0xff] (!%p241_p3)   ;;  %v1002_v4 = vld [vmem:[%s1270_s1 + $0x24] ss:$8 sps:$4 sm:$0xff] (!%p241_p3)  }
   0x8   : > { %956 = vmatpush1.bf16.msra.mxu1 (!%p241_p3), %v998_v1  ;;  %594 = vmatpush1.bf16.msra.mxu0 (!%p241_p3), %v998_v1  ;;  %s300_s29 = smul.u32 (!%p241_p3), 6, %s1067_s15  ;;  %v1004_v5 = vld [vmem:[%s1270_s1 + $0x20] ss:$8 sps:$4 sm:$0xff] (!%p241_p3)   ;;  %v1005_v6 = vld [vmem:[%s1270_s1 + $0x34] ss:$8 sps:$4 sm:$0xff] (!%p241_p3)   ;;  %v394_v39 = vshrl.u32 (!%p241_p3), %v393_v38, 7 }
   0x9   : > { %941 = vmatprep.subr.bf16.mxu1 (!%p241_p3), %v999_v2  ;;  %595 = vmatprep.subr.bf16.mxu0 (!%p241_p3), %v999_v2  ;;  %v1007_v7 = vld [vmem:[%s1270_s1 + $0x30] ss:$8 sps:$4 sm:$0xff] (!%p241_p3)   ;;  %v1008_v8 = vld [vmem:[%s1270_s1 + $0x44] ss:$8 sps:$4 sm:$0xff] (!%p241_p3)   ;;  %v1010_v9 = vld [vmem:[%s1270_s1 + $0x40] ss:$8 sps:$4 sm:$0xff] (!%p241_p3)  }
   0xa   : > { %p302_p4 = scmp.lt.s32.totalorder (!%p241_p3), %s300_s29, 11  ;;  %v1011_v10 = vld [vmem:[%s1270_s1 + $0x54] ss:$8 sps:$4 sm:$0xff] (!%p241_p3)   ;;  %v1013_v11 = vld [vmem:[%s1270_s1 + $0x50] ss:$8 sps:$4 sm:$0xff] (!%p241_p3)   ;;  %v395_v40 = vsub.s32 (!%p241_p3), 0, %v394_v39 }
   0xb   : > { %v1014_v12 = vld [vmem:[%s1270_s1 + $0x64] ss:$8 sps:$4 sm:$0xff] (!%p241_p3)   ;;  %v1016_v14 = vld [vmem:[%s1270_s1 + $0x60] ss:$8 sps:$4 sm:$0xff] (!%p241_p3)   ;;  %v1017_v16 = vld [vmem:[%s1270_s1 + $0x74] ss:$8 sps:$4 sm:$0xff] (!%p241_p3)  }
   0xc   : > { %957 = vmatpush1.bf16.msra.mxu1 (!%p241_p3), %v1001_v3  ;;  %596 = vmatpush1.bf16.msra.mxu0 (!%p241_p3), %v1001_v3  ;;  %v1019_v17 = vld [vmem:[%s1270_s1 + $0x70] ss:$8 sps:$4 sm:$0xff] (!%p241_p3)   ;;  %v1020_v18 = vld [vmem:[%s1270_s1 + $0x84] ss:$8 sps:$4 sm:$0xff] (!%p241_p3)   ;;  %v1022_v19 = vld [vmem:[%s1270_s1 + $0x80] ss:$8 sps:$4 sm:$0xff] (!%p241_p3)  }
   0xd   : > { %942 = vmatprep.subr.bf16.mxu1 (!%p241_p3), %v1002_v4  ;;  %597 = vmatprep.subr.bf16.mxu0 (!%p241_p3), %v1002_v4  ;;  %v1023_v20 = vld [vmem:[%s1270_s1 + $0x94] ss:$8 sps:$4 sm:$0xff] (!%p241_p3)   ;;  %v1025_v21 = vld [vmem:[%s1270_s1 + $0x90] ss:$8 sps:$4 sm:$0xff] (!%p241_p3)   ;;  %v1026_v22 = vld [vmem:[%s1270_s1 + $0xa4] ss:$8 sps:$4 sm:$0xff] (!%p241_p3)  }
   0xe   : > { %s1279_s29 = smov (!%p302_p4, %s300_s29), 11  ;;  %v1028_v23 = vld [vmem:[%s1270_s1 + $0xa0] ss:$8 sps:$4 sm:$0xff]   ;;  %v1029_v24 = vld [vmem:[%s1270_s1 + $0xb4] ss:$8 sps:$4 sm:$0xff]   ;;  %v399_v42 = vsub.s32 1, %v394_v39 }
   0xf   : > { %s1156_s19 = sshll.u32 %s1279_s29, 3  ;;  %v1031_v25 = vld [vmem:[%s1270_s1 + $0xb0] ss:$8 sps:$4 sm:$0xff]   ;;  %v1032_v26 = vld [vmem:[%s1270_s1 + $0xc4] ss:$8 sps:$4 sm:$0xff]  }
  0x10   : > { %958 = vmatpush1.bf16.msra.mxu1 %v1004_v5  ;;  %598 = vmatpush1.bf16.msra.mxu0 %v1004_v5  ;;  %s1165_s24 = scalar_lea.vmem %s1269_s0, %s1156_s19  ;;  %v1034_v27 = vld [vmem:[%s1270_s1 + $0xc0] ss:$8 sps:$4 sm:$0xff]   ;;  %v1035_v28 = vld [vmem:[%s1270_s1 + $0xd4] ss:$8 sps:$4 sm:$0xff]   ;;  %v1037_v29 = vld [vmem:[%s1270_s1 + $0xd0] ss:$8 sps:$4 sm:$0xff]   ;;  %s1237_s25 = scalar_lea.vmem %s1272_s3, %s1156_s19 }
  0x11   : > { %943 = vmatprep.subr.bf16.mxu1 %v1005_v6  ;;  %599 = vmatprep.subr.bf16.mxu0 %v1005_v6  ;;  %v1046_v13 = vld [vmem:[%s1165_s24 + $0x14] ss:$8 sps:$4 sm:$0xff]   ;;  %v1049_v15 = vld [vmem:[%s1165_s24 + $0x4] ss:$8 sps:$4 sm:$0xff]   ;;  %v1040_v31 = vld [vmem:[%s1270_s1 + $0xe0] ss:$8 sps:$4 sm:$0xff]   ;;  %s1251_s29 = scalar_lea.vmem %s1273_s4, %s1156_s19 }
  0x12   : > { %635 = vmatprep.mubr.bf16.mxu1 %v1046_v13  ;;  %625 = vmatprep.mubr.bf16.mxu0 %v1049_v15  ;;  %v1038_v30 = vld [vmem:[%s1270_s1 + $0xe4] ss:$8 sps:$4 sm:$0xff]   ;;  %v1041_v32 = vld [vmem:[%s1270_s1 + $0xf4] ss:$8 sps:$4 sm:$0xff]   ;;  %v1043_v33 = vld [vmem:[%s1270_s1 + $0xf0] ss:$8 sps:$4 sm:$0xff]  }
  0x13   : > { %v1044_v34 = vld [vmem:[%s1165_s24 + $0x10] ss:$8 sps:$4 sm:$0xff]   ;;  %v1047_v35 = vld [vmem:[%s1165_s24] ss:$8 sps:$4 sm:$0xff]   ;;  %v1050_v36 = vld [vmem:[%s1165_s24 + $0x24] ss:$8 sps:$4 sm:$0xff]  }
  0x14   : > { %959 = vmatpush1.bf16.msra.mxu1 %v1007_v7  ;;  %600 = vmatpush1.bf16.msra.mxu0 %v1007_v7  ;;  %v1052_v37 = vld [vmem:[%s1165_s24 + $0x20] ss:$8 sps:$4 sm:$0xff]   ;;  %v658_v43 = vld [vmem:[%s1237_s25 + $0x10] sm:$0xff]  ;;  %v659_v47 = vld [vmem:[%s1237_s25 + $0x18] sm:$0xff] }
  0x15   : > { %944 = vmatprep.subr.bf16.mxu1 %v1008_v8  ;;  %601 = vmatprep.subr.bf16.mxu0 %v1008_v8  ;;  %v391_v41 = vld [vmem:[%s1271_s2] sm:$0x3]  ;;  %v657_v48 = vld [vmem:[%s1237_s25 + $0x8] sm:$0xff]  ;;  %v666_v49 = vunpack.c.l.bf16 %v658_v43  ;;  %v667_v52 = vunpack.c.h.bf16 %v658_v43  ;;  %v668_v57 = vunpack.c.l.bf16 %v659_v47  ;;  %v669_v63 = vunpack.c.h.bf16 %v659_v47 }
  0x16   : > { %v656_v44 = vld [vmem:[%s1237_s25] sm:$0xff]  ;;  %v396_v45 = vrot.slane %v391_v41, %v395_v40  ;;  %v400_v46 = vrot.slane %v391_v41, %v399_v42  ;;  %v664_v60 = vunpack.c.l.bf16 %v657_v48  ;;  %v665_v2 = vunpack.c.h.bf16 %v657_v48 }
  0x17   : > { %v662_v50 = vunpack.c.l.bf16 %v656_v44  ;;  %v663_v54 = vunpack.c.h.bf16 %v656_v44  ;;  %v660_v13 = vld [vmem:[%s1237_s25 + $0x20] sm:$0xff] }
  0x18   : > { %960 = vmatpush1.bf16.msra.mxu1 %v1010_v9  ;;  %602 = vmatpush1.bf16.msra.mxu0 %v1010_v9 }
  0x19   : > { %945 = vmatprep.subr.bf16.mxu1 %v1011_v10  ;;  %603 = vmatprep.subr.bf16.mxu0 %v1011_v10 }
  0x1c   : > { %961 = vmatpush1.bf16.msra.mxu1 %v1013_v11  ;;  %604 = vmatpush1.bf16.msra.mxu0 %v1013_v11 }
  0x1d   : > { %946 = vmatprep.subr.bf16.mxu1 %v1014_v12  ;;  %605 = vmatprep.subr.bf16.mxu0 %v1014_v12 }
  0x20   : > { %962 = vmatpush1.bf16.msra.mxu1 %v1016_v14  ;;  %606 = vmatpush1.bf16.msra.mxu0 %v1016_v14 }
  0x21   : > { %947 = vmatprep.subr.bf16.mxu1 %v1017_v16  ;;  %607 = vmatprep.subr.bf16.mxu0 %v1017_v16 }
  0x24   : > { %963 = vmatpush1.bf16.msra.mxu1 %v1019_v17  ;;  %608 = vmatpush1.bf16.msra.mxu0 %v1019_v17 }
  0x25   : > { %948 = vmatprep.subr.bf16.mxu1 %v1020_v18  ;;  %609 = vmatprep.subr.bf16.mxu0 %v1020_v18 }
  0x28   : > { %964 = vmatpush1.bf16.msra.mxu1 %v1022_v19  ;;  %610 = vmatpush1.bf16.msra.mxu0 %v1022_v19 }
  0x29   : > { %949 = vmatprep.subr.bf16.mxu1 %v1023_v20  ;;  %611 = vmatprep.subr.bf16.mxu0 %v1023_v20  ;;  %v661_v20 = vld [vmem:[%s1237_s25 + $0x28] sm:$0xff] }
  0x2c   : > { %965 = vmatpush1.bf16.msra.mxu1 %v1025_v21  ;;  %612 = vmatpush1.bf16.msra.mxu0 %v1025_v21  ;;  %v670_v21 = vunpack.c.l.bf16 %v660_v13 }
  0x2d   : > { %950 = vmatprep.subr.bf16.mxu1 %v1026_v22  ;;  %613 = vmatprep.subr.bf16.mxu0 %v1026_v22 }
  0x30   : > { %966 = vmatpush1.bf16.msra.mxu1 %v1028_v23  ;;  %614 = vmatpush1.bf16.msra.mxu0 %v1028_v23 }
  0x31   : > { %951 = vmatprep.subr.bf16.mxu1 %v1029_v24  ;;  %615 = vmatprep.subr.bf16.mxu0 %v1029_v24 }
  0x34   : > { %967 = vmatpush1.bf16.msra.mxu1 %v1031_v25  ;;  %616 = vmatpush1.bf16.msra.mxu0 %v1031_v25  ;;  %v671_v25 = vunpack.c.h.bf16 %v660_v13 }
  0x35   : > { %952 = vmatprep.subr.bf16.mxu1 %v1032_v26  ;;  %617 = vmatprep.subr.bf16.mxu0 %v1032_v26 }
  0x38   : > { %968 = vmatpush1.bf16.msra.mxu1 %v1034_v27  ;;  %618 = vmatpush1.bf16.msra.mxu0 %v1034_v27 }
  0x39   : > { %953 = vmatprep.subr.bf16.mxu1 %v1035_v28  ;;  %619 = vmatprep.subr.bf16.mxu0 %v1035_v28  ;;  %v672_v28 = vunpack.c.l.bf16 %v661_v20 }
  0x3c   : > { %969 = vmatpush1.bf16.msra.mxu1 %v1037_v29  ;;  %620 = vmatpush1.bf16.msra.mxu0 %v1037_v29 }
  0x3d   : > { %954 = vmatprep.subr.bf16.mxu1 %v1038_v30  ;;  %621 = vmatprep.subr.bf16.mxu0 %v1038_v30 }
  0x40   : > { %970 = vmatpush1.bf16.msra.mxu1 %v1040_v31  ;;  %622 = vmatpush1.bf16.msra.mxu0 %v1040_v31  ;;  %v673_v31 = vunpack.c.h.bf16 %v661_v20 }
  0x41   : > { %955 = vmatprep.subr.bf16.mxu1 %v1041_v32  ;;  %623 = vmatprep.subr.bf16.mxu0 %v1041_v32 }
  0x44   : > { %971 = vmatpush1.bf16.msra.mxu1 %v1043_v33  ;;  %624 = vmatpush1.bf16.msra.mxu0 %v1043_v33 }
  0x47   : > { %636 = vmatmul.mubr.bf16.vlgmr.msra.gmra.mrb[0].mxu1 %v1044_v34  ;;  %626 = vmatmul.mubr.bf16.vlgmr.msra.gmra.mrb[0].mxu0 %v1047_v35 }
  0x48   : > { %645 = vmatprep.mubr.bf16.mxu1 %v1050_v36 }
  0x4f   : > { %646 = vmatmul.mubr.bf16.gmra.mrb[4].mxu1 %v1052_v37 }
 0x11a   : > { %v637_v51 = vpop.f32.mrb[0].mxu1  ;;  %v627_v53 = vpop.f32.mrb[0].mxu0 }
 0x11b   : > { %v638_v55 = vadd.f32 %v637_v51, %v396_v45  ;;  %v639_v56 = vpop.f32.mrb[1].mxu1  ;;  %v628_v58 = vadd.f32 %v627_v53, %v396_v45  ;;  %v629_v59 = vpop.f32.mrb[1].mxu0 }
 0x11c   : > { %v640_v61 = vadd.f32 %v639_v56, %v400_v46  ;;  %v641_v62 = vpop.f32.mrb[2].mxu1  ;;  %v630_v0 = vadd.f32 %v629_v59, %v400_v46  ;;  %v631_v1 = vpop.f32.mrb[2].mxu0 }
 0x11d   : > { %v678_v3 = vadd.f32 %v666_v49, %v638_v55  ;;  %v642_v4 = vadd.f32 %v641_v62, %v396_v45  ;;  %v643_v5 = vpop.f32.mrb[3].mxu1  ;;  %v674_v6 = vadd.f32 %v662_v50, %v628_v58  ;;  %v632_v7 = vadd.f32 %v631_v1, %v396_v45  ;;  %v633_v8 = vpop.f32.mrb[3].mxu0 }
 0x11e   : > { %v679_v9 = vadd.f32 %v667_v52, %v640_v61  ;;  %v644_v10 = vadd.f32 %v643_v5, %v400_v46  ;;  %v675_v11 = vadd.f32 %v663_v54, %v630_v0  ;;  %v634_v12 = vadd.f32 %v633_v8, %v400_v46 }
 0x11f   : > { %v680_v14 = vadd.f32 %v668_v57, %v642_v4  ;;  %v676_v15 = vadd.f32 %v664_v60, %v632_v7 }
 0x120   : > { %v936_v16 = vpack.c.bf16 %v679_v9, %v678_v3  ;;  %v681_v17 = vadd.f32 %v669_v63, %v644_v10  ;;  %v934_v18 = vpack.c.bf16 %v675_v11, %v674_v6  ;;  %v677_v19 = vadd.f32 %v665_v2, %v634_v12 }
 0x122   : > { %724 = vst [vmem:[%s1251_s29 + $0x10] sm:$0xff] %v936_v16  ;;  %v937_v22 = vpack.c.bf16 %v681_v17, %v680_v14  ;;  %722 = vst [vmem:[%s1251_s29] sm:$0xff] %v934_v18  ;;  %v935_v23 = vpack.c.bf16 %v677_v19, %v676_v15  ;;  %v647_v24 = vpop.f32.mrb[4].mxu1 }
 0x123   : > { %v648_v26 = vadd.f32 %v647_v24, %v396_v45  ;;  %v649_v27 = vpop.f32.mrb[5].mxu1 }
 0x124   : > { %725 = vst [vmem:[%s1251_s29 + $0x18] sm:$0xff] %v937_v22  ;;  %723 = vst [vmem:[%s1251_s29 + $0x8] sm:$0xff] %v935_v23  ;;  %v650_v29 = vadd.f32 %v649_v27, %v400_v46  ;;  %v651_v30 = vpop.f32.mrb[6].mxu1 }
 0x125   : > { %v682_v32 = vadd.f32 %v670_v21, %v648_v26  ;;  %v652_v33 = vadd.f32 %v651_v30, %v396_v45  ;;  %v653_v34 = vpop.f32.mrb[7].mxu1 }
 0x126   : > { %v683_v35 = vadd.f32 %v671_v25, %v650_v29  ;;  %v654_v36 = vadd.f32 %v653_v34, %v400_v46 }
 0x127   : > { %v684_v37 = vadd.f32 %v672_v28, %v652_v33 }
 0x128   : > { %v938_v38 = vpack.c.bf16 %v683_v35, %v682_v32  ;;  %v685_v39 = vadd.f32 %v673_v31, %v654_v36 }
 0x12a   : > { %726 = vst [vmem:[%s1251_s29 + $0x20] sm:$0xff] %v938_v38  ;;  %v939_v40 = vpack.c.bf16 %v685_v39, %v684_v37 }
 0x12c   : > { %727 = vst [vmem:[%s1251_s29 + $0x28] sm:$0xff] %v939_v40 }
 0x12d PF: > { %s14_s17 = sadd.s32 1, %s1075_s17   ;;  %s1274_s15 = smov %s1071_s16 }
 0x12e   : > { %p11_p5 = scmp.ge.s32.totalorder %s14_s17, 4   ;;  %s1275_s16 = smov %s1277_s18 }
 0x130   :  { %13 = sbr.rel (!%p11_p5) target bundleno = 2 (0x2), region = 75 }

// kernel: lvsm_forward.18
= control target key start
LH: loop header
LB: loop body
LE: loop exit
PB: predicated region body
PF: predicated region fallthrough
CT: control target
= control target key end

     0   :  { %s2069_s0 = inlined_call_operand.vmem [shape: bf16[96,256], index: 0, kind: input, shape index: {}]   ;;  %s2070_s1 = inlined_call_operand.vmem [shape: bf16[256,512], index: 1, kind: input, shape index: {}]   ;;  %s2071_s2 = inlined_call_operand.vmem [shape: f32[1,512], index: 2, kind: input, shape index: {}]   ;;  %s2072_s3 = inlined_call_operand.vmem [shape: f32[1,256], index: 3, kind: input, shape index: {}]   ;;  %s2073_s4 = inlined_call_operand.vmem [shape: f32[1,256], index: 4, kind: input, shape index: {}]   ;;  %s2074_s5 = inlined_call_operand.vmem [shape: bf16[96,512], index: 5, kind: output, shape index: {}]  }
   0x1   :  { %2075 = sst [smem:[#allocation5_spill]] %s2070_s1 }
   0x2   :  { %s1606_s18 = smov 0   ;;  %s1608_s19 = smov 0  }
   0x3   :  { %s1610_s20 = smov 0   ;;  %s1612_s21 = smov 0  }
   0x4   :  { %s1614_s22 = smov 0   ;;  %s1616_s23 = smov 0  }
   0x5   :  { %s1618_s24 = smov 0   ;;  %s1620_s25 = smov 0  }
   0x6   :  { %s1622_s26 = smov 0  }
   0x7 LB: > { %s1250_s27 = sadd.s32 4294967295, %s1574_s26   ;;  %s30_s28 = sadd.s32 1, %s1566_s24  ;;  %s1574_s26 = sphi %s1622_s26, %s15_s26   ;;  %s1570_s25 = sphi %s1620_s25, %s2085_s25   ;;  %s1566_s24 = sphi %s1618_s24, %s2084_s24   ;;  %s1562_s23 = sphi %s1616_s23, %s2083_s23   ;;  %s1558_s22 = sphi %s1614_s22, %s2082_s22   ;;  %s1554_s21 = sphi %s1612_s21, %s2081_s21   ;;  %s1550_s20 = sphi %s1610_s20, %s2080_s20   ;;  %s1546_s19 = sphi %s1608_s19, %s2079_s19   ;;  %s1542_s18 = sphi %s1606_s18, %s2078_s18  }
   0x8   : > { %p32_p0 = scmp.ge.s32.totalorder %s30_s28, 2  ;;  %s34_s29 = sadd.s32 1, %s1570_s25 }
   0x9   : > { %s71_s30 = sadd.s32 1, %s1554_s21  ;;  %p78_p1 = scmp.ne.s32.totalorder %s1554_s21, %s1550_s20 }
   0xa   : > { %s2087_s28 = smov (%p32_p0, %s30_s28), 0  ;;  %s2089_s29 = smov (!%p32_p0, %s34_s29), %s1570_s25 }
   0xb   : > { %s67_s6 = ssub.s32 %s1566_s24, %s2087_s28  ;;  %p79_p2 = scmp.eq.s32.totalorder %s1574_s26, 0 }
   0xc   : > { %p36_p3 = scmp.ge.s32.totalorder %s2089_s29, 2  ;;  %p69_p4 = scmp.eq.s32.totalorder %s67_s6, 0 }
   0xd   : > { %p80_p5 = por %p79_p2, %p78_p1  ;;  %s167_s7 = sadd.s32 1, %s1546_s19 }
   0xe   : > { %s2091_s29 = smov (%p36_p3, %s2089_s29), 0  ;;  %p177_p6 = scmp.ne.s32.totalorder %s1546_s19, %s1542_s18 }
   0xf   : > { %s1667_s8 = scalar_select %p69_p4, %s1554_s21, %s71_s30  }
  0x10   : > { %s162_s9 = ssub.s32 %s1570_s25, %s2091_s29  ;;  %p178_p7 = scmp.eq.s32.totalorder %s1250_s27, 3 }
  0x11   : > { %s164_s10 = sor.u32 %s162_s9, %s67_s6  ;;  %p1253_p10 = scmp.ge.s32.totalorder %s1574_s26, 4 }
  0x12   : > { %p165_p8 = scmp.eq.s32.totalorder %s164_s10, 0  ;;  %p1673_p9 = por %p178_p7, %p177_p6 }
  0x13   : > { %206 = sbr.rel (%p1253_p10) target bundleno = 52 (0x34), region = 24 }
  0x14   : > { %s1678_s12 = scalar_select %p165_p8, %s1546_s19, %s167_s7  }
  0x1a   : > { %224 = sbr.rel (!%p80_p5) target bundleno = 52 (0x34), region = 32  ;;  %s226_s13 = sand.u32 (%p80_p5), 1, %s1554_s21  }
  0x1b   : > { %s1306_s14 = sshll.u32 (%p80_p5), %s1566_s24, 3  ;;  %s1254_s15 = sshll.u32 (%p80_p5), %s226_s13, 8 }
  0x1c   : > { %s2077_s1 = sld [smem:[#allocation5_spill]] (%p80_p5)  ;;  %s1691_s30 = scalar_lea.vmem (%p80_p5), [#allocation3], %s1254_s15 }
  0x22   : > { %s1686_s27 = scalar_lea.vmem %s2077_s1, %s1306_s14 }
  0x23   : > { %v324_v0 = vld [vmem:[%s1686_s27] sm:$0xff]  ;;  %v326_v1 = vld [vmem:[%s1686_s27 + $0x10] sm:$0xff] }
  0x24   : > { %v328_v2 = vld [vmem:[%s1686_s27 + $0x20] sm:$0xff]  ;;  %325 = vst [vmem:[%s1691_s30] sm:$0xff] %v324_v0  ;;  %327 = vst [vmem:[%s1691_s30 + $0x8] sm:$0xff] %v326_v1  ;;  %v330_v3 = vld [vmem:[%s1686_s27 + $0x30] sm:$0xff] }
  0x25   : > { %329 = vst [vmem:[%s1691_s30 + $0x10] sm:$0xff] %v328_v2  ;;  %v332_v4 = vld [vmem:[%s1686_s27 + $0x40] sm:$0xff]  ;;  %v334_v5 = vld [vmem:[%s1686_s27 + $0x50] sm:$0xff]  ;;  %331 = vst [vmem:[%s1691_s30 + $0x18] sm:$0xff] %v330_v3 }
  0x26   : > { %333 = vst [vmem:[%s1691_s30 + $0x20] sm:$0xff] %v332_v4  ;;  %335 = vst [vmem:[%s1691_s30 + $0x28] sm:$0xff] %v334_v5  ;;  %v336_v6 = vld [vmem:[%s1686_s27 + $0x60] sm:$0xff]  ;;  %v338_v7 = vld [vmem:[%s1686_s27 + $0x70] sm:$0xff] }
  0x27   : > { %v340_v8 = vld [vmem:[%s1686_s27 + $0x80] sm:$0xff]  ;;  %337 = vst [vmem:[%s1691_s30 + $0x30] sm:$0xff] %v336_v6  ;;  %339 = vst [vmem:[%s1691_s30 + $0x38] sm:$0xff] %v338_v7  ;;  %v342_v9 = vld [vmem:[%s1686_s27 + $0x90] sm:$0xff] }
  0x28   : > { %341 = vst [vmem:[%s1691_s30 + $0x40] sm:$0xff] %v340_v8  ;;  %v344_v10 = vld [vmem:[%s1686_s27 + $0xa0] sm:$0xff]  ;;  %v346_v11 = vld [vmem:[%s1686_s27 + $0xb0] sm:$0xff]  ;;  %343 = vst [vmem:[%s1691_s30 + $0x48] sm:$0xff] %v342_v9 }
  0x29   : > { %345 = vst [vmem:[%s1691_s30 + $0x50] sm:$0xff] %v344_v10  ;;  %347 = vst [vmem:[%s1691_s30 + $0x58] sm:$0xff] %v346_v11  ;;  %v348_v12 = vld [vmem:[%s1686_s27 + $0xc0] sm:$0xff]  ;;  %v350_v13 = vld [vmem:[%s1686_s27 + $0xd0] sm:$0xff] }
  0x2a   : > { %v352_v14 = vld [vmem:[%s1686_s27 + $0xe0] sm:$0xff]  ;;  %349 = vst [vmem:[%s1691_s30 + $0x60] sm:$0xff] %v348_v12  ;;  %351 = vst [vmem:[%s1691_s30 + $0x68] sm:$0xff] %v350_v13  ;;  %v354_v15 = vld [vmem:[%s1686_s27 + $0xf0] sm:$0xff] }
  0x2b   : > { %353 = vst [vmem:[%s1691_s30 + $0x70] sm:$0xff] %v352_v14  ;;  %v356_v16 = vld [vmem:[%s1686_s27 + $0x100] sm:$0xff]  ;;  %v358_v17 = vld [vmem:[%s1686_s27 + $0x110] sm:$0xff]  ;;  %355 = vst [vmem:[%s1691_s30 + $0x78] sm:$0xff] %v354_v15 }
  0x2c   : > { %357 = vst [vmem:[%s1691_s30 + $0x80] sm:$0xff] %v356_v16  ;;  %359 = vst [vmem:[%s1691_s30 + $0x88] sm:$0xff] %v358_v17  ;;  %v360_v18 = vld [vmem:[%s1686_s27 + $0x120] sm:$0xff]  ;;  %v362_v19 = vld [vmem:[%s1686_s27 + $0x130] sm:$0xff] }
  0x2d   : > { %v364_v20 = vld [vmem:[%s1686_s27 + $0x140] sm:$0xff]  ;;  %361 = vst [vmem:[%s1691_s30 + $0x90] sm:$0xff] %v360_v18  ;;  %363 = vst [vmem:[%s1691_s30 + $0x98] sm:$0xff] %v362_v19  ;;  %v366_v21 = vld [vmem:[%s1686_s27 + $0x150] sm:$0xff] }
  0x2e   : > { %365 = vst [vmem:[%s1691_s30 + $0xa0] sm:$0xff] %v364_v20  ;;  %v368_v22 = vld [vmem:[%s1686_s27 + $0x160] sm:$0xff]  ;;  %v370_v23 = vld [vmem:[%s1686_s27 + $0x170] sm:$0xff]  ;;  %367 = vst [vmem:[%s1691_s30 + $0xa8] sm:$0xff] %v366_v21 }
  0x2f   : > { %369 = vst [vmem:[%s1691_s30 + $0xb0] sm:$0xff] %v368_v22  ;;  %371 = vst [vmem:[%s1691_s30 + $0xb8] sm:$0xff] %v370_v23  ;;  %v372_v24 = vld [vmem:[%s1686_s27 + $0x180] sm:$0xff]  ;;  %v374_v25 = vld [vmem:[%s1686_s27 + $0x190] sm:$0xff] }
  0x30   : > { %v376_v26 = vld [vmem:[%s1686_s27 + $0x1a0] sm:$0xff]  ;;  %373 = vst [vmem:[%s1691_s30 + $0xc0] sm:$0xff] %v372_v24  ;;  %375 = vst [vmem:[%s1691_s30 + $0xc8] sm:$0xff] %v374_v25  ;;  %v378_v27 = vld [vmem:[%s1686_s27 + $0x1b0] sm:$0xff] }
  0x31   : > { %377 = vst [vmem:[%s1691_s30 + $0xd0] sm:$0xff] %v376_v26  ;;  %v380_v28 = vld [vmem:[%s1686_s27 + $0x1c0] sm:$0xff]  ;;  %v382_v29 = vld [vmem:[%s1686_s27 + $0x1d0] sm:$0xff]  ;;  %379 = vst [vmem:[%s1691_s30 + $0xd8] sm:$0xff] %v378_v27 }
  0x32   : > { %381 = vst [vmem:[%s1691_s30 + $0xe0] sm:$0xff] %v380_v28  ;;  %383 = vst [vmem:[%s1691_s30 + $0xe8] sm:$0xff] %v382_v29  ;;  %v384_v30 = vld [vmem:[%s1686_s27 + $0x1e0] sm:$0xff]  ;;  %v386_v31 = vld [vmem:[%s1686_s27 + $0x1f0] sm:$0xff] }
  0x33   : > { %385 = vst [vmem:[%s1691_s30 + $0xf0] sm:$0xff] %v384_v30  ;;  %387 = vst [vmem:[%s1691_s30 + $0xf8] sm:$0xff] %v386_v31 }
  0x34 PF: > { %p1257_p11 = scmp.ge.s32.totalorder %s1574_s26, 1  ;;  %p400_p12 = scmp.lt.s32.totalorder %s1574_s26, 5 }
  0x36   : > { %p401_p13 = pnand %p1257_p11, %p400_p12 }
  0x37   : > { %s407_s6 = sand.u32 (!%p401_p13), 1, %s1550_s20   ;;  %s444_s7 = sand.u32 (!%p401_p13), 1, %s1542_s18  }
  0x38   : > { %404 = sbr.rel (%p401_p13) target bundleno = 592 (0x250), region = 74  ;;  %s1258_s9 = sshll.u32 (!%p401_p13), %s407_s6, 8 }
  0x39   : > { %s1347_s10 = smul.u32 (!%p401_p13), 48, %s444_s7  ;;  %s1760_s14 = sshll.u32 (!%p401_p13), %s1558_s22, 1 }
  0x3a   : > { %s447_s13 = smul.u32 (!%p401_p13), 6, %s1562_s23  ;;  %p462_p1 = scmp.lt.s32.totalorder (!%p401_p13), %s1760_s14, 3 }
  0x3b   : > { %s1773_s7 = scalar_lea.vmem (!%p401_p13), [#allocation3], %s1258_s9  ;;  %s1775_s1 = scalar_lea.vmem (!%p401_p13), [#allocation4], %s1347_s10 }
  0x3c   : > { %p449_p0 = scmp.lt.s32.totalorder (!%p401_p13), %s447_s13, 11  ;;  %p1262_p2 = scmp.ne.s32.totalorder (!%p401_p13), %s1558_s22, 0 }
  0x3f   : > { %s2093_s13 = smov (!%p449_p0, %s447_s13), 11  ;;  %471 = sbr.rel (%p1262_p2) target bundleno = 262 (0x106), region = 82 }
  0x40   : > { %s1764_s15 = scalar_select %p462_p1, %s1760_s14, 3 }
  0x41   : > { %s1307_s16 = sshll.u32 %s2093_s13, 3  ;;  %v600_v26 = vlaneseq (!%p1262_p2) }
  0x42   : > { %s456_s30 = scalar_lea.vmem %s2069_s0, %s1307_s16  ;;  %s464_s6 = scalar_lea.vmem %s2071_s2, %s1764_s15 }
  0x43   : > { %v474_v32 = vld [vmem:[%s456_s30 + $0x10] sm:$0xff] (!%p1262_p2)  ;;  %v472_v33 = vld [vmem:[%s456_s30] sm:$0xff] (!%p1262_p2)  ;;  %v475_v34 = vld [vmem:[%s456_s30 + $0x18] sm:$0xff] (!%p1262_p2) }
  0x44   : > { %v1778_v35 = vunpack.c.l.bf16 (!%p1262_p2), %v474_v32  ;;  %v1780_v36 = vunpack.c.h.bf16 (!%p1262_p2), %v474_v32  ;;  %v1782_v37 = vunpack.c.l.bf16 (!%p1262_p2), %v472_v33  ;;  %v1784_v38 = vunpack.c.h.bf16 (!%p1262_p2), %v472_v33  ;;  %v473_v39 = vld [vmem:[%s456_s30 + $0x8] sm:$0xff] (!%p1262_p2)  ;;  %v476_v45 = vld [vmem:[%s456_s30 + $0x20] sm:$0xff] (!%p1262_p2) }
  0x45   : > { %v477_v40 = vld [vmem:[%s456_s30 + $0x28] sm:$0xff] (!%p1262_p2)  ;;  %v1786_v41 = vunpack.c.l.bf16 (!%p1262_p2), %v475_v34  ;;  %v1788_v42 = vunpack.c.h.bf16 (!%p1262_p2), %v475_v34  ;;  %v1790_v43 = vunpack.c.l.bf16 (!%p1262_p2), %v473_v39  ;;  %v1792_v44 = vunpack.c.h.bf16 (!%p1262_p2), %v473_v39 }
  0x46   : > { %v496_v46 = vadd.f32 %v1780_v36, %v1778_v35  ;;  %v490_v47 = vadd.f32 %v1784_v38, %v1782_v37  ;;  %v1798_v48 = vunpack.c.l.bf16 %v477_v40  ;;  %v1800_v49 = vunpack.c.h.bf16 %v477_v40 }
  0x47   : > { %v499_v50 = vadd.f32 %v1788_v42, %v1786_v41  ;;  %v493_v51 = vadd.f32 %v1792_v44, %v1790_v43  ;;  %v1806_v52 = vunpack.c.l.bf16 %v476_v45  ;;  %v1808_v53 = vunpack.c.h.bf16 %v476_v45 }
  0x48   : > { %497 = vadd.xlane.f32.xlu1 %v496_v46  ;;  %491 = vadd.xlane.f32.xlu0 %v490_v47  ;;  %v505_v54 = vadd.f32 %v1800_v49, %v1798_v48  ;;  %v510_v55 = vmul.f32 %v1790_v43, %v1790_v43  ;;  %v511_v56 = vmul.f32 %v1792_v44, %v1792_v44  ;;  %v601_v47 = vshrl.u32 %v600_v26, 7 }
  0x49   : > { %v502_v57 = vadd.f32 %v1808_v53, %v1806_v52  ;;  %v508_v58 = vmul.f32 %v1782_v37, %v1782_v37  ;;  %v509_v59 = vmul.f32 %v1784_v38, %v1784_v38  ;;  %v514_v61 = vmul.f32 %v1786_v41, %v1786_v41 }
  0x4a   : > { %v523_v60 = vadd.f32 %v511_v56, %v510_v55  ;;  %v515_v62 = vmul.f32 %v1788_v42, %v1788_v42  ;;  %v512_v0 = vmul.f32 %v1778_v35, %v1778_v35  ;;  %v513_v1 = vmul.f32 %v1780_v36, %v1780_v36 }
  0x4b   : > { %v520_v63 = vadd.f32 %v509_v59, %v508_v58  ;;  %v518_v2 = vmul.f32 %v1798_v48, %v1798_v48  ;;  %v519_v3 = vmul.f32 %v1800_v49, %v1800_v49  ;;  %v516_v4 = vmul.f32 %v1806_v52, %v1806_v52 }
  0x4c   : > { %500 = vadd.xlane.f32.xlu1 %v499_v50  ;;  %494 = vadd.xlane.f32.xlu0 %v493_v51  ;;  %v529_v5 = vadd.f32 %v515_v62, %v514_v61  ;;  %v526_v6 = vadd.f32 %v513_v1, %v512_v0  ;;  %v517_v7 = vmul.f32 %v1808_v53, %v1808_v53  ;;  %v602_v62 = vsub.s32 0, %v601_v47  ;;  %v598_v1 = vld [vmem:[%s2072_s3] sm:$0x3] }
  0x4d   : > { %v535_v8 = vadd.f32 %v519_v3, %v518_v2  ;;  %v606_v2 = vsub.s32 1, %v601_v47 }
  0x4e   : > { %v532_v9 = vadd.f32 %v517_v7, %v516_v4 }
  0x50   : > { %506 = vadd.xlane.f32.xlu1 %v505_v54  ;;  %503 = vadd.xlane.f32.xlu0 %v502_v57 }
  0x54   : > { %524 = vadd.xlane.f32.xlu1 %v523_v60  ;;  %521 = vadd.xlane.f32.xlu0 %v520_v63 }
  0x58   : > { %530 = vadd.xlane.f32.xlu1 %v529_v5  ;;  %527 = vadd.xlane.f32.xlu0 %v526_v6  ;;  %v603_v5 = vrot.slane %v598_v1, %v602_v62  ;;  %v622_v6 = vld [vmem:[%s2073_s4] sm:$0x3] }
  0x5c   : > { %536 = vadd.xlane.f32.xlu1 %v535_v8  ;;  %533 = vadd.xlane.f32.xlu0 %v532_v9  ;;  %v607_v9 = vrot.slane %v598_v1, %v606_v2 }
  0xd5   : > { %v498_v10 = vpop.xlane.xlu1 %497  ;;  %v492_v11 = vpop.xlane.xlu0 %491 }
  0xd6   : > { %v1838_v16 = vmul.f32 0.00390625, %v492_v11  ;;  %v1840_v18 = vmul.f32 0.00390625, %v498_v10 }
  0xd8   : > { %v550_v24 = vmul.f32 %v1838_v16, %v1838_v16  ;;  %v552_v33 = vmul.f32 %v1840_v18, %v1840_v18  ;;  %v562_v11 = vsub.f32 %v1782_v37, %v1838_v16 }
  0xd9   : > { %v501_v12 = vpop.xlane.xlu1 %500  ;;  %v495_v13 = vpop.xlane.xlu0 %494 }
  0xda   : > { %v539_v17 = vmul.f32 0.00390625, %v495_v13  ;;  %v1842_v19 = vmul.f32 0.00390625, %v501_v12  ;;  %v563_v12 = vsub.f32 %v1784_v38, %v1838_v16 }
  0xdc   : > { %v551_v23 = vmul.f32 %v539_v17, %v539_v17  ;;  %v553_v31 = vmul.f32 %v1842_v19, %v1842_v19  ;;  %v564_v7 = vsub.f32 %v1790_v43, %v539_v17  ;;  %v565_v8 = vsub.f32 %v1792_v44, %v539_v17 }
  0xdd   : > { %v507_v14 = vpop.xlane.xlu1 %506  ;;  %v504_v15 = vpop.xlane.xlu0 %503  ;;  %v567_v43 = vsub.f32 %v1780_v36, %v1840_v18  ;;  %v569_v37 = vsub.f32 %v1788_v42, %v1842_v19 }
  0xde   : > { %v1846_v29 = vmul.f32 0.00390625, %v507_v14  ;;  %v1848_v30 = vmul.f32 0.00390625, %v504_v15  ;;  %v627_v14 = vrot.slane %v622_v6, %v602_v62  ;;  %v631_v15 = vrot.slane %v622_v6, %v606_v2 }
  0xe0   : > { %v555_v54 = vmul.f32 %v1846_v29, %v1846_v29  ;;  %v554_v56 = vmul.f32 %v1848_v30, %v1848_v30 }
  0xe1   : > { %v525_v20 = vpop.xlane.xlu1 %524  ;;  %v522_v21 = vpop.xlane.xlu0 %521 }
  0xe2   : > { %v545_v22 = vmul.f32 0.00390625, %v525_v20  ;;  %v544_v25 = vmul.f32 0.00390625, %v522_v21 }
  0xe4   : > { %v557_v27 = vsub.f32 %v545_v22, %v551_v23  ;;  %v556_v28 = vsub.f32 %v544_v25, %v550_v24  ;;  %v566_v22 = vsub.f32 %v1778_v35, %v1840_v18  ;;  %v568_v23 = vsub.f32 %v1786_v41, %v1842_v19 }
  0xe5   : > { %v531_v32 = vpop.xlane.xlu1 %530  ;;  %v528_v34 = vpop.xlane.xlu0 %527  ;;  %v572_v25 = vsub.f32 %v1798_v48, %v1846_v29  ;;  %v573_v35 = vsub.f32 %v1800_v49, %v1846_v29  ;;  %v570_v19 = vsub.f32 %v1806_v52, %v1848_v30  ;;  %v571_v48 = vsub.f32 %v1808_v53, %v1848_v30 }
  0xe6   : > { %v575_v39 = vadd.f32 1e-05, %v557_v27  ;;  %v574_v40 = vadd.f32 1e-05, %v556_v28  ;;  %v547_v45 = vmul.f32 0.00390625, %v531_v32  ;;  %v546_v46 = vmul.f32 0.00390625, %v528_v34 }
  0xe8   : > { %1420 = vrsqrt.f32 %v575_v39  ;;  %v559_v50 = vsub.f32 %v547_v45, %v553_v31  ;;  %v558_v51 = vsub.f32 %v546_v46, %v552_v33 }
  0xe9   : > { %1422 = vrsqrt.f32 %v574_v40  ;;  %v537_v55 = vpop.xlane.xlu1 %536  ;;  %v534_v57 = vpop.xlane.xlu0 %533 }
  0xea   : > { %v577_v58 = vadd.f32 1e-05, %v559_v50  ;;  %v576_v59 = vadd.f32 1e-05, %v558_v51  ;;  %v549_v60 = vmul.f32 0.00390625, %v537_v55  ;;  %v548_v61 = vmul.f32 0.00390625, %v534_v57 }
  0xec   : > { %1424 = vrsqrt.f32 %v577_v58  ;;  %v561_v63 = vsub.f32 %v549_v60, %v555_v54  ;;  %v560_v0 = vsub.f32 %v548_v61, %v554_v56 }
  0xed   : > { %1426 = vrsqrt.f32 %v576_v59 }
  0xee   : > { %v579_v3 = vadd.f32 1e-05, %v561_v63  ;;  %v578_v4 = vadd.f32 1e-05, %v560_v0 }
  0xf0   : > { %1428 = vrsqrt.f32 %v579_v3 }
  0xf1   : > { %1430 = vrsqrt.f32 %v578_v4 }
  0xf2   : > { %v1421_v10 = vpop.eup %1420 }
  0xf3   : > { %v1423_v13 = vpop.eup %1422  ;;  %v588_v20 = vmul.f32 %v1421_v10, %v564_v7  ;;  %v589_v21 = vmul.f32 %v1421_v10, %v565_v8 }
  0xf4   : > { %v586_v44 = vmul.f32 %v1423_v13, %v562_v11  ;;  %v587_v17 = vmul.f32 %v1423_v13, %v563_v12 }
  0xf5   : > { %v612_v38 = vmul.f32 %v603_v5, %v588_v20  ;;  %v613_v16 = vmul.f32 %v607_v9, %v589_v21 }
  0xf6   : > { %v1425_v24 = vpop.eup %1424  ;;  %v610_v26 = vmul.f32 %v603_v5, %v586_v44  ;;  %v611_v27 = vmul.f32 %v607_v9, %v587_v17 }
  0xf7   : > { %v1427_v36 = vpop.eup %1426  ;;  %v636_v18 = vadd.f32 %v627_v14, %v612_v38  ;;  %v637_v28 = vadd.f32 %v631_v15, %v613_v16  ;;  %v592_v31 = vmul.f32 %v1425_v24, %v568_v23  ;;  %v593_v32 = vmul.f32 %v1425_v24, %v569_v37 }
  0xf8   : > { %v634_v41 = vadd.f32 %v627_v14, %v610_v26  ;;  %v635_v33 = vadd.f32 %v631_v15, %v611_v27  ;;  %v590_v34 = vmul.f32 %v1427_v36, %v566_v22  ;;  %v591_v42 = vmul.f32 %v1427_v36, %v567_v43 }
  0xf9   : > { %v616_v39 = vmul.f32 %v603_v5, %v592_v31  ;;  %v617_v40 = vmul.f32 %v607_v9, %v593_v32 }
  0xfa   : > { %v1429_v49 = vpop.eup %1428  ;;  %v646_v29 = vpack.c.bf16 %v636_v18, %v634_v41  ;;  %v647_v45 = vpack.c.bf16 %v637_v28, %v635_v33  ;;  %v614_v46 = vmul.f32 %v603_v5, %v590_v34  ;;  %v615_v47 = vmul.f32 %v607_v9, %v591_v42 }
  0xfb   : > { %v1431_v50 = vpop.eup %1430  ;;  %v640_v51 = vadd.f32 %v627_v14, %v616_v39  ;;  %v641_v54 = vadd.f32 %v631_v15, %v617_v40  ;;  %v596_v55 = vmul.f32 %v1429_v49, %v572_v25  ;;  %v597_v56 = vmul.f32 %v1429_v49, %v573_v35 }
  0xfc   : > { %652 = vst [vmem:[#allocation2] sm:$0xff] %v646_v29  ;;  %653 = vst [vmem:[#allocation2 + $0x8] sm:$0xff] %v647_v45  ;;  %v638_v57 = vadd.f32 %v627_v14, %v614_v46  ;;  %v639_v58 = vadd.f32 %v631_v15, %v615_v47  ;;  %v594_v52 = vmul.f32 %v1431_v50, %v570_v19 }
  0xfd   : > { %v595_v59 = vmul.f32 %v1431_v50, %v571_v48  ;;  %v620_v60 = vmul.f32 %v603_v5, %v596_v55  ;;  %v621_v53 = vmul.f32 %v607_v9, %v597_v56 }
  0xfe   : > { %v648_v30 = vpack.c.bf16 %v640_v51, %v638_v57  ;;  %v649_v61 = vpack.c.bf16 %v641_v54, %v639_v58  ;;  %v618_v62 = vmul.f32 %v603_v5, %v594_v52 }
  0xff   : > { %v619_v63 = vmul.f32 %v607_v9, %v595_v59  ;;  %v644_v0 = vadd.f32 %v627_v14, %v620_v60  ;;  %v645_v1 = vadd.f32 %v631_v15, %v621_v53 }
 0x100   : > { %654 = vst [vmem:[#allocation2 + $0x10] sm:$0xff] %v648_v30  ;;  %655 = vst [vmem:[#allocation2 + $0x18] sm:$0xff] %v649_v61  ;;  %v642_v2 = vadd.f32 %v627_v14, %v618_v62 }
 0x101   : > { %v643_v3 = vadd.f32 %v631_v15, %v619_v63 }
 0x102   : > { %v650_v4 = vpack.c.bf16 %v644_v0, %v642_v2 }
 0x103   : > { %v651_v6 = vpack.c.bf16 %v645_v1, %v643_v3 }
 0x104   : > { %656 = vst [vmem:[#allocation2 + $0x20] sm:$0xff] %v650_v4 }
 0x105   : > { %657 = vst [vmem:[#allocation2 + $0x28] sm:$0xff] %v651_v6 }
 0x106 PF: > { %v1432_v7 = vld [vmem:[%s1773_s7 + $0x4] ss:$8 sps:$4 sm:$0xff]   ;;  %v1434_v5 = vld [vmem:[%s1773_s7] ss:$8 sps:$4 sm:$0xff]   ;;  %v1435_v8 = vld [vmem:[%s1773_s7 + $0x14] ss:$8 sps:$4 sm:$0xff]   ;;  %v698_v49 = vlaneseq }
 0x107   : > { %868 = vmatprep.subr.bf16.mxu0 %v1432_v7  ;;  %1315 = vmatprep.subr.bf16.mxu1 %v1432_v7  ;;  %v1437_v9 = vld [vmem:[%s1773_s7 + $0x10] ss:$8 sps:$4 sm:$0xff]   ;;  %v1438_v10 = vld [vmem:[%s1773_s7 + $0x24] ss:$8 sps:$4 sm:$0xff]   ;;  %v1440_v11 = vld [vmem:[%s1773_s7 + $0x20] ss:$8 sps:$4 sm:$0xff]  }
 0x108   : > { %869 = vmatpush1.bf16.msra.mxu0 %v1434_v5  ;;  %1331 = vmatpush1.bf16.msra.mxu1 %v1434_v5  ;;  %v1441_v12 = vld [vmem:[%s1773_s7 + $0x34] ss:$8 sps:$4 sm:$0xff]   ;;  %v1443_v13 = vld [vmem:[%s1773_s7 + $0x30] ss:$8 sps:$4 sm:$0xff]   ;;  %v1444_v14 = vld [vmem:[%s1773_s7 + $0x44] ss:$8 sps:$4 sm:$0xff]  }
 0x109   : > { %870 = vmatprep.subr.bf16.mxu0 %v1435_v8  ;;  %1316 = vmatprep.subr.bf16.mxu1 %v1435_v8  ;;  %v1446_v15 = vld [vmem:[%s1773_s7 + $0x40] ss:$8 sps:$4 sm:$0xff]   ;;  %v1447_v20 = vld [vmem:[%s1773_s7 + $0x54] ss:$8 sps:$4 sm:$0xff]   ;;  %v1449_v21 = vld [vmem:[%s1773_s7 + $0x50] ss:$8 sps:$4 sm:$0xff]  }
 0x10a   : > { %v1450_v22 = vld [vmem:[%s1773_s7 + $0x64] ss:$8 sps:$4 sm:$0xff]   ;;  %v659_v43 = vld [vmem:[#allocation2 + $0x8] sm:$0xff]  ;;  %v1452_v17 = vld [vmem:[%s1773_s7 + $0x60] ss:$8 sps:$4 sm:$0xff]   ;;  %v699_v29 = vshrl.u32 %v698_v49, 7 }
 0x10b   : > { %v661_v44 = vld [vmem:[#allocation2 + $0x18] sm:$0xff]  ;;  %900 = vmatprep.mubr.bf16.mxu0 %v659_v43  ;;  %v1453_v23 = vld [vmem:[%s1773_s7 + $0x74] ss:$8 sps:$4 sm:$0xff]   ;;  %v1455_v37 = vld [vmem:[%s1773_s7 + $0x70] ss:$8 sps:$4 sm:$0xff]   ;;  %s1314_s15 = smul.u32 (%p1673_p9), 24, %s1562_s23 }
 0x10c   : > { %871 = vmatpush1.bf16.msra.mxu0 %v1437_v9  ;;  %1332 = vmatpush1.bf16.msra.mxu1 %v1437_v9  ;;  %v1456_v38 = vld [vmem:[%s1773_s7 + $0x84] ss:$8 sps:$4 sm:$0xff]   ;;  %v1458_v16 = vld [vmem:[%s1773_s7 + $0x80] ss:$8 sps:$4 sm:$0xff]   ;;  %v1459_v24 = vld [vmem:[%s1773_s7 + $0x94] ss:$8 sps:$4 sm:$0xff]  }
 0x10d   : > { %872 = vmatprep.subr.bf16.mxu0 %v1438_v10  ;;  %1317 = vmatprep.subr.bf16.mxu1 %v1438_v10  ;;  %v1461_v25 = vld [vmem:[%s1773_s7 + $0x90] ss:$8 sps:$4 sm:$0xff]   ;;  %v1462_v35 = vld [vmem:[%s1773_s7 + $0xa4] ss:$8 sps:$4 sm:$0xff]   ;;  %v1464_v26 = vld [vmem:[%s1773_s7 + $0xa0] ss:$8 sps:$4 sm:$0xff]   ;;  %s1091_s27 = sadd.s32 (%p1673_p9), %s1314_s15, %s1760_s14 }
 0x10e   : > { %910 = vmatprep.mubr.bf16.mxu1 %v661_v44  ;;  %v1465_v27 = vld [vmem:[%s1773_s7 + $0xb4] ss:$8 sps:$4 sm:$0xff]   ;;  %v1467_v36 = vld [vmem:[%s1773_s7 + $0xb0] ss:$8 sps:$4 sm:$0xff]   ;;  %v1468_v18 = vld [vmem:[%s1773_s7 + $0xc4] ss:$8 sps:$4 sm:$0xff]  }
 0x10f   : > { %v1470_v28 = vld [vmem:[%s1773_s7 + $0xc0] ss:$8 sps:$4 sm:$0xff]   ;;  %v1471_v31 = vld [vmem:[%s1773_s7 + $0xd4] ss:$8 sps:$4 sm:$0xff]   ;;  %v1473_v32 = vld [vmem:[%s1773_s7 + $0xd0] ss:$8 sps:$4 sm:$0xff]  }
 0x110   : > { %873 = vmatpush1.bf16.msra.mxu0 %v1440_v11  ;;  %1333 = vmatpush1.bf16.msra.mxu1 %v1440_v11  ;;  %v1474_v41 = vld [vmem:[%s1773_s7 + $0xe4] ss:$8 sps:$4 sm:$0xff]   ;;  %v1476_v33 = vld [vmem:[%s1773_s7 + $0xe0] ss:$8 sps:$4 sm:$0xff]   ;;  %v1477_v34 = vld [vmem:[%s1773_s7 + $0xf4] ss:$8 sps:$4 sm:$0xff]  }
 0x111   : > { %874 = vmatprep.subr.bf16.mxu0 %v1441_v12  ;;  %1318 = vmatprep.subr.bf16.mxu1 %v1441_v12  ;;  %v1479_v42 = vld [vmem:[%s1773_s7 + $0xf0] ss:$8 sps:$4 sm:$0xff]   ;;  %v660_v48 = vld [vmem:[#allocation2 + $0x10] sm:$0xff]  ;;  %v700_v45 = vsub.s32 0, %v699_v29  ;;  %v704_v47 = vsub.s32 1, %v699_v29  ;;  %s1303_s30 = sshll.u32 (%p1673_p9), %s1091_s27, 2 }
 0x112   : > { %v658_v19 = vld [vmem:[#allocation2] sm:$0xff]  ;;  %v663_v39 = vld [vmem:[#allocation2 + $0x28] sm:$0xff]  ;;  %s1093_s18 = scalar_lea.vmem (%p1673_p9), %s2074_s5, %s1303_s30 }
 0x113   : > { %v662_v40 = vld [vmem:[#allocation2 + $0x20] sm:$0xff] }
 0x114   : > { %875 = vmatpush1.bf16.msra.mxu0 %v1443_v13  ;;  %1334 = vmatpush1.bf16.msra.mxu1 %v1443_v13  ;;  %v696_v46 = vld [vmem:[%s464_s6] sm:$0x3] }
 0x115   : > { %876 = vmatprep.subr.bf16.mxu0 %v1444_v14  ;;  %1319 = vmatprep.subr.bf16.mxu1 %v1444_v14  ;;  %v1923_v50 = vrot.slane %v696_v46, %v700_v45  ;;  %v1925_v51 = vrot.slane %v696_v46, %v704_v47 }
 0x118   : > { %877 = vmatpush1.bf16.msra.mxu0 %v1446_v15  ;;  %1335 = vmatpush1.bf16.msra.mxu1 %v1446_v15 }
 0x119   : > { %878 = vmatprep.subr.bf16.mxu0 %v1447_v20  ;;  %1320 = vmatprep.subr.bf16.mxu1 %v1447_v20 }
 0x11c   : > { %879 = vmatpush1.bf16.msra.mxu0 %v1449_v21  ;;  %1336 = vmatpush1.bf16.msra.mxu1 %v1449_v21 }
 0x11d   : > { %880 = vmatprep.subr.bf16.mxu0 %v1450_v22  ;;  %1321 = vmatprep.subr.bf16.mxu1 %v1450_v22 }
 0x120   : > { %881 = vmatpush1.bf16.msra.mxu0 %v1452_v17  ;;  %1337 = vmatpush1.bf16.msra.mxu1 %v1452_v17 }
 0x121   : > { %882 = vmatprep.subr.bf16.mxu0 %v1453_v23  ;;  %1322 = vmatprep.subr.bf16.mxu1 %v1453_v23 }
 0x124   : > { %883 = vmatpush1.bf16.msra.mxu0 %v1455_v37  ;;  %1338 = vmatpush1.bf16.msra.mxu1 %v1455_v37 }
 0x125   : > { %884 = vmatprep.subr.bf16.mxu0 %v1456_v38  ;;  %1323 = vmatprep.subr.bf16.mxu1 %v1456_v38 }
 0x128   : > { %885 = vmatpush1.bf16.msra.mxu0 %v1458_v16  ;;  %1339 = vmatpush1.bf16.msra.mxu1 %v1458_v16 }
 0x129   : > { %886 = vmatprep.subr.bf16.mxu0 %v1459_v24  ;;  %1324 = vmatprep.subr.bf16.mxu1 %v1459_v24 }
 0x12c   : > { %887 = vmatpush1.bf16.msra.mxu0 %v1461_v25  ;;  %1340 = vmatpush1.bf16.msra.mxu1 %v1461_v25 }
 0x12d   : > { %888 = vmatprep.subr.bf16.mxu0 %v1462_v35  ;;  %1325 = vmatprep.subr.bf16.mxu1 %v1462_v35 }
 0x130   : > { %889 = vmatpush1.bf16.msra.mxu0 %v1464_v26  ;;  %1341 = vmatpush1.bf16.msra.mxu1 %v1464_v26 }
 0x131   : > { %890 = vmatprep.subr.bf16.mxu0 %v1465_v27  ;;  %1326 = vmatprep.subr.bf16.mxu1 %v1465_v27 }
 0x134   : > { %891 = vmatpush1.bf16.msra.mxu0 %v1467_v36  ;;  %1342 = vmatpush1.bf16.msra.mxu1 %v1467_v36 }
 0x135   : > { %892 = vmatprep.subr.bf16.mxu0 %v1468_v18  ;;  %1327 = vmatprep.subr.bf16.mxu1 %v1468_v18 }
 0x138   : > { %893 = vmatpush1.bf16.msra.mxu0 %v1470_v28  ;;  %1343 = vmatpush1.bf16.msra.mxu1 %v1470_v28 }
 0x139   : > { %894 = vmatprep.subr.bf16.mxu0 %v1471_v31  ;;  %1328 = vmatprep.subr.bf16.mxu1 %v1471_v31 }
 0x13c   : > { %895 = vmatpush1.bf16.msra.mxu0 %v1473_v32  ;;  %1344 = vmatpush1.bf16.msra.mxu1 %v1473_v32 }
 0x13d   : > { %896 = vmatprep.subr.bf16.mxu0 %v1474_v41  ;;  %1329 = vmatprep.subr.bf16.mxu1 %v1474_v41 }
 0x140   : > { %897 = vmatpush1.bf16.msra.mxu0 %v1476_v33  ;;  %1345 = vmatpush1.bf16.msra.mxu1 %v1476_v33 }
 0x141   : > { %898 = vmatprep.subr.bf16.mxu0 %v1477_v34  ;;  %1330 = vmatprep.subr.bf16.mxu1 %v1477_v34 }
 0x144   : > { %899 = vmatpush1.bf16.msra.mxu0 %v1479_v42  ;;  %1346 = vmatpush1.bf16.msra.mxu1 %v1479_v42 }
 0x147   : > { %901 = vmatmul.mubr.bf16.vlgmr.msra.gmra.mrb[0].mxu0 %v658_v19  ;;  %911 = vmatmul.mubr.bf16.vlgmr.msra.gmra.mrb[0].mxu1 %v660_v48 }
 0x148   : > { %920 = vmatprep.mubr.bf16.mxu1 %v663_v39 }
 0x14f   : > { %921 = vmatmul.mubr.bf16.gmra.mrb[4].mxu1 %v662_v40 }
 0x21a   : > { %v902_v54 = vpop.f32.mrb[0].mxu0  ;;  %v912_v55 = vpop.f32.mrb[0].mxu1 }
 0x21b   : > { %v1928_v56 = vadd.f32 %v902_v54, %v1923_v50  ;;  %v1931_v57 = vadd.f32 %v912_v55, %v1923_v50  ;;  %v904_v58 = vpop.f32.mrb[1].mxu0  ;;  %v914_v52 = vpop.f32.mrb[1].mxu1 }
 0x21c   : > { %v1934_v59 = vadd.f32 %v904_v58, %v1925_v51  ;;  %v1937_v60 = vadd.f32 %v914_v52, %v1925_v51  ;;  %v906_v53 = vpop.f32.mrb[2].mxu0  ;;  %v916_v30 = vpop.f32.mrb[2].mxu1 }
 0x21d   : > { %v943_v61 = vmul.f32 0.044715, %v1928_v56  ;;  %v947_v62 = vmul.f32 0.044715, %v1931_v57  ;;  %v1946_v3 = vadd.f32 %v906_v53, %v1923_v50  ;;  %v1949_v4 = vadd.f32 %v916_v30, %v1923_v50  ;;  %v908_v6 = vpop.f32.mrb[3].mxu0  ;;  %v918_v7 = vpop.f32.mrb[3].mxu1 }
 0x21e   : > { %v944_v63 = vmul.f32 0.044715, %v1934_v59  ;;  %v948_v0 = vmul.f32 0.044715, %v1937_v60  ;;  %v1954_v9 = vadd.f32 %v908_v6, %v1925_v51  ;;  %v1966_v44 = vadd.f32 %v918_v7, %v1925_v51 }
 0x21f   : > { %v955_v1 = vmul.f32 %v943_v61, %v1928_v56  ;;  %v959_v2 = vmul.f32 %v947_v62, %v1931_v57  ;;  %v945_v12 = vmul.f32 0.044715, %v1946_v3  ;;  %v949_v15 = vmul.f32 0.044715, %v1949_v4 }
 0x220   : > { %v956_v5 = vmul.f32 %v944_v63, %v1934_v59  ;;  %v960_v8 = vmul.f32 %v948_v0, %v1937_v60  ;;  %v946_v16 = vmul.f32 0.044715, %v1954_v9  ;;  %v950_v41 = vmul.f32 0.044715, %v1966_v44 }
 0x221   : > { %v967_v10 = vmul.f32 %v955_v1, %v1928_v56  ;;  %v971_v11 = vmul.f32 %v959_v2, %v1931_v57  ;;  %v957_v43 = vmul.f32 %v945_v12, %v1946_v3  ;;  %v961_v38 = vmul.f32 %v949_v15, %v1949_v4 }
 0x222   : > { %v968_v13 = vmul.f32 %v956_v5, %v1934_v59  ;;  %v972_v14 = vmul.f32 %v960_v8, %v1937_v60  ;;  %v922_v20 = vpop.f32.mrb[4].mxu1  ;;  %v958_v31 = vmul.f32 %v946_v16, %v1954_v9  ;;  %v962_v39 = vmul.f32 %v950_v41, %v1966_v44 }
 0x223   : > { %v979_v21 = vadd.f32 %v967_v10, %v1928_v56  ;;  %v983_v22 = vadd.f32 %v971_v11, %v1931_v57  ;;  %v924_v17 = vpop.f32.mrb[5].mxu1  ;;  %v969_v26 = vmul.f32 %v957_v43, %v1946_v3  ;;  %v973_v28 = vmul.f32 %v961_v38, %v1949_v4 }
 0x224   : > { %v980_v23 = vadd.f32 %v968_v13, %v1934_v59  ;;  %v984_v37 = vadd.f32 %v972_v14, %v1937_v60  ;;  %v926_v24 = vpop.f32.mrb[6].mxu1  ;;  %v1978_v33 = vadd.f32 %v922_v20, %v1923_v50  ;;  %v970_v42 = vmul.f32 %v958_v31, %v1954_v9 }
 0x225   : > { %v991_v25 = vmul.f32 0.7978846, %v979_v21  ;;  %v995_v35 = vmul.f32 0.7978846, %v983_v22  ;;  %v928_v27 = vpop.f32.mrb[7].mxu1  ;;  %v981_v32 = vadd.f32 %v969_v26, %v1946_v3  ;;  %v985_v34 = vadd.f32 %v973_v28, %v1949_v4 }
 0x226   : > { %v992_v36 = vmul.f32 0.7978846, %v980_v23  ;;  %v996_v18 = vmul.f32 0.7978846, %v984_v37  ;;  %v1983_v19 = vadd.f32 %v924_v17, %v1925_v51  ;;  %v982_v49 = vadd.f32 %v970_v42, %v1954_v9 }
 0x227   : > { %1480 = vtanh.f32 %v991_v25  ;;  %v993_v48 = vmul.f32 0.7978846, %v981_v32  ;;  %v997_v40 = vmul.f32 0.7978846, %v985_v34  ;;  %v951_v29 = vmul.f32 0.044715, %v1978_v33 }
 0x228   : > { %1482 = vtanh.f32 %v995_v35  ;;  %v974_v45 = vmul.f32 %v962_v39, %v1966_v44  ;;  %v952_v46 = vmul.f32 0.044715, %v1983_v19  ;;  %v994_v47 = vmul.f32 0.7978846, %v982_v49 }
 0x229   : > { %1484 = vtanh.f32 %v992_v36  ;;  %v963_v54 = vmul.f32 %v951_v29, %v1978_v33  ;;  %v1992_v55 = vadd.f32 %v926_v24, %v1923_v50  ;;  %v1997_v53 = vadd.f32 %v928_v27, %v1925_v51 }
 0x22a   : > { %1486 = vtanh.f32 %v996_v18  ;;  %v986_v58 = vadd.f32 %v974_v45, %v1966_v44  ;;  %v964_v52 = vmul.f32 %v952_v46, %v1983_v19  ;;  %v931_v50 = vmul.f32 0.5, %v1928_v56 }
 0x22b   : > { %1488 = vtanh.f32 %v993_v48  ;;  %v975_v30 = vmul.f32 %v963_v54, %v1978_v33  ;;  %v953_v61 = vmul.f32 0.044715, %v1992_v55  ;;  %v954_v0 = vmul.f32 0.044715, %v1997_v53 }
 0x22c   : > { %1490 = vtanh.f32 %v997_v40  ;;  %v998_v62 = vmul.f32 0.7978846, %v986_v58  ;;  %v976_v63 = vmul.f32 %v964_v52, %v1983_v19  ;;  %v935_v51 = vmul.f32 0.5, %v1931_v57 }
 0x22d   : > { %1492 = vtanh.f32 %v994_v47  ;;  %v987_v1 = vadd.f32 %v975_v30, %v1978_v33  ;;  %v965_v2 = vmul.f32 %v953_v61, %v1992_v55  ;;  %v966_v5 = vmul.f32 %v954_v0, %v1997_v53 }
 0x22e   : > { %1494 = vtanh.f32 %v998_v62  ;;  %v988_v7 = vadd.f32 %v976_v63, %v1983_v19  ;;  %v932_v11 = vmul.f32 0.5, %v1934_v59  ;;  %v936_v15 = vmul.f32 0.5, %v1937_v60 }
 0x22f   : > { %v999_v12 = vmul.f32 0.7978846, %v987_v1  ;;  %v977_v13 = vmul.f32 %v965_v2, %v1992_v55  ;;  %v978_v21 = vmul.f32 %v966_v5, %v1997_v53  ;;  %v933_v26 = vmul.f32 0.5, %v1946_v3 }
 0x230   : > { %v1000_v20 = vmul.f32 0.7978846, %v988_v7  ;;  %v934_v31 = vmul.f32 0.5, %v1954_v9  ;;  %v937_v42 = vmul.f32 0.5, %v1949_v4  ;;  %v938_v40 = vmul.f32 0.5, %v1966_v44 }
 0x231   : > { %v1481_v6 = vpop.eup %1480  ;;  %1496 = vtanh.f32 %v999_v12  ;;  %v989_v17 = vadd.f32 %v977_v13, %v1992_v55  ;;  %v990_v59 = vadd.f32 %v978_v21, %v1997_v53  ;;  %v939_v47 = vmul.f32 0.5, %v1978_v33 }
 0x232   : > { %v1483_v8 = vpop.eup %1482  ;;  %v1015_v10 = vadd.f32 1.0, %v1481_v6  ;;  %1498 = vtanh.f32 %v1000_v20  ;;  %v940_v4 = vmul.f32 0.5, %v1983_v19  ;;  %v941_v63 = vmul.f32 0.5, %v1992_v55 }
 0x233   : > { %v1485_v56 = vpop.eup %1484  ;;  %v1019_v14 = vadd.f32 1.0, %v1483_v8  ;;  %v1001_v60 = vmul.f32 0.7978846, %v989_v17  ;;  %v1002_v27 = vmul.f32 0.7978846, %v990_v59  ;;  %v942_v1 = vmul.f32 0.5, %v1997_v53 }
 0x234   : > { %v1487_v57 = vpop.eup %1486  ;;  %v1027_v22 = vmul.f32 %v1015_v10, %v931_v50  ;;  %v1016_v43 = vadd.f32 1.0, %v1485_v56 }
 0x235   : > { %v1489_v23 = vpop.eup %1488  ;;  %v1031_v37 = vmul.f32 %v1019_v14, %v935_v51  ;;  %v1020_v38 = vadd.f32 1.0, %v1487_v57  ;;  %1500 = vtanh.f32 %v1001_v60 }
 0x236   : > { %v1491_v16 = vpop.eup %1490  ;;  %v1028_v24 = vmul.f32 %v1016_v43, %v932_v11  ;;  %v1017_v25 = vadd.f32 1.0, %v1489_v23  ;;  %1502 = vtanh.f32 %v1002_v27 }
 0x237   : > { %v1032_v35 = vmul.f32 %v1020_v38, %v936_v15  ;;  %v1493_v36 = vpop.eup %1492  ;;  %v1021_v28 = vadd.f32 1.0, %v1491_v16 }
 0x238   : > { %v1308_v18 = vpack.c.bf16 %v1028_v24, %v1027_v22  ;;  %v1029_v41 = vmul.f32 %v1017_v25, %v933_v26  ;;  %v1018_v34 = vadd.f32 1.0, %v1493_v36  ;;  %v1495_v48 = vpop.eup %1494 }
 0x239   : > { %v1310_v32 = vpack.c.bf16 %v1032_v35, %v1031_v37  ;;  %v1033_v3 = vmul.f32 %v1021_v28, %v937_v42  ;;  %v1022_v49 = vadd.f32 1.0, %v1495_v48 }
 0x23a   : > { %1075 = vst [vmem:[%s1775_s1] sm:$0xff] %v1308_v18  ;;  %v1030_v39 = vmul.f32 %v1018_v34, %v934_v31 }
 0x23b   : > { %1077 = vst [vmem:[%s1775_s1 + $0x10] sm:$0xff] %v1310_v32  ;;  %v1497_v45 = vpop.eup %1496  ;;  %v1034_v9 = vmul.f32 %v1022_v49, %v938_v40 }
 0x23c   : > { %v1309_v29 = vpack.c.bf16 %v1030_v39, %v1029_v41  ;;  %v1499_v46 = vpop.eup %1498  ;;  %v1023_v54 = vadd.f32 1.0, %v1497_v45 }
 0x23d   : > { %v1311_v58 = vpack.c.bf16 %v1034_v9, %v1033_v3  ;;  %v1024_v52 = vadd.f32 1.0, %v1499_v46 }
 0x23e   : > { %1076 = vst [vmem:[%s1775_s1 + $0x8] sm:$0xff] %v1309_v29  ;;  %v1035_v30 = vmul.f32 %v1023_v54, %v939_v47 }
 0x23f   : > { %v1501_v61 = vpop.eup %1500  ;;  %1078 = vst [vmem:[%s1775_s1 + $0x18] sm:$0xff] %v1311_v58  ;;  %v1036_v62 = vmul.f32 %v1024_v52, %v940_v4 }
 0x240   : > { %v1503_v44 = vpop.eup %1502  ;;  %v1025_v0 = vadd.f32 1.0, %v1501_v61 }
 0x241   : > { %v1312_v50 = vpack.c.bf16 %v1036_v62, %v1035_v30  ;;  %v1026_v2 = vadd.f32 1.0, %v1503_v44  ;;  %1087 = sbr.rel (!%p1673_p9) target bundleno = 592 (0x250), region = 86  ;;  %v1131_v19 = vld [vmem:[%s1775_s1] sm:$0xff] (%p1673_p9) }
 0x242   : > { %v1037_v33 = vmul.f32 %v1025_v0, %v941_v63  ;;  %v1135_v53 = vld [vmem:[%s1775_s1 + $0x10] sm:$0xff] (%p1673_p9)  ;;  %1132 = vst [vmem:[%s1093_s18] sm:$0xff] (%p1673_p9), %v1131_v19 }
 0x243   : > { %1079 = vst [vmem:[%s1775_s1 + $0x20] sm:$0xff] %v1312_v50  ;;  %v1038_v6 = vmul.f32 %v1026_v2, %v942_v1  ;;  %1136 = vst [vmem:[%s1093_s18 + $0x20] sm:$0xff] (%p1673_p9), %v1135_v53 }
 0x245   : > { %v1313_v51 = vpack.c.bf16 %v1038_v6, %v1037_v33  ;;  %v1133_v55 = vld [vmem:[%s1775_s1 + $0x8] sm:$0xff] (%p1673_p9) }
 0x246   : > { %v1137_v7 = vld [vmem:[%s1775_s1 + $0x18] sm:$0xff] (%p1673_p9)  ;;  %1134 = vst [vmem:[%s1093_s18 + $0x10] sm:$0xff] (%p1673_p9), %v1133_v55 }
 0x247   : > { %1080 = vst [vmem:[%s1775_s1 + $0x28] sm:$0xff] %v1313_v51  ;;  %1138 = vst [vmem:[%s1093_s18 + $0x30] sm:$0xff] (%p1673_p9), %v1137_v7 }
 0x24a   : > { %v1139_v5 = vld [vmem:[%s1775_s1 + $0x20] sm:$0xff] }
 0x24b   : > { %1140 = vst [vmem:[%s1093_s18 + $0x40] sm:$0xff] %v1139_v5 }
 0x24e   : > { %v1141_v8 = vld [vmem:[%s1775_s1 + $0x28] sm:$0xff] }
 0x24f   : > { %1142 = vst [vmem:[%s1093_s18 + $0x50] sm:$0xff] %v1141_v8 }
 0x250 PF: > { %s15_s26 = sadd.s32 1, %s1574_s26   ;;  %s2078_s18 = smov %s1546_s19 }
 0x251   : > { %p12_p3 = scmp.ge.s32.totalorder %s15_s26, 6   ;;  %s2079_s19 = smov %s1678_s12 }
 0x252   : > { %s2080_s20 = smov %s1554_s21  ;;  %s2081_s21 = smov %s1667_s8 }
 0x253   : > { %s2082_s22 = smov %s1566_s24  ;;  %s2083_s23 = smov %s1570_s25 }
 0x254   : > { %s2084_s24 = smov %s2087_s28  ;;  %s2085_s25 = smov %s2091_s29 }
 0x255   :  { %14 = sbr.rel (!%p12_p3) target bundleno = 7 (0x7), region = 161 }

// kernel: lvsm_forward.19
= control target key start
LH: loop header
LB: loop body
LE: loop exit
PB: predicated region body
PF: predicated region fallthrough
CT: control target
= control target key end

     0   :  { %s1480_s15 = smov 0   ;;  %s1482_s16 = smov 0   ;;  %s1768_s0 = inlined_call_operand.vmem [shape: bf16[96,512], index: 0, kind: input, shape index: {}]   ;;  %s1769_s1 = inlined_call_operand.vmem [shape: bf16[512,256], index: 1, kind: input, shape index: {}]   ;;  %s1770_s2 = inlined_call_operand.vmem [shape: f32[1,256], index: 2, kind: input, shape index: {}]   ;;  %s1771_s3 = inlined_call_operand.vmem [shape: bf16[96,256], index: 3, kind: input, shape index: {}]   ;;  %s1772_s4 = inlined_call_operand.vmem [shape: bf16[96,256], index: 4, kind: output, shape index: {}]  }
   0x1   :  { %s1484_s17 = smov 0  }
   0x2 LB: > { %s33_s18 = sadd.s32 1, %s1449_s16  ;;  %p1169_p0 = scmp.ge.s32.totalorder %s1453_s17, 1  ;;  %s1453_s17 = sphi %s1484_s17, %s14_s17   ;;  %s1449_s16 = sphi %s1482_s16, %s1774_s16   ;;  %s1445_s15 = sphi %s1480_s15, %s1773_s15  }
   0x3   : > { %p35_p1 = scmp.ge.s32.totalorder %s33_s18, 2  ;;  %p240_p2 = scmp.lt.s32.totalorder %s1453_s17, 3 }
   0x5   : > { %s1776_s18 = smov (%p35_p1, %s33_s18), 0  ;;  %p241_p3 = pnand %p1169_p0, %p240_p2 }
   0x6   : > { %v1317_v0 = vld [vmem:[%s1769_s1 + $0x4] ss:$8 sps:$4 sm:$0xff] (!%p241_p3)   ;;  %v1321_v2 = vld [vmem:[%s1769_s1] ss:$8 sps:$4 sm:$0xff] (!%p241_p3)   ;;  %v1323_v4 = vld [vmem:[%s1769_s1 + $0x14] ss:$8 sps:$4 sm:$0xff] (!%p241_p3)  }
   0x7   : > { %244 = sbr.rel (%p241_p3) target bundleno = 311 (0x137), region = 36  ;;  %v1319_v1 = vld [vmem:[%s1769_s1 + $0x104] ss:$8 sps:$4 sm:$0xff] (!%p241_p3)   ;;  %821 = vmatprep.subr.bf16.mxu1 (!%p241_p3), %v1317_v0  ;;  %v1322_v3 = vld [vmem:[%s1769_s1 + $0x100] ss:$8 sps:$4 sm:$0xff] (!%p241_p3)  }
   0x8   : > { %884 = vmatprep.subr.bf16.mxu0 (!%p241_p3), %v1319_v1  ;;  %822 = vmatpush1.bf16.msra.mxu1 (!%p241_p3), %v1321_v2  ;;  %v1325_v5 = vld [vmem:[%s1769_s1 + $0x114] ss:$8 sps:$4 sm:$0xff] (!%p241_p3)   ;;  %v1327_v6 = vld [vmem:[%s1769_s1 + $0x10] ss:$8 sps:$4 sm:$0xff] (!%p241_p3)   ;;  %v1329_v8 = vld [vmem:[%s1769_s1 + $0x24] ss:$8 sps:$4 sm:$0xff] (!%p241_p3)  }
   0x9   : > { %885 = vmatpush1.bf16.msra.mxu0 (!%p241_p3), %v1322_v3  ;;  %823 = vmatprep.subr.bf16.mxu1 (!%p241_p3), %v1323_v4  ;;  %v1328_v7 = vld [vmem:[%s1769_s1 + $0x110] ss:$8 sps:$4 sm:$0xff] (!%p241_p3)   ;;  %v1331_v9 = vld [vmem:[%s1769_s1 + $0x124] ss:$8 sps:$4 sm:$0xff] (!%p241_p3)   ;;  %v1333_v10 = vld [vmem:[%s1769_s1 + $0x20] ss:$8 sps:$4 sm:$0xff] (!%p241_p3)  }
   0xa   : > { %886 = vmatprep.subr.bf16.mxu0 (!%p241_p3), %v1325_v5  ;;  %v1334_v11 = vld [vmem:[%s1769_s1 + $0x120] ss:$8 sps:$4 sm:$0xff] (!%p241_p3)   ;;  %v1335_v12 = vld [vmem:[%s1769_s1 + $0x34] ss:$8 sps:$4 sm:$0xff] (!%p241_p3)   ;;  %v1339_v14 = vld [vmem:[%s1769_s1 + $0x30] ss:$8 sps:$4 sm:$0xff] (!%p241_p3)  }
   0xb   : > { %v1337_v13 = vld [vmem:[%s1769_s1 + $0x134] ss:$8 sps:$4 sm:$0xff] (!%p241_p3)   ;;  %v1340_v15 = vld [vmem:[%s1769_s1 + $0x130] ss:$8 sps:$4 sm:$0xff] (!%p241_p3)   ;;  %v1341_v16 = vld [vmem:[%s1769_s1 + $0x44] ss:$8 sps:$4 sm:$0xff] (!%p241_p3)  }
   0xc   : > { %824 = vmatpush1.bf16.msra.mxu1 (!%p241_p3), %v1327_v6  ;;  %v1343_v17 = vld [vmem:[%s1769_s1 + $0x144] ss:$8 sps:$4 sm:$0xff] (!%p241_p3)   ;;  %v1345_v18 = vld [vmem:[%s1769_s1 + $0x40] ss:$8 sps:$4 sm:$0xff] (!%p241_p3)   ;;  %v1347_v20 = vld [vmem:[%s1769_s1 + $0x54] ss:$8 sps:$4 sm:$0xff] (!%p241_p3)  }
   0xd   : > { %887 = vmatpush1.bf16.msra.mxu0 (!%p241_p3), %v1328_v7  ;;  %825 = vmatprep.subr.bf16.mxu1 (!%p241_p3), %v1329_v8  ;;  %v1346_v19 = vld [vmem:[%s1769_s1 + $0x140] ss:$8 sps:$4 sm:$0xff] (!%p241_p3)   ;;  %v1349_v21 = vld [vmem:[%s1769_s1 + $0x154] ss:$8 sps:$4 sm:$0xff] (!%p241_p3)   ;;  %v1351_v22 = vld [vmem:[%s1769_s1 + $0x50] ss:$8 sps:$4 sm:$0xff] (!%p241_p3)  }
   0xe   : > { %888 = vmatprep.subr.bf16.mxu0 %v1331_v9  ;;  %v1352_v23 = vld [vmem:[%s1769_s1 + $0x150] ss:$8 sps:$4 sm:$0xff]   ;;  %v1353_v24 = vld [vmem:[%s1769_s1 + $0x64] ss:$8 sps:$4 sm:$0xff]   ;;  %v1357_v26 = vld [vmem:[%s1769_s1 + $0x60] ss:$8 sps:$4 sm:$0xff]  }
   0xf   : > { %v1355_v25 = vld [vmem:[%s1769_s1 + $0x164] ss:$8 sps:$4 sm:$0xff]   ;;  %v1358_v27 = vld [vmem:[%s1769_s1 + $0x160] ss:$8 sps:$4 sm:$0xff]   ;;  %v1359_v28 = vld [vmem:[%s1769_s1 + $0x74] ss:$8 sps:$4 sm:$0xff]  }
  0x10   : > { %826 = vmatpush1.bf16.msra.mxu1 %v1333_v10  ;;  %v1361_v29 = vld [vmem:[%s1769_s1 + $0x174] ss:$8 sps:$4 sm:$0xff]   ;;  %s300_s9 = smul.u32 6, %s1445_s15  ;;  %v1363_v30 = vld [vmem:[%s1769_s1 + $0x70] ss:$8 sps:$4 sm:$0xff]  }
  0x11   : > { %889 = vmatpush1.bf16.msra.mxu0 %v1334_v11  ;;  %827 = vmatprep.subr.bf16.mxu1 %v1335_v12  ;;  %v1364_v31 = vld [vmem:[%s1769_s1 + $0x170] ss:$8 sps:$4 sm:$0xff]   ;;  %v1365_v32 = vld [vmem:[%s1769_s1 + $0x84] ss:$8 sps:$4 sm:$0xff]   ;;  %v1369_v34 = vld [vmem:[%s1769_s1 + $0x80] ss:$8 sps:$4 sm:$0xff]   ;;  %v431_v12 = vlaneseq }
  0x12   : > { %890 = vmatprep.subr.bf16.mxu0 %v1337_v13  ;;  %v1367_v33 = vld [vmem:[%s1769_s1 + $0x184] ss:$8 sps:$4 sm:$0xff]   ;;  %p302_p4 = scmp.lt.s32.totalorder %s300_s9, 11  ;;  %v1370_v35 = vld [vmem:[%s1769_s1 + $0x180] ss:$8 sps:$4 sm:$0xff]  }
  0x13   : > { %v1371_v36 = vld [vmem:[%s1769_s1 + $0x94] ss:$8 sps:$4 sm:$0xff]   ;;  %v1375_v38 = vld [vmem:[%s1769_s1 + $0x90] ss:$8 sps:$4 sm:$0xff]   ;;  %v1377_v40 = vld [vmem:[%s1769_s1 + $0xa4] ss:$8 sps:$4 sm:$0xff]  }
  0x14   : > { %828 = vmatpush1.bf16.msra.mxu1 %v1339_v14  ;;  %v1373_v37 = vld [vmem:[%s1769_s1 + $0x194] ss:$8 sps:$4 sm:$0xff]   ;;  %s1778_s9 = smov (!%p302_p4, %s300_s9), 11  ;;  %v1376_v39 = vld [vmem:[%s1769_s1 + $0x190] ss:$8 sps:$4 sm:$0xff]   ;;  %v432_v13 = vshrl.u32 %v431_v12, 7 }
  0x15   : > { %891 = vmatpush1.bf16.msra.mxu0 %v1340_v15  ;;  %829 = vmatprep.subr.bf16.mxu1 %v1341_v16  ;;  %v1379_v41 = vld [vmem:[%s1769_s1 + $0x1a4] ss:$8 sps:$4 sm:$0xff]   ;;  %s1260_s12 = sshll.u32 %s1778_s9, 4  ;;  %v1381_v42 = vld [vmem:[%s1769_s1 + $0xa0] ss:$8 sps:$4 sm:$0xff]   ;;  %s1261_s21 = sshll.u32 %s1778_s9, 3 }
  0x16   : > { %892 = vmatprep.subr.bf16.mxu0 %v1343_v17  ;;  %v1382_v43 = vld [vmem:[%s1769_s1 + $0x1a0] ss:$8 sps:$4 sm:$0xff]   ;;  %v1383_v44 = vld [vmem:[%s1769_s1 + $0xb4] ss:$8 sps:$4 sm:$0xff]   ;;  %s1642_s24 = scalar_lea.vmem %s1768_s0, %s1260_s12  ;;  %v1387_v46 = vld [vmem:[%s1769_s1 + $0xb0] ss:$8 sps:$4 sm:$0xff]   ;;  %s1722_s26 = scalar_lea.vmem %s1771_s3, %s1261_s21 }
  0x17   : > { %v1385_v45 = vld [vmem:[%s1769_s1 + $0x1b4] ss:$8 sps:$4 sm:$0xff]   ;;  %v1388_v47 = vld [vmem:[%s1769_s1 + $0x1b0] ss:$8 sps:$4 sm:$0xff]   ;;  %v1389_v48 = vld [vmem:[%s1769_s1 + $0xc4] ss:$8 sps:$4 sm:$0xff]   ;;  %s1740_s28 = scalar_lea.vmem %s1772_s4, %s1261_s21 }
  0x18   : > { %830 = vmatpush1.bf16.msra.mxu1 %v1345_v18  ;;  %v1415_v49 = vld [vmem:[%s1642_s24 + $0x4] ss:$16 sps:$4 sm:$0xff]   ;;  %v1418_v51 = vld [vmem:[%s1642_s24 + $0xc] ss:$16 sps:$4 sm:$0xff]   ;;  %v1393_v52 = vld [vmem:[%s1769_s1 + $0xc0] ss:$8 sps:$4 sm:$0xff]  }
  0x19   : > { %893 = vmatpush1.bf16.msra.mxu0 %v1346_v19  ;;  %831 = vmatprep.subr.bf16.mxu1 %v1347_v20  ;;  %v1391_v50 = vld [vmem:[%s1769_s1 + $0x1c4] ss:$8 sps:$4 sm:$0xff]   ;;  %v1394_v53 = vld [vmem:[%s1769_s1 + $0x1c0] ss:$8 sps:$4 sm:$0xff]   ;;  %v1395_v54 = vld [vmem:[%s1769_s1 + $0xd4] ss:$8 sps:$4 sm:$0xff]  }
  0x1a   : > { %894 = vmatprep.subr.bf16.mxu0 %v1349_v21  ;;  %853 = vmatprep.mubr.bf16.mxu1 %v1415_v49  ;;  %v1397_v55 = vld [vmem:[%s1769_s1 + $0x1d4] ss:$8 sps:$4 sm:$0xff]   ;;  %v1399_v56 = vld [vmem:[%s1769_s1 + $0xd0] ss:$8 sps:$4 sm:$0xff]   ;;  %v1401_v58 = vld [vmem:[%s1769_s1 + $0xe4] ss:$8 sps:$4 sm:$0xff]  }
  0x1b   : > { %916 = vmatprep.mubr.bf16.mxu0 %v1418_v51  ;;  %v1400_v57 = vld [vmem:[%s1769_s1 + $0x1d0] ss:$8 sps:$4 sm:$0xff]   ;;  %v1403_v59 = vld [vmem:[%s1769_s1 + $0x1e4] ss:$8 sps:$4 sm:$0xff]   ;;  %v1405_v60 = vld [vmem:[%s1769_s1 + $0xe0] ss:$8 sps:$4 sm:$0xff]  }
  0x1c   : > { %832 = vmatpush1.bf16.msra.mxu1 %v1351_v22  ;;  %v1406_v61 = vld [vmem:[%s1769_s1 + $0x1e0] ss:$8 sps:$4 sm:$0xff]   ;;  %v1407_v62 = vld [vmem:[%s1769_s1 + $0xf4] ss:$8 sps:$4 sm:$0xff]   ;;  %v1411_v0 = vld [vmem:[%s1769_s1 + $0xf0] ss:$8 sps:$4 sm:$0xff]  }
  0x1d   : > { %895 = vmatpush1.bf16.msra.mxu0 %v1352_v23  ;;  %833 = vmatprep.subr.bf16.mxu1 %v1353_v24  ;;  %v1409_v63 = vld [vmem:[%s1769_s1 + $0x1f4] ss:$8 sps:$4 sm:$0xff]   ;;  %v1412_v1 = vld [vmem:[%s1769_s1 + $0x1f0] ss:$8 sps:$4 sm:$0xff]   ;;  %v433_v14 = vsub.s32 0, %v432_v13  ;;  %v437_v16 = vsub.s32 1, %v432_v13 }
  0x1e   : > { %896 = vmatprep.subr.bf16.mxu0 %v1355_v25  ;;  %v1413_v2 = vld [vmem:[%s1642_s24] ss:$16 sps:$4 sm:$0xff]   ;;  %v1416_v3 = vld [vmem:[%s1642_s24 + $0x8] ss:$16 sps:$4 sm:$0xff]   ;;  %v1419_v4 = vld [vmem:[%s1642_s24 + $0x24] ss:$16 sps:$4 sm:$0xff]  }
  0x1f   : > { %v1421_v5 = vld [vmem:[%s1642_s24 + $0x2c] ss:$16 sps:$4 sm:$0xff]   ;;  %v1423_v6 = vld [vmem:[%s1642_s24 + $0x20] ss:$16 sps:$4 sm:$0xff]   ;;  %v1424_v7 = vld [vmem:[%s1642_s24 + $0x28] ss:$16 sps:$4 sm:$0xff]  }
  0x20   : > { %834 = vmatpush1.bf16.msra.mxu1 %v1357_v26  ;;  %v1425_v8 = vld [vmem:[%s1642_s24 + $0x44] ss:$16 sps:$4 sm:$0xff]   ;;  %v1427_v9 = vld [vmem:[%s1642_s24 + $0x4c] ss:$16 sps:$4 sm:$0xff]   ;;  %v1429_v10 = vld [vmem:[%s1642_s24 + $0x40] ss:$16 sps:$4 sm:$0xff]  }
  0x21   : > { %897 = vmatpush1.bf16.msra.mxu0 %v1358_v27  ;;  %835 = vmatprep.subr.bf16.mxu1 %v1359_v28  ;;  %v1430_v11 = vld [vmem:[%s1642_s24 + $0x48] ss:$16 sps:$4 sm:$0xff]   ;;  %v429_v15 = vld [vmem:[%s1770_s2] sm:$0x3] }
  0x22   : > { %898 = vmatprep.subr.bf16.mxu0 %v1361_v29  ;;  %v1724_v17 = vrot.slane %v429_v15, %v433_v14  ;;  %v947_v18 = vld [vmem:[%s1722_s26] sm:$0xff]  ;;  %v1727_v19 = vrot.slane %v429_v15, %v437_v16  ;;  %v948_v22 = vld [vmem:[%s1722_s26 + $0x8] sm:$0xff]  ;;  %v950_v49 = vld [vmem:[%s1722_s26 + $0x18] sm:$0xff] }
  0x23   : > { %v953_v24 = vunpack.c.l.bf16 %v947_v18  ;;  %v954_v28 = vunpack.c.h.bf16 %v947_v18  ;;  %v952_v13 = vld [vmem:[%s1722_s26 + $0x28] sm:$0xff] }
  0x24   : > { %836 = vmatpush1.bf16.msra.mxu1 %v1363_v30 }
  0x25   : > { %899 = vmatpush1.bf16.msra.mxu0 %v1364_v31  ;;  %837 = vmatprep.subr.bf16.mxu1 %v1365_v32 }
  0x26   : > { %900 = vmatprep.subr.bf16.mxu0 %v1367_v33  ;;  %v955_v33 = vunpack.c.l.bf16 %v948_v22 }
  0x28   : > { %838 = vmatpush1.bf16.msra.mxu1 %v1369_v34 }
  0x29   : > { %901 = vmatpush1.bf16.msra.mxu0 %v1370_v35  ;;  %839 = vmatprep.subr.bf16.mxu1 %v1371_v36 }
  0x2a   : > { %902 = vmatprep.subr.bf16.mxu0 %v1373_v37 }
  0x2c   : > { %840 = vmatpush1.bf16.msra.mxu1 %v1375_v38  ;;  %v956_v38 = vunpack.c.h.bf16 %v948_v22 }
  0x2d   : > { %903 = vmatpush1.bf16.msra.mxu0 %v1376_v39  ;;  %841 = vmatprep.subr.bf16.mxu1 %v1377_v40 }
  0x2e   : > { %904 = vmatprep.subr.bf16.mxu0 %v1379_v41 }
  0x30   : > { %842 = vmatpush1.bf16.msra.mxu1 %v1381_v42 }
  0x31   : > { %905 = vmatpush1.bf16.msra.mxu0 %v1382_v43  ;;  %843 = vmatprep.subr.bf16.mxu1 %v1383_v44  ;;  %v949_v43 = vld [vmem:[%s1722_s26 + $0x10] sm:$0xff] }
  0x32   : > { %906 = vmatprep.subr.bf16.mxu0 %v1385_v45  ;;  %v957_v51 = vunpack.c.l.bf16 %v949_v43 }
  0x34   : > { %844 = vmatpush1.bf16.msra.mxu1 %v1387_v46 }
  0x35   : > { %907 = vmatpush1.bf16.msra.mxu0 %v1388_v47  ;;  %845 = vmatprep.subr.bf16.mxu1 %v1389_v48 }
  0x36   : > { %908 = vmatprep.subr.bf16.mxu0 %v1391_v50 }
  0x38   : > { %846 = vmatpush1.bf16.msra.mxu1 %v1393_v52 }
  0x39   : > { %909 = vmatpush1.bf16.msra.mxu0 %v1394_v53  ;;  %847 = vmatprep.subr.bf16.mxu1 %v1395_v54 }
  0x3a   : > { %910 = vmatprep.subr.bf16.mxu0 %v1397_v55 }
  0x3c   : > { %848 = vmatpush1.bf16.msra.mxu1 %v1399_v56  ;;  %v958_v56 = vunpack.c.h.bf16 %v949_v43 }
  0x3d   : > { %911 = vmatpush1.bf16.msra.mxu0 %v1400_v57  ;;  %849 = vmatprep.subr.bf16.mxu1 %v1401_v58 }
  0x3e   : > { %912 = vmatprep.subr.bf16.mxu0 %v1403_v59 }
  0x40   : > { %850 = vmatpush1.bf16.msra.mxu1 %v1405_v60 }
  0x41   : > { %913 = vmatpush1.bf16.msra.mxu0 %v1406_v61  ;;  %851 = vmatprep.subr.bf16.mxu1 %v1407_v62  ;;  %v959_v61 = vunpack.c.l.bf16 %v950_v49 }
  0x42   : > { %914 = vmatprep.subr.bf16.mxu0 %v1409_v63 }
  0x44   : > { %852 = vmatpush1.bf16.msra.mxu1 %v1411_v0 }
  0x45   : > { %915 = vmatpush1.bf16.msra.mxu0 %v1412_v1 }
  0x47   : > { %854 = vmatmul.mubr.bf16.vlgmr.msra.gmra.mrb[0].mxu1 %v1413_v2  ;;  %v960_v2 = vunpack.c.h.bf16 %v950_v49 }
  0x48   : > { %917 = vmatmul.mubr.bf16.vlgmr.msra.gmra.mrb[0].mxu0 %v1416_v3  ;;  %863 = vmatprep.mubr.bf16.mxu1 %v1419_v4 }
  0x49   : > { %926 = vmatprep.mubr.bf16.mxu0 %v1421_v5 }
  0x4f   : > { %864 = vmatmul.mubr.bf16.gmra.mrb[4].mxu1 %v1423_v6 }
  0x50   : > { %927 = vmatmul.mubr.bf16.gmra.mrb[4].mxu0 %v1424_v7  ;;  %873 = vmatprep.mubr.bf16.mxu1 %v1425_v8  ;;  %v951_v7 = vld [vmem:[%s1722_s26 + $0x20] sm:$0xff] }
  0x51   : > { %936 = vmatprep.mubr.bf16.mxu0 %v1427_v9  ;;  %v961_v15 = vunpack.c.l.bf16 %v951_v7  ;;  %v962_v22 = vunpack.c.h.bf16 %v951_v7 }
  0x57   : > { %874 = vmatmul.mubr.bf16.gmra.mrb[8].mxu1 %v1429_v10 }
  0x58   : > { %937 = vmatmul.mubr.bf16.gmra.mrb[8].mxu0 %v1430_v11 }
 0x11a   : > { %v855_v20 = vpop.f32.mrb[0].mxu1 }
 0x11b   : > { %v918_v21 = vpop.f32.mrb[0].mxu0  ;;  %v856_v23 = vadd.f32 %v855_v20, %v1724_v17  ;;  %v857_v25 = vpop.f32.mrb[1].mxu1 }
 0x11c   : > { %v920_v26 = vpop.f32.mrb[1].mxu0  ;;  %v858_v27 = vadd.f32 %v857_v25, %v1727_v19  ;;  %v859_v29 = vpop.f32.mrb[2].mxu1 }
 0x11d   : > { %v922_v30 = vpop.f32.mrb[2].mxu0  ;;  %v919_v31 = vadd.f32 %v918_v21, %v856_v23  ;;  %v860_v32 = vadd.f32 %v859_v29, %v1724_v17  ;;  %v861_v34 = vpop.f32.mrb[3].mxu1 }
 0x11e   : > { %v924_v35 = vpop.f32.mrb[3].mxu0  ;;  %v921_v36 = vadd.f32 %v920_v26, %v858_v27  ;;  %v862_v37 = vadd.f32 %v861_v34, %v1727_v19  ;;  %v963_v27 = vunpack.c.l.bf16 %v952_v13 }
 0x11f   : > { %v965_v39 = vadd.f32 %v953_v24, %v919_v31  ;;  %v923_v40 = vadd.f32 %v922_v30, %v860_v32  ;;  %v964_v32 = vunpack.c.h.bf16 %v952_v13 }
 0x120   : > { %v966_v41 = vadd.f32 %v954_v28, %v921_v36  ;;  %v925_v42 = vadd.f32 %v924_v35, %v862_v37 }
 0x121   : > { %v967_v44 = vadd.f32 %v955_v33, %v923_v40 }
 0x122   : > { %v1263_v45 = vpack.c.bf16 %v966_v41, %v965_v39  ;;  %v968_v46 = vadd.f32 %v956_v38, %v925_v42  ;;  %v865_v47 = vpop.f32.mrb[4].mxu1 }
 0x123   : > { %v928_v48 = vpop.f32.mrb[4].mxu0  ;;  %v866_v50 = vadd.f32 %v865_v47, %v1724_v17  ;;  %v867_v52 = vpop.f32.mrb[5].mxu1 }
 0x124   : > { %v930_v53 = vpop.f32.mrb[5].mxu0  ;;  %1013 = vst [vmem:[%s1740_s28] sm:$0xff] %v1263_v45  ;;  %v1264_v54 = vpack.c.bf16 %v968_v46, %v967_v44  ;;  %v868_v55 = vadd.f32 %v867_v52, %v1727_v19  ;;  %v869_v57 = vpop.f32.mrb[6].mxu1 }
 0x125   : > { %v932_v58 = vpop.f32.mrb[6].mxu0  ;;  %v929_v59 = vadd.f32 %v928_v48, %v866_v50  ;;  %v870_v60 = vadd.f32 %v869_v57, %v1724_v17  ;;  %v871_v62 = vpop.f32.mrb[7].mxu1 }
 0x126   : > { %v934_v63 = vpop.f32.mrb[7].mxu0  ;;  %1014 = vst [vmem:[%s1740_s28 + $0x8] sm:$0xff] %v1264_v54  ;;  %v931_v0 = vadd.f32 %v930_v53, %v868_v55  ;;  %v872_v1 = vadd.f32 %v871_v62, %v1727_v19 }
 0x127   : > { %v969_v3 = vadd.f32 %v957_v51, %v929_v59  ;;  %v933_v4 = vadd.f32 %v932_v58, %v870_v60 }
 0x128   : > { %v970_v5 = vadd.f32 %v958_v56, %v931_v0  ;;  %v935_v6 = vadd.f32 %v934_v63, %v872_v1 }
 0x129   : > { %v971_v8 = vadd.f32 %v959_v61, %v933_v4 }
 0x12a   : > { %v1265_v9 = vpack.c.bf16 %v970_v5, %v969_v3  ;;  %v972_v10 = vadd.f32 %v960_v2, %v935_v6  ;;  %v875_v11 = vpop.f32.mrb[8].mxu1 }
 0x12b   : > { %v938_v12 = vpop.f32.mrb[8].mxu0  ;;  %v876_v14 = vadd.f32 %v875_v11, %v1724_v17  ;;  %v877_v16 = vpop.f32.mrb[9].mxu1 }
 0x12c   : > { %v940_v18 = vpop.f32.mrb[9].mxu0  ;;  %1015 = vst [vmem:[%s1740_s28 + $0x10] sm:$0xff] %v1265_v9  ;;  %v1266_v20 = vpack.c.bf16 %v972_v10, %v971_v8  ;;  %v878_v21 = vadd.f32 %v877_v16, %v1727_v19  ;;  %v879_v23 = vpop.f32.mrb[10].mxu1 }
 0x12d   : > { %v942_v24 = vpop.f32.mrb[10].mxu0  ;;  %v939_v25 = vadd.f32 %v938_v12, %v876_v14  ;;  %v880_v26 = vadd.f32 %v879_v23, %v1724_v17  ;;  %v881_v28 = vpop.f32.mrb[11].mxu1 }
 0x12e   : > { %v944_v29 = vpop.f32.mrb[11].mxu0  ;;  %1016 = vst [vmem:[%s1740_s28 + $0x18] sm:$0xff] %v1266_v20  ;;  %v941_v30 = vadd.f32 %v940_v18, %v878_v21  ;;  %v882_v31 = vadd.f32 %v881_v28, %v1727_v19 }
 0x12f   : > { %v973_v33 = vadd.f32 %v961_v15, %v939_v25  ;;  %v943_v34 = vadd.f32 %v942_v24, %v880_v26 }
 0x130   : > { %v974_v35 = vadd.f32 %v962_v22, %v941_v30  ;;  %v945_v36 = vadd.f32 %v944_v29, %v882_v31 }
 0x131   : > { %v975_v37 = vadd.f32 %v963_v27, %v943_v34 }
 0x132   : > { %v1267_v38 = vpack.c.bf16 %v974_v35, %v973_v33  ;;  %v976_v39 = vadd.f32 %v964_v32, %v945_v36 }
 0x134   : > { %1017 = vst [vmem:[%s1740_s28 + $0x20] sm:$0xff] %v1267_v38  ;;  %v1268_v40 = vpack.c.bf16 %v976_v39, %v975_v37 }
 0x136   : > { %1018 = vst [vmem:[%s1740_s28 + $0x28] sm:$0xff] %v1268_v40 }
 0x137 PF: > { %s14_s17 = sadd.s32 1, %s1453_s17   ;;  %s1773_s15 = smov %s1449_s16 }
 0x138   : > { %p11_p5 = scmp.ge.s32.totalorder %s14_s17, 4   ;;  %s1774_s16 = smov %s1776_s18 }
 0x13a   :  { %13 = sbr.rel (!%p11_p5) target bundleno = 2 (0x2), region = 75 }

// kernel: lvsm_forward.25
= control target key start
LH: loop header
LB: loop body
LE: loop exit
PB: predicated region body
PF: predicated region fallthrough
CT: control target
= control target key end

     0   :  { %s864_s18 = smov 0   ;;  %s866_s19 = smov 0   ;;  %s985_s0 = inlined_call_operand.vmem [shape: bf16[32,256], index: 0, kind: input, shape index: {}]   ;;  %s986_s1 = inlined_call_operand.vmem [shape: bf16[256,128], index: 1, kind: input, shape index: {}]   ;;  %s987_s2 = inlined_call_operand.vmem [shape: f32[1,128], index: 2, kind: input, shape index: {}]   ;;  %s988_s3 = inlined_call_operand.vmem [shape: f32[1,256], index: 3, kind: input, shape index: {}]   ;;  %s989_s4 = inlined_call_operand.vmem [shape: f32[1,256], index: 4, kind: input, shape index: {}]   ;;  %s990_s5 = inlined_call_operand.vmem [shape: f32[32,128], index: 5, kind: output, shape index: {}]  }
   0x1   :  { %s868_s20 = smov 0  }
   0x2 LB: > { %s34_s21 = sadd.s32 1, %s828_s19  ;;  %p708_p0 = scmp.ge.s32.totalorder %s832_s20, 1  ;;  %s832_s20 = sphi %s868_s20, %s15_s20   ;;  %s828_s19 = sphi %s866_s19, %s992_s19   ;;  %s824_s18 = sphi %s864_s18, %s991_s18  }
   0x3   : > { %p36_p1 = scmp.ge.s32.totalorder %s34_s21, 2  ;;  %p241_p2 = scmp.lt.s32.totalorder %s832_s20, 3 }
   0x5   : > { %s994_s21 = smov (%p36_p1, %s34_s21), 0  ;;  %p242_p3 = pnand %p708_p0, %p241_p2 }
   0x6   : > { %s709_s22 = sshll.u32 (!%p242_p3), %s824_s18, 1  ;;  %v782_v14 = vld [vmem:[%s986_s1 + $0x40] sm:$0xff] (!%p242_p3)   ;;  %v784_v16 = vld [vmem:[%s986_s1 + $0x48] sm:$0xff] (!%p242_p3)   ;;  %v786_v18 = vld [vmem:[%s986_s1 + $0x50] sm:$0xff] (!%p242_p3)   ;;  %v366_v42 = vlaneseq (!%p242_p3) }
   0x7   : > { %245 = sbr.rel (%p242_p3) target bundleno = 442 (0x1ba), region = 40  ;;  %p290_p4 = scmp.lt.s32.totalorder (!%p242_p3), %s709_s22, 3  ;;  %v783_v15 = vld [vmem:[%s986_s1] sm:$0xff] (!%p242_p3)   ;;  %736 = vmatprep.subr.bf16.mxu0 (!%p242_p3), %v782_v14  ;;  %v785_v17 = vld [vmem:[%s986_s1 + $0x8] sm:$0xff] (!%p242_p3)   ;;  %v787_v19 = vld [vmem:[%s986_s1 + $0x10] sm:$0xff] (!%p242_p3)  }
   0x8   : > { %737 = vmatpush3.bf16.msra.mxu0 (!%p242_p3), %v783_v15  ;;  %v788_v20 = vld [vmem:[%s986_s1 + $0x58] sm:$0xff] (!%p242_p3)   ;;  %v790_v22 = vld [vmem:[%s986_s1 + $0x60] sm:$0xff] (!%p242_p3)   ;;  %v792_v24 = vld [vmem:[%s986_s1 + $0x68] sm:$0xff] (!%p242_p3)   ;;  %v367_v45 = vshrl.u32 (!%p242_p3), %v366_v42, 7 }
   0x9   : > { %738 = vmatprep.subr.bf16.mxu0 (!%p242_p3), %v784_v16  ;;  %v789_v21 = vld [vmem:[%s986_s1 + $0x18] sm:$0xff] (!%p242_p3)   ;;  %v791_v23 = vld [vmem:[%s986_s1 + $0x20] sm:$0xff] (!%p242_p3)   ;;  %v793_v25 = vld [vmem:[%s986_s1 + $0x28] sm:$0xff] (!%p242_p3)  }
   0xa   : > { %v794_v26 = vld [vmem:[%s986_s1 + $0x70] sm:$0xff] (!%p242_p3)   ;;  %v796_v28 = vld [vmem:[%s986_s1 + $0x78] sm:$0xff] (!%p242_p3)   ;;  %v368_v46 = vsub.s32 (!%p242_p3), 0, %v367_v45  ;;  %v372_v47 = vsub.s32 (!%p242_p3), 1, %v367_v45  ;;  %v364_v48 = vld [vmem:[%s988_s3] sm:$0x3] (!%p242_p3) }
   0xb   : > { %v795_v27 = vld [vmem:[%s986_s1 + $0x30] sm:$0xff] (!%p242_p3)   ;;  %v797_v29 = vld [vmem:[%s986_s1 + $0x38] sm:$0xff] (!%p242_p3)   ;;  %v380_v55 = vld [vmem:[%s989_s4] sm:$0x3] (!%p242_p3) }
   0xc   : > { %739 = vmatpush3.bf16.msra.mxu0 (!%p242_p3), %v785_v17  ;;  %v369_v53 = vrot.slane (!%p242_p3), %v364_v48, %v368_v46  ;;  %v373_v54 = vrot.slane (!%p242_p3), %v364_v48, %v372_v47  ;;  %v385_v60 = vrot.slane (!%p242_p3), %v380_v55, %v368_v46  ;;  %v389_v61 = vrot.slane (!%p242_p3), %v380_v55, %v372_v47 }
   0xd   : > { %740 = vmatprep.subr.bf16.mxu0 (!%p242_p3), %v786_v18 }
   0xe   : > { %s996_s22 = smov (!%p290_p4, %s709_s22), 3 }
   0xf   : > { %s735_s23 = sshll.u32 %s996_s22, 3 }
  0x10   : > { %s297_s26 = scalar_lea.vmem %s985_s0, %s735_s23  ;;  %741 = vmatpush3.bf16.msra.mxu0 %v787_v19  ;;  %s319_s27 = scalar_lea.vmem %s990_s5, %s735_s23 }
  0x11   : > { %v322_v0 = vld [vmem:[%s297_s26] sm:$0xff]  ;;  %v323_v1 = vld [vmem:[%s297_s26 + $0x8] sm:$0xff]  ;;  %742 = vmatprep.subr.bf16.mxu0 %v788_v20 }
  0x12   : > { %v890_v2 = vunpack.c.l.bf16 %v322_v0  ;;  %v892_v3 = vunpack.c.h.bf16 %v322_v0  ;;  %v894_v4 = vunpack.c.l.bf16 %v323_v1  ;;  %v896_v5 = vunpack.c.h.bf16 %v323_v1 }
  0x14   : > { %v328_v6 = vadd.f32 %v892_v3, %v890_v2  ;;  %v334_v7 = vmul.f32 %v890_v2, %v890_v2  ;;  %v335_v8 = vmul.f32 %v892_v3, %v892_v3  ;;  %v336_v9 = vmul.f32 %v894_v4, %v894_v4  ;;  %743 = vmatpush3.bf16.msra.mxu0 %v789_v21 }
  0x15   : > { %v337_v10 = vmul.f32 %v896_v5, %v896_v5  ;;  %v331_v12 = vadd.f32 %v896_v5, %v894_v4  ;;  %744 = vmatprep.subr.bf16.mxu0 %v790_v22 }
  0x16   : > { %329 = vadd.xlane.f32.xlu0 %v328_v6  ;;  %v338_v11 = vadd.f32 %v335_v8, %v334_v7 }
  0x17   : > { %v341_v13 = vadd.f32 %v337_v10, %v336_v9 }
  0x18   : > { %339 = vadd.xlane.f32.xlu1 %v338_v11  ;;  %745 = vmatpush3.bf16.msra.mxu0 %v791_v23 }
  0x19   : > { %746 = vmatprep.subr.bf16.mxu0 %v792_v24 }
  0x1a   : > { %332 = vadd.xlane.f32.xlu0 %v331_v12 }
  0x1c   : > { %342 = vadd.xlane.f32.xlu1 %v341_v13  ;;  %747 = vmatpush3.bf16.msra.mxu0 %v793_v25 }
  0x1d   : > { %748 = vmatprep.subr.bf16.mxu0 %v794_v26 }
  0x20   : > { %749 = vmatpush3.bf16.msra.mxu0 %v795_v27 }
  0x21   : > { %750 = vmatprep.subr.bf16.mxu0 %v796_v28 }
  0x24   : > { %751 = vmatpush3.bf16.msra.mxu0 %v797_v29 }
  0xa3   : > { %v330_v30 = vpop.xlane.xlu0 %329 }
  0xa4   : > { %v344_v31 = vmul.f32 0.00390625, %v330_v30 }
  0xa5   : > { %v340_v32 = vpop.xlane.xlu1 %339 }
  0xa6   : > { %v346_v33 = vmul.f32 0.00390625, %v340_v32  ;;  %v348_v34 = vmul.f32 %v344_v31, %v344_v31  ;;  %v352_v50 = vsub.f32 %v890_v2, %v344_v31  ;;  %v353_v51 = vsub.f32 %v892_v3, %v344_v31 }
  0xa7   : > { %v333_v35 = vpop.xlane.xlu0 %332 }
  0xa8   : > { %v350_v36 = vsub.f32 %v346_v33, %v348_v34  ;;  %v345_v37 = vmul.f32 0.00390625, %v333_v35 }
  0xa9   : > { %v343_v38 = vpop.xlane.xlu1 %342 }
  0xaa   : > { %v356_v39 = vadd.f32 1e-05, %v350_v36  ;;  %v347_v40 = vmul.f32 0.00390625, %v343_v38  ;;  %v349_v41 = vmul.f32 %v345_v37, %v345_v37  ;;  %v354_v57 = vsub.f32 %v894_v4, %v345_v37 }
  0xab   : > { %v355_v58 = vsub.f32 %v896_v5, %v345_v37  ;;  %v714_v5 = vld [vmem:[%s987_s2] ss:$0 sm:$0xff] }
  0xac   : > { %798 = vrsqrt.f32 %v356_v39  ;;  %v351_v43 = vsub.f32 %v347_v40, %v349_v41 }
  0xae   : > { %v357_v44 = vadd.f32 1e-05, %v351_v43 }
  0xb0   : > { %800 = vrsqrt.f32 %v357_v44 }
  0xb6   : > { %v799_v49 = vpop.eup %798 }
  0xb7   : > { %v361_v52 = vmul.f32 %v799_v49, %v353_v51  ;;  %v360_v56 = vmul.f32 %v799_v49, %v352_v50 }
  0xb9   : > { %v377_v63 = vmul.f32 %v373_v54, %v361_v52  ;;  %v376_v1 = vmul.f32 %v369_v53, %v360_v56 }
  0xba   : > { %v801_v59 = vpop.eup %800 }
  0xbb   : > { %v363_v62 = vmul.f32 %v801_v59, %v355_v58  ;;  %v362_v0 = vmul.f32 %v801_v59, %v354_v57  ;;  %v393_v6 = vadd.f32 %v389_v61, %v377_v63  ;;  %v392_v8 = vadd.f32 %v385_v60, %v376_v1 }
  0xbd   : > { %v379_v2 = vmul.f32 %v373_v54, %v363_v62  ;;  %v378_v3 = vmul.f32 %v369_v53, %v362_v0 }
  0xbf   : > { %v395_v7 = vadd.f32 %v389_v61, %v379_v2  ;;  %v394_v9 = vadd.f32 %v385_v60, %v378_v3 }
  0xc1   : > { %v397_v10 = vpack.c.bf16 %v395_v7, %v393_v6  ;;  %v396_v11 = vpack.c.bf16 %v394_v9, %v392_v8 }
  0xc3   : > { %565 = vmatprep.mubr.bf16.mxu0 %v397_v10 }
  0xc4   : > { %566 = vmatmul.mubr.bf16.vlgmr.msra.gmra.mrb[0].mxu0 %v396_v11 }
 0x197   : > { %v752_v4 = vpop.f32.mrb[0].mxu0 }
 0x198   : > { %v753_v12 = vpop.f32.mrb[1].mxu0 }
 0x199   : > { %v754_v13 = vadd.f32 %v753_v12, %v752_v4  ;;  %v755_v14 = vpop.f32.mrb[2].mxu0 }
 0x19a   : > { %v756_v15 = vpop.f32.mrb[3].mxu0 }
 0x19b   : > { %v568_v16 = vadd.f32 %v754_v13, %v714_v5  ;;  %v757_v17 = vadd.f32 %v756_v15, %v755_v14 }
 0x19d   : > { %v731_v18 = vmul.f32 -1.442695, %v568_v16  ;;  %v571_v19 = vadd.f32 %v757_v17, %v714_v5 }
 0x19f   : > { %802 = vpow2.f32 %v731_v18  ;;  %v732_v20 = vmul.f32 -1.442695, %v571_v19 }
 0x1a1   : > { %804 = vpow2.f32 %v732_v20 }
 0x1a9   : > { %v803_v21 = vpop.eup %802 }
 0x1aa   : > { %v580_v22 = vadd.f32 1.0, %v803_v21 }
 0x1ab   : > { %v805_v23 = vpop.eup %804 }
 0x1ac   : > { %806 = vrcp.f32 %v580_v22  ;;  %v581_v24 = vadd.f32 1.0, %v805_v23 }
 0x1ae   : > { %808 = vrcp.f32 %v581_v24 }
 0x1b6   : > { %v807_v25 = vpop.eup %806 }
 0x1b7   : > { %586 = vst [vmem:[%s319_s27] sm:$0xff] %v807_v25 }
 0x1b8   : > { %v809_v26 = vpop.eup %808 }
 0x1b9   : > { %587 = vst [vmem:[%s319_s27 + $0x8] sm:$0xff] %v809_v26 }
 0x1ba PF: > { %s15_s20 = sadd.s32 1, %s832_s20   ;;  %s991_s18 = smov %s828_s19 }
 0x1bb   : > { %p12_p5 = scmp.ge.s32.totalorder %s15_s20, 4   ;;  %s992_s19 = smov %s994_s21 }
 0x1bd   :  { %14 = sbr.rel (!%p12_p5) target bundleno = 2 (0x2), region = 76 }

</bundles_post_ra>
